<compile_context>
chip_gen: v7x
topology: tpu7x:2x2x1
jax: 0.10.0
libtpu: 0.0.40
codegen_flags: <defaults>
</compile_context>

<pallas_src>
import functools
import math

import jax
import jax.numpy as jnp
from jax.experimental import pallas as pl
from jax.experimental.pallas import tpu as pltpu


_VMEM_LIMIT_BYTES = 32 * 1024 * 1024        # small kernels (MLP / head)
_LAP_VMEM_LIMIT_BYTES = 48 * 1024 * 1024    # Laplacian step (v7x has 64 MiB/TC)
_RESIDENT_P_BUDGET = 40 * 1024 * 1024       # keep-p-resident decision threshold


# ---------------------------------------------------------------------------
# Beta-wavelet polynomial coefficients (numeric re-implementation of
# calculate_theta2; no sympy/scipy needed).
# theta_i(x) = (x/2)^i (1 - x/2)^(d-i) / Beta(i+1, d+1-i), ascending coeffs.
# ---------------------------------------------------------------------------
def calculate_theta2(d):
    thetas = []
    for i in range(d + 1):
        beta = math.gamma(i + 1) * math.gamma(d + 1 - i) / math.gamma(d + 2)
        coeffs = [0.0] * (d + 1)
        for m in range(d - i + 1):
            coeffs[i + m] += math.comb(d - i, m) * ((-0.5) ** m) * (0.5 ** i)
        thetas.append(tuple(c / beta for c in coeffs))
    return tuple(thetas)


def _round_up(x, m):
    return (x + m - 1) // m * m


def _choose_geometry(n):
    """Padded node count, destination-row tile, source-column tile."""
    np_ = _round_up(max(n, 256), 256)
    tm = 512
    # keep >= 2 row tiles so the 'parallel' row axis can split across v7x's 2 TCs
    while tm > 8 and (np_ % tm != 0 or np_ // tm < 2):
        tm //= 2
    ns = 1024
    while ns > 128 and np_ % ns != 0:
        ns //= 2
    return np_, tm, ns


def _resident_p_fits(np_, hp, tm, ns):
    # Conservative VMEM estimate for the resident-p Laplacian step (assume
    # double buffering on every operand even when its block index is constant).
    l_tiles = 2 * tm * ns * 2            # bf16 L tiles
    p_whole = 2 * np_ * hp * 2           # bf16 resident p (whole array)
    w3e = 2 * hp * hp * 4
    acc_io = 2 * 2 * tm * hp * 4         # aliased acc in + out
    p_out = 2 * tm * hp * 2
    scratch = tm * hp * 4
    total = l_tiles + p_whole + w3e + acc_io + p_out + scratch
    return total <= _RESIDENT_P_BUDGET


# ---------------------------------------------------------------------------
# Kernels
# ---------------------------------------------------------------------------
def _mlp_kernel(x_ref, w1_ref, b1_ref, w2_ref, b2_ref, w3e0_ref, b3_ref,
                h_ref, acc_ref):
    # h = ReLU(ReLU(x @ W1 + b1) @ W2 + b2)   (one destination-row tile)
    # Emit h in bf16 (it is the RHS of the bf16 Laplacian matmul) and fold the
    # first head contribution: acc = b3 + bf16(h) @ W3_eff[0].
    h = jnp.dot(x_ref[...], w1_ref[...],
                preferred_element_type=jnp.float32) + b1_ref[...]
    h = jnp.maximum(h, 0.0)
    h = jnp.dot(h, w2_ref[...],
                preferred_element_type=jnp.float32) + b2_ref[...]
    h = jnp.maximum(h, 0.0)
    hb = h.astype(jnp.bfloat16)
    h_ref[...] = hb
    acc_ref[...] = jnp.dot(hb, w3e0_ref[...],
                           preferred_element_type=jnp.float32) + b3_ref[...]


def _lap_step_kernel(lap_ref, p_ref, w3e_ref, accin_ref,
                     pout_ref, accout_ref, acc_sc, *, resident, ns):
    # One Laplacian power p_k = (I - D^-1/2 A D^-1/2) @ p_{k-1} as a bf16 x bf16
    # row-tiled matmul accumulated in f32 scratch over source-column tiles.
    # On the last source tile, the head projection p_k @ W3_eff[k] is fused into
    # the aliased f32 accumulator and p_k is written back in bf16.
    j = pl.program_id(1)

    @pl.when(j == 0)
    def _():
        acc_sc[...] = jnp.zeros_like(acc_sc)

    if resident:
        # p_ref holds the whole (Np, hp) bf16 matrix, resident in VMEM.
        start = pl.multiple_of(j * ns, ns)
        p_tile = p_ref[pl.ds(start, ns), :]
    else:
        p_tile = p_ref[...]

    acc_sc[...] += jnp.dot(lap_ref[...], p_tile,
                           preferred_element_type=jnp.float32)

    @pl.when(j == pl.num_programs(1) - 1)
    def _():
        pk_bf = acc_sc[...].astype(jnp.bfloat16)
        pout_ref[...] = pk_bf
        accout_ref[...] = accin_ref[...] + jnp.dot(
            pk_bf, w3e_ref[...], preferred_element_type=jnp.float32)


def _head_kernel(acc_ref, w4_ref, b4_ref, logits_ref, emb_ref):
    # emb = ReLU(acc);  logits = emb @ W4 + b4
    emb = jnp.maximum(acc_ref[...], 0.0)
    emb_ref[...] = emb
    logits_ref[...] = jnp.dot(emb, w4_ref[...],
                              preferred_element_type=jnp.float32) + b4_ref[...]


# ---------------------------------------------------------------------------
# pallas_call wrappers
# ---------------------------------------------------------------------------
def _mlp_forward(x, w1p, b1p, w2p, b2p, w3e0, b3p, *, tm):
    np_, fp = x.shape
    hp = w1p.shape[1]
    return pl.pallas_call(
        _mlp_kernel,
        out_shape=(jax.ShapeDtypeStruct((np_, hp), jnp.bfloat16),
                   jax.ShapeDtypeStruct((np_, hp), jnp.float32)),
        grid=(np_ // tm,),
        in_specs=[
            pl.BlockSpec((tm, fp), lambda i: (i, 0)),
            pl.BlockSpec((fp, hp), lambda i: (0, 0)),
            pl.BlockSpec((1, hp), lambda i: (0, 0)),
            pl.BlockSpec((hp, hp), lambda i: (0, 0)),
            pl.BlockSpec((1, hp), lambda i: (0, 0)),
            pl.BlockSpec((hp, hp), lambda i: (0, 0)),
            pl.BlockSpec((1, hp), lambda i: (0, 0)),
        ],
        out_specs=(pl.BlockSpec((tm, hp), lambda i: (i, 0)),
                   pl.BlockSpec((tm, hp), lambda i: (i, 0))),
        compiler_params=pltpu.CompilerParams(
            dimension_semantics=("parallel",),
            vmem_limit_bytes=_VMEM_LIMIT_BYTES),
    )(x, w1p, b1p, w2p, b2p, w3e0, b3p)


def _laplacian_step(lap_bf16, p_bf16, w3ek, acc_in, *, tm, ns):
    np_, hp = p_bf16.shape
    resident = _resident_p_fits(np_, hp, tm, ns)
    kernel = functools.partial(_lap_step_kernel, resident=resident, ns=ns)
    if resident:
        p_spec = pl.BlockSpec((np_, hp), lambda i, j: (0, 0))   # one DMA per step
    else:
        p_spec = pl.BlockSpec((ns, hp), lambda i, j: (j, 0))    # streamed fallback
    return pl.pallas_call(
        kernel,
        out_shape=(jax.ShapeDtypeStruct((np_, hp), jnp.bfloat16),  # p_k
                   jax.ShapeDtypeStruct((np_, hp), jnp.float32)),  # head acc
        grid=(np_ // tm, np_ // ns),
        in_specs=[
            pl.BlockSpec((tm, ns), lambda i, j: (i, j)),   # bf16 L tile
            p_spec,                                        # bf16 p_{k-1}
            pl.BlockSpec((hp, hp), lambda i, j: (0, 0)),   # W3_eff[k]
            pl.BlockSpec((tm, hp), lambda i, j: (i, 0)),   # acc in (aliased)
        ],
        out_specs=(pl.BlockSpec((tm, hp), lambda i, j: (i, 0)),
                   pl.BlockSpec((tm, hp), lambda i, j: (i, 0))),
        scratch_shapes=[pltpu.VMEM((tm, hp), jnp.float32)],
        input_output_aliases={3: 1},                       # acc_in -> acc_out
        compiler_params=pltpu.CompilerParams(
            dimension_semantics=("parallel", "arbitrary"),
            vmem_limit_bytes=_LAP_VMEM_LIMIT_BYTES),
    )(lap_bf16, p_bf16, w3ek, acc_in)


def _head_forward(acc, w4p, b4p, *, tm):
    np_, hp = acc.shape
    cp = w4p.shape[1]
    return pl.pallas_call(
        _head_kernel,
        out_shape=(jax.ShapeDtypeStruct((np_, cp), jnp.float32),
                   jax.ShapeDtypeStruct((np_, hp), jnp.float32)),
        grid=(np_ // tm,),
        in_specs=[pl.BlockSpec((tm, hp), lambda i: (i, 0)),
                  pl.BlockSpec((hp, cp), lambda i: (0, 0)),
                  pl.BlockSpec((1, cp), lambda i: (0, 0))],
        out_specs=(pl.BlockSpec((tm, cp), lambda i: (i, 0)),
                   pl.BlockSpec((tm, hp), lambda i: (i, 0))),
        compiler_params=pltpu.CompilerParams(
            dimension_semantics=("parallel",),
            vmem_limit_bytes=_VMEM_LIMIT_BYTES),
    )(acc, w4p, b4p)


# ---------------------------------------------------------------------------
# Full forward
# ---------------------------------------------------------------------------
def _normalized_laplacian(adj):
    # L = I - D^-1/2 A D^-1/2, without materializing a dense identity.
    n = adj.shape[0]
    in_deg = jnp.sum(adj, axis=1)                       # adj[dst, src] -> in-degree
    dinv = jnp.power(jnp.maximum(in_deg, 1.0), -0.5).reshape(n, 1)
    lap = -(dinv * adj * dinv.T)
    idx = jnp.arange(n)
    return lap.at[idx, idx].add(1.0)


def _pad2(a, rows, cols):
    return jnp.pad(a, ((0, rows - a.shape[0]), (0, cols - a.shape[1])))


def bwgnn_em_forward(in_feat, adj, params, thetas):
    w1, b1, w2, b2, w3, b3, w4, b4 = params
    n, f = in_feat.shape
    h_feats = w1.shape[1]
    num_classes = w4.shape[1]
    num_conv = len(thetas)
    num_k = len(thetas[0])

    hp = _round_up(h_feats, 128)      # lane-pad hidden dim
    cp = _round_up(num_classes, 128)  # lane-pad class dim
    fp = _round_up(f, 128)            # lane-pad input-feature dim
    np_, tm, ns = _choose_geometry(n)

    # --- one-time preprocessing (plain XLA, not per kernel step) ---
    # bf16 normalized Laplacian, zero-padded to (Np, Np).  Padded columns are
    # zero, so padded feature rows never leak into real rows.
    lap = _normalized_laplacian(adj).astype(jnp.bfloat16)
    lap = jnp.pad(lap, ((0, np_ - n), (0, np_ - n)))

    # Fold thetas into linear3:  W3_eff[k] = sum_j theta_j[k] * W3[j*H:(j+1)*H, :]
    w3_eff = jnp.stack([
        sum(float(thetas[j][k]) * w3[j * h_feats:(j + 1) * h_feats, :]
            for j in range(num_conv))
        for k in range(num_k)
    ])                                                   # (num_k, H, H)
    w3ep = jnp.pad(w3_eff, ((0, 0), (0, hp - h_feats), (0, hp - h_feats)))

    # Zero-pad features / weights / biases (exact; results sliced back below).
    xp = jnp.pad(in_feat, ((0, np_ - n), (0, fp - f)))
    w1p = _pad2(w1, fp, hp)
    b1p = _pad2(b1, 1, hp)
    w2p = _pad2(w2, hp, hp)
    b2p = _pad2(b2, 1, hp)
    b3p = _pad2(b3, 1, hp)
    w4p = _pad2(w4, hp, cp)
    b4p = _pad2(b4, 1, cp)

    # --- kernels ---
    # p_0 (bf16) and acc = b3 + p_0 @ W3_eff[0]
    p, acc = _mlp_forward(xp, w1p, b1p, w2p, b2p, w3ep[0], b3p, tm=tm)
    # p_k = L @ p_{k-1} (bf16), acc += p_k @ W3_eff[k]   (head fused in)
    for k in range(1, num_k):
        p, acc = _laplacian_step(lap, p, w3ep[k], acc, tm=tm, ns=ns)
    logits_p, emb_p = _head_forward(acc, w4p, b4p, tm=tm)

    return logits_p[:n, :num_classes], emb_p[:n, :h_feats]


# ---------------------------------------------------------------------------
# Pure-JAX references
# ---------------------------------------------------------------------------
def bwgnn_em_reference(in_feat, adj, params, thetas):
    """f32 mirror of the PyTorch forward (no quantization)."""
    w1, b1, w2, b2, w3, b3, w4, b4 = params
    n = in_feat.shape[0]
    hi = jax.lax.Precision.HIGHEST
    in_deg = jnp.sum(adj, axis=1)
    dinv = jnp.power(jnp.maximum(in_deg, 1.0), -0.5).reshape(n, 1)
    h = jnp.maximum(jnp.dot(in_feat, w1, precision=hi) + b1, 0.0)
    h = jnp.maximum(jnp.dot(h, w2, precision=hi) + b2, 0.0)

    def unn_lap(feat):
        return feat - jnp.dot(adj, feat * dinv, precision=hi) * dinv

    h_final = []
    for theta in thetas:
        feat = h
        h0 = theta[0] * feat
        for k in range(1, len(theta)):
            feat = unn_lap(feat)
            h0 = h0 + theta[k] * feat
        h_final.append(h0)
    h_cat = jnp.concatenate(h_final, axis=-1)
    h_emb = jnp.maximum(jnp.dot(h_cat, w3, precision=hi) + b3, 0.0)
    logits = jnp.dot(h_emb, w4, precision=hi) + b4
    return logits, h_emb


def bwgnn_em_reference_bf16(in_feat, adj, params, thetas):
    """Mirrors the kernel's quantization: bf16 normalized Laplacian, bf16-stored
    polynomial powers, f32 accumulation — for a tight kernel-correctness check."""
    w1, b1, w2, b2, w3, b3, w4, b4 = params
    hi = jax.lax.Precision.HIGHEST
    lap = _normalized_laplacian(adj).astype(jnp.bfloat16).astype(jnp.float32)
    h = jnp.maximum(jnp.dot(in_feat, w1, precision=hi) + b1, 0.0)
    h = jnp.maximum(jnp.dot(h, w2, precision=hi) + b2, 0.0)
    powers = [h.astype(jnp.bfloat16).astype(jnp.float32)]
    for _ in range(len(thetas[0]) - 1):
        nxt = jnp.dot(lap, powers[-1], precision=hi)
        powers.append(nxt.astype(jnp.bfloat16).astype(jnp.float32))
    h_final = [sum(theta[k] * powers[k] for k in range(len(theta)))
               for theta in thetas]
    h_cat = jnp.concatenate(h_final, axis=-1)
    h_emb = jnp.maximum(jnp.dot(h_cat, w3, precision=hi) + b3, 0.0)
    logits = jnp.dot(h_emb, w4, precision=hi) + b4
    return logits, h_emb


if __name__ == "__main__":
    # Small, module-consistent shapes (big enough to exercise the row/src grid).
    N = 512            # graph nodes
    IN_FEATS = 16
    H_FEATS = 32
    NUM_CLASSES = 4
    D = 2

    thetas = calculate_theta2(D)            # d+1 = 3 filters, each with 3 coeffs
    num_conv = len(thetas)

    key = jax.random.PRNGKey(0)
    keys = jax.random.split(key, 10)

    # Deterministic synthetic graph (dense adjacency, adj[dst, src], no self-loops).
    adj = (jax.random.uniform(keys[0], (N, N)) < 0.02).astype(jnp.float32)
    adj = adj * (1.0 - jnp.eye(N, dtype=jnp.float32))

    # Deterministic parameters (xavier-ish uniform); biases as [1, out].
    def init_w(k, fan_in, fan_out):
        lim = math.sqrt(6.0 / (fan_in + fan_out))
        return jax.random.uniform(k, (fan_in, fan_out), jnp.float32, -lim, lim)

    w1 = init_w(keys[1], IN_FEATS, H_FEATS)
    b1 = jax.random.normal(keys[2], (1, H_FEATS), jnp.float32) * 0.01
    w2 = init_w(keys[3], H_FEATS, H_FEATS)
    b2 = jax.random.normal(keys[4], (1, H_FEATS), jnp.float32) * 0.01
    w3 = init_w(keys[5], H_FEATS * num_conv, H_FEATS)
    b3 = jax.random.normal(keys[6], (1, H_FEATS), jnp.float32) * 0.01
    w4 = init_w(keys[7], H_FEATS, NUM_CLASSES)
    b4 = jax.random.normal(keys[8], (1, NUM_CLASSES), jnp.float32) * 0.01
    params = (w1, b1, w2, b2, w3, b3, w4, b4)

    in_feat = jax.random.normal(keys[9], (N, IN_FEATS), jnp.float32)

    fwd = jax.jit(functools.partial(bwgnn_em_forward, thetas=thetas))
    logits, h_emb = fwd(in_feat, adj, params)
    jax.block_until_ready((logits, h_emb))
    assert logits.shape == (N, NUM_CLASSES) and h_emb.shape == (N, H_FEATS)

    # Tight check: kernel vs an f32 reference that applies the SAME bf16
    # quantization (Laplacian + stored powers) — isolates kernel correctness.
    qlogits, qemb = bwgnn_em_reference_bf16(in_feat, adj, params, thetas)
    assert jnp.allclose(logits, qlogits, atol=1e-2, rtol=1e-2)
    assert jnp.allclose(h_emb, qemb, atol=1e-2, rtol=1e-2)

    # Semantic check vs full-f32 PyTorch-equivalent math; looser tolerance
    # covers the deliberate bf16 quantization of L and the powers.
    rlogits, remb = bwgnn_em_reference(in_feat, adj, params, thetas)
    assert jnp.allclose(logits, rlogits, atol=1e-1, rtol=1e-1)
    assert jnp.allclose(h_emb, remb, atol=1e-1, rtol=1e-1)

    print("KERNEL_OK")
</pallas_src>

<mosaic_0001>
module attributes {stable_mosaic.version = 11 : i64} {
  func.func private @main(%arg0: i32) attributes {dimension_semantics = [#tpu.dimension_semantics<core_parallel>], iteration_bounds = array<i64: 2>, tpu.core_type = #tpu.core_type<sc_scalar_subcore>, window_params = []} {
    return
  }
}

module attributes {stable_mosaic.version = 11 : i64} {
  func.func private @main(%arg0: i32) attributes {dimension_semantics = [#tpu.dimension_semantics<core_parallel>], iteration_bounds = array<i64: 2>, tpu.core_type = #tpu.core_type<sc_scalar_subcore>, window_params = []} {
    return
  }
}

module attributes {stable_mosaic.version = 11 : i64} {
  func.func @_mlp_kernel(%arg0: i32, %arg1: memref<256x128xf32, #tpu.memory_space<vmem>>, %arg2: memref<128x128xf32, #tpu.memory_space<vmem>>, %arg3: memref<1x128xf32, #tpu.memory_space<vmem>>, %arg4: memref<128x128xf32, #tpu.memory_space<vmem>>, %arg5: memref<1x128xf32, #tpu.memory_space<vmem>>, %arg6: memref<128x128xf32, #tpu.memory_space<vmem>>, %arg7: memref<1x128xf32, #tpu.memory_space<vmem>>, %arg8: memref<256x128xbf16, #tpu.memory_space<vmem>>, %arg9: memref<256x128xf32, #tpu.memory_space<vmem>>) attributes {dimension_semantics = [#tpu.dimension_semantics<parallel>], iteration_bounds = array<i64: 2>, scalar_prefetch = 0 : i64, scratch_operands = 0 : i64, tpu.core_type = #tpu.core_type<tc>, window_params = [{transform_indices = @transform_0, window_bounds = array<i64: 256, 128>}, {pipeline_mode = #tpu.pipeline_mode<synchronous>, transform_indices = @transform_1, window_bounds = array<i64: 128, 128>}, {pipeline_mode = #tpu.pipeline_mode<synchronous>, transform_indices = @transform_2, window_bounds = array<i64: 1, 128>}, {pipeline_mode = #tpu.pipeline_mode<synchronous>, transform_indices = @transform_3, window_bounds = array<i64: 128, 128>}, {pipeline_mode = #tpu.pipeline_mode<synchronous>, transform_indices = @transform_4, window_bounds = array<i64: 1, 128>}, {pipeline_mode = #tpu.pipeline_mode<synchronous>, transform_indices = @transform_5, window_bounds = array<i64: 128, 128>}, {pipeline_mode = #tpu.pipeline_mode<synchronous>, transform_indices = @transform_6, window_bounds = array<i64: 1, 128>}, {transform_indices = @transform_7, window_bounds = array<i64: 256, 128>}, {transform_indices = @transform_8, window_bounds = array<i64: 256, 128>}]} {
    %c0 = arith.constant 0 : index
    %c0_0 = arith.constant 0 : index
    %0 = vector.load %arg1[%c0, %c0_0] : memref<256x128xf32, #tpu.memory_space<vmem>>, vector<256x128xf32>
    %c0_1 = arith.constant 0 : index
    %c0_2 = arith.constant 0 : index
    %1 = vector.load %arg2[%c0_1, %c0_2] : memref<128x128xf32, #tpu.memory_space<vmem>>, vector<128x128xf32>
    %cst = arith.constant dense<0.000000e+00> : vector<256x128xf32>
    %2 = tpu.matmul %0, %1, %cst {dimension_numbers = #tpu.dot_dimension_numbers<[1], [0], [0], [1], [0, 0, 1, 1], [], []>} : vector<256x128xf32>, vector<128x128xf32>, vector<256x128xf32> -> vector<256x128xf32>
    %c0_3 = arith.constant 0 : index
    %c0_4 = arith.constant 0 : index
    %3 = vector.load %arg3[%c0_3, %c0_4] : memref<1x128xf32, #tpu.memory_space<vmem>>, vector<1x128xf32>
    %4 = vector.broadcast %3 : vector<1x128xf32> to vector<256x128xf32>
    %5 = arith.addf %2, %4 : vector<256x128xf32>
    %cst_5 = arith.constant 0.000000e+00 : f32
    %6 = vector.broadcast %cst_5 : f32 to vector<256x128xf32>
    %7 = arith.maximumf %5, %6 : vector<256x128xf32>
    %c0_6 = arith.constant 0 : index
    %c0_7 = arith.constant 0 : index
    %8 = vector.load %arg4[%c0_6, %c0_7] : memref<128x128xf32, #tpu.memory_space<vmem>>, vector<128x128xf32>
    %cst_8 = arith.constant dense<0.000000e+00> : vector<256x128xf32>
    %9 = tpu.matmul %7, %8, %cst_8 {dimension_numbers = #tpu.dot_dimension_numbers<[1], [0], [0], [1], [0, 0, 1, 1], [], []>} : vector<256x128xf32>, vector<128x128xf32>, vector<256x128xf32> -> vector<256x128xf32>
    %c0_9 = arith.constant 0 : index
    %c0_10 = arith.constant 0 : index
    %10 = vector.load %arg5[%c0_9, %c0_10] : memref<1x128xf32, #tpu.memory_space<vmem>>, vector<1x128xf32>
    %11 = vector.broadcast %10 : vector<1x128xf32> to vector<256x128xf32>
    %12 = arith.addf %9, %11 : vector<256x128xf32>
    %cst_11 = arith.constant 0.000000e+00 : f32
    %13 = vector.broadcast %cst_11 : f32 to vector<256x128xf32>
    %14 = arith.maximumf %12, %13 : vector<256x128xf32>
    %15 = arith.truncf %14 : vector<256x128xf32> to vector<256x128xbf16>
    %c0_12 = arith.constant 0 : index
    %c0_13 = arith.constant 0 : index
    %16 = vector.load %arg8[%c0_12, %c0_13] : memref<256x128xbf16, #tpu.memory_space<vmem>>, vector<256x128xbf16>
    tpu.vector_store %arg8[%c0_12, %c0_13], %15 {strides = array<i32>} : memref<256x128xbf16, #tpu.memory_space<vmem>>, vector<256x128xbf16>,
    %c0_14 = arith.constant 0 : index
    %c0_15 = arith.constant 0 : index
    %17 = vector.load %arg6[%c0_14, %c0_15] : memref<128x128xf32, #tpu.memory_space<vmem>>, vector<128x128xf32>
    %cst_16 = arith.constant dense<0.000000e+00> : vector<256x128xf32>
    %18 = tpu.matmul %15, %17, %cst_16 {dimension_numbers = #tpu.dot_dimension_numbers<[1], [0], [0], [1], [0, 0, 1, 1], [], []>} : vector<256x128xbf16>, vector<128x128xf32>, vector<256x128xf32> -> vector<256x128xf32>
    %c0_17 = arith.constant 0 : index
    %c0_18 = arith.constant 0 : index
    %19 = vector.load %arg7[%c0_17, %c0_18] : memref<1x128xf32, #tpu.memory_space<vmem>>, vector<1x128xf32>
    %20 = vector.broadcast %19 : vector<1x128xf32> to vector<256x128xf32>
    %21 = arith.addf %18, %20 : vector<256x128xf32>
    %c0_19 = arith.constant 0 : index
    %c0_20 = arith.constant 0 : index
    %22 = vector.load %arg9[%c0_19, %c0_20] : memref<256x128xf32, #tpu.memory_space<vmem>>, vector<256x128xf32>
    tpu.vector_store %arg9[%c0_19, %c0_20], %21 {strides = array<i32>} : memref<256x128xf32, #tpu.memory_space<vmem>>, vector<256x128xf32>,
    return
  }
  func.func @transform_0(%arg0: i32) -> (i32, i32) {
    %c0_i32 = arith.constant 0 : i32
    %c0_i32_0 = arith.constant 0 : i32
    return %arg0, %c0_i32 : i32, i32
  }
  func.func @transform_1(%arg0: i32) -> (i32, i32) {
    %c0_i32 = arith.constant 0 : i32
    %c0_i32_0 = arith.constant 0 : i32
    %c0_i32_1 = arith.constant 0 : i32
    return %c0_i32, %c0_i32_0 : i32, i32
  }
  func.func @transform_2(%arg0: i32) -> (i32, i32) {
    %c0_i32 = arith.constant 0 : i32
    %c0_i32_0 = arith.constant 0 : i32
    %c0_i32_1 = arith.constant 0 : i32
    return %c0_i32, %c0_i32_0 : i32, i32
  }
  func.func @transform_3(%arg0: i32) -> (i32, i32) {
    %c0_i32 = arith.constant 0 : i32
    %c0_i32_0 = arith.constant 0 : i32
    %c0_i32_1 = arith.constant 0 : i32
    return %c0_i32, %c0_i32_0 : i32, i32
  }
  func.func @transform_4(%arg0: i32) -> (i32, i32) {
    %c0_i32 = arith.constant 0 : i32
    %c0_i32_0 = arith.constant 0 : i32
    %c0_i32_1 = arith.constant 0 : i32
    return %c0_i32, %c0_i32_0 : i32, i32
  }
  func.func @transform_5(%arg0: i32) -> (i32, i32) {
    %c0_i32 = arith.constant 0 : i32
    %c0_i32_0 = arith.constant 0 : i32
    %c0_i32_1 = arith.constant 0 : i32
    return %c0_i32, %c0_i32_0 : i32, i32
  }
  func.func @transform_6(%arg0: i32) -> (i32, i32) {
    %c0_i32 = arith.constant 0 : i32
    %c0_i32_0 = arith.constant 0 : i32
    %c0_i32_1 = arith.constant 0 : i32
    return %c0_i32, %c0_i32_0 : i32, i32
  }
  func.func @transform_7(%arg0: i32) -> (i32, i32) {
    %c0_i32 = arith.constant 0 : i32
    %c0_i32_0 = arith.constant 0 : i32
    return %arg0, %c0_i32 : i32, i32
  }
  func.func @transform_8(%arg0: i32) -> (i32, i32) {
    %c0_i32 = arith.constant 0 : i32
    %c0_i32_0 = arith.constant 0 : i32
    return %arg0, %c0_i32 : i32, i32
  }
}

module attributes {stable_mosaic.version = 11 : i64} {
  func.func @_lap_step_kernel(%arg0: i32, %arg1: i32, %arg2: memref<256x512xbf16, #tpu.memory_space<vmem>>, %arg3: memref<512x128xbf16, #tpu.memory_space<vmem>>, %arg4: memref<128x128xf32, #tpu.memory_space<vmem>>, %arg5: memref<256x128xf32, #tpu.memory_space<vmem>>, %arg6: memref<256x128xbf16, #tpu.memory_space<vmem>>, %arg7: memref<256x128xf32, #tpu.memory_space<vmem>>, %arg8: memref<256x128xf32, #tpu.memory_space<vmem>>) attributes {dimension_semantics = [#tpu.dimension_semantics<parallel>, #tpu.dimension_semantics<arbitrary>], iteration_bounds = array<i64: 2, 1>, scalar_prefetch = 0 : i64, scratch_operands = 1 : i64, tpu.core_type = #tpu.core_type<tc>, window_params = [{transform_indices = @transform_0, window_bounds = array<i64: 256, 512>}, {pipeline_mode = #tpu.pipeline_mode<synchronous>, transform_indices = @transform_1, window_bounds = array<i64: 512, 128>}, {pipeline_mode = #tpu.pipeline_mode<synchronous>, transform_indices = @transform_2, window_bounds = array<i64: 128, 128>}, {transform_indices = @transform_3, window_bounds = array<i64: 256, 128>}, {transform_indices = @transform_4, window_bounds = array<i64: 256, 128>}, {transform_indices = @transform_5, window_bounds = array<i64: 256, 128>}]} {
    %c0_i32 = arith.constant 0 : i32
    %0 = arith.cmpi eq, %arg1, %c0_i32 : i32
    %1 = arith.extui %0 : i1 to i32
    %c0_i32_0 = arith.constant 0 : i32
    %2 = arith.cmpi ne, %1, %c0_i32_0 : i32
    scf.if %2 {
      %cst_9 = arith.constant 0.000000e+00 : f32
      %15 = vector.broadcast %cst_9 : f32 to vector<256x128xf32>
      %c0_10 = arith.constant 0 : index
      %c0_11 = arith.constant 0 : index
      %16 = vector.load %arg8[%c0_10, %c0_11] : memref<256x128xf32, #tpu.memory_space<vmem>>, vector<256x128xf32>
      tpu.vector_store %arg8[%c0_10, %c0_11], %15 {strides = array<i32>} : memref<256x128xf32, #tpu.memory_space<vmem>>, vector<256x128xf32>,
    } else {
    }
    %c512_i32 = arith.constant 512 : i32
    %3 = arith.muli %arg1, %c512_i32 : i32
    %4 = tpu.assume_multiple %3, 512 : i32
    %5 = arith.index_cast %4 : i32 to index
    %c0 = arith.constant 0 : index
    %6 = vector.load %arg3[%5, %c0] : memref<512x128xbf16, #tpu.memory_space<vmem>>, vector<512x128xbf16>
    %c0_1 = arith.constant 0 : index
    %c0_2 = arith.constant 0 : index
    %7 = vector.load %arg8[%c0_1, %c0_2] : memref<256x128xf32, #tpu.memory_space<vmem>>, vector<256x128xf32>
    %c0_3 = arith.constant 0 : index
    %c0_4 = arith.constant 0 : index
    %8 = vector.load %arg2[%c0_3, %c0_4] : memref<256x512xbf16, #tpu.memory_space<vmem>>, vector<256x512xbf16>
    %cst = arith.constant dense<0.000000e+00> : vector<256x128xf32>
    %9 = tpu.matmul %8, %6, %cst {dimension_numbers = #tpu.dot_dimension_numbers<[1], [0], [0], [1], [0, 0, 1, 1], [], []>} : vector<256x512xbf16>, vector<512x128xbf16>, vector<256x128xf32> -> vector<256x128xf32>
    %10 = arith.addf %7, %9 : vector<256x128xf32>
    %c0_5 = arith.constant 0 : index
    %c0_6 = arith.constant 0 : index
    %11 = vector.load %arg8[%c0_5, %c0_6] : memref<256x128xf32, #tpu.memory_space<vmem>>, vector<256x128xf32>
    tpu.vector_store %arg8[%c0_5, %c0_6], %10 {strides = array<i32>} : memref<256x128xf32, #tpu.memory_space<vmem>>, vector<256x128xf32>,
    %c0_i32_7 = arith.constant 0 : i32
    %12 = arith.cmpi eq, %arg1, %c0_i32_7 : i32
    %13 = arith.extui %12 : i1 to i32
    %c0_i32_8 = arith.constant 0 : i32
    %14 = arith.cmpi ne, %13, %c0_i32_8 : i32
    scf.if %14 {
      %c0_9 = arith.constant 0 : index
      %c0_10 = arith.constant 0 : index
      %15 = vector.load %arg8[%c0_9, %c0_10] : memref<256x128xf32, #tpu.memory_space<vmem>>, vector<256x128xf32>
      %16 = arith.truncf %15 : vector<256x128xf32> to vector<256x128xbf16>
      %c0_11 = arith.constant 0 : index
      %c0_12 = arith.constant 0 : index
      %17 = vector.load %arg6[%c0_11, %c0_12] : memref<256x128xbf16, #tpu.memory_space<vmem>>, vector<256x128xbf16>
      tpu.vector_store %arg6[%c0_11, %c0_12], %16 {strides = array<i32>} : memref<256x128xbf16, #tpu.memory_space<vmem>>, vector<256x128xbf16>,
      %c0_13 = arith.constant 0 : index
      %c0_14 = arith.constant 0 : index
      %18 = vector.load %arg5[%c0_13, %c0_14] : memref<256x128xf32, #tpu.memory_space<vmem>>, vector<256x128xf32>
      %c0_15 = arith.constant 0 : index
      %c0_16 = arith.constant 0 : index
      %19 = vector.load %arg4[%c0_15, %c0_16] : memref<128x128xf32, #tpu.memory_space<vmem>>, vector<128x128xf32>
      %cst_17 = arith.constant dense<0.000000e+00> : vector<256x128xf32>
      %20 = tpu.matmul %16, %19, %cst_17 {dimension_numbers = #tpu.dot_dimension_numbers<[1], [0], [0], [1], [0, 0, 1, 1], [], []>} : vector<256x128xbf16>, vector<128x128xf32>, vector<256x128xf32> -> vector<256x128xf32>
      %21 = arith.addf %18, %20 : vector<256x128xf32>
      %c0_18 = arith.constant 0 : index
      %c0_19 = arith.constant 0 : index
      %22 = vector.load %arg7[%c0_18, %c0_19] : memref<256x128xf32, #tpu.memory_space<vmem>>, vector<256x128xf32>
      tpu.vector_store %arg7[%c0_18, %c0_19], %21 {strides = array<i32>} : memref<256x128xf32, #tpu.memory_space<vmem>>, vector<256x128xf32>,
    } else {
    }
    return
  }
  func.func @transform_0(%arg0: i32, %arg1: i32) -> (i32, i32) {
    %c0_i32 = arith.constant 0 : i32
    return %arg0, %arg1 : i32, i32
  }
  func.func @transform_1(%arg0: i32, %arg1: i32) -> (i32, i32) {
    %c0_i32 = arith.constant 0 : i32
    %c0_i32_0 = arith.constant 0 : i32
    %c0_i32_1 = arith.constant 0 : i32
    return %c0_i32, %c0_i32_0 : i32, i32
  }
  func.func @transform_2(%arg0: i32, %arg1: i32) -> (i32, i32) {
    %c0_i32 = arith.constant 0 : i32
    %c0_i32_0 = arith.constant 0 : i32
    %c0_i32_1 = arith.constant 0 : i32
    return %c0_i32, %c0_i32_0 : i32, i32
  }
  func.func @transform_3(%arg0: i32, %arg1: i32) -> (i32, i32) {
    %c0_i32 = arith.constant 0 : i32
    %c0_i32_0 = arith.constant 0 : i32
    return %arg0, %c0_i32 : i32, i32
  }
  func.func @transform_4(%arg0: i32, %arg1: i32) -> (i32, i32) {
    %c0_i32 = arith.constant 0 : i32
    %c0_i32_0 = arith.constant 0 : i32
    return %arg0, %c0_i32 : i32, i32
  }
  func.func @transform_5(%arg0: i32, %arg1: i32) -> (i32, i32) {
    %c0_i32 = arith.constant 0 : i32
    %c0_i32_0 = arith.constant 0 : i32
    return %arg0, %c0_i32 : i32, i32
  }
}

module attributes {stable_mosaic.version = 11 : i64} {
  func.func @_lap_step_kernel(%arg0: i32, %arg1: i32, %arg2: memref<256x512xbf16, #tpu.memory_space<vmem>>, %arg3: memref<512x128xbf16, #tpu.memory_space<vmem>>, %arg4: memref<128x128xf32, #tpu.memory_space<vmem>>, %arg5: memref<256x128xf32, #tpu.memory_space<vmem>>, %arg6: memref<256x128xbf16, #tpu.memory_space<vmem>>, %arg7: memref<256x128xf32, #tpu.memory_space<vmem>>, %arg8: memref<256x128xf32, #tpu.memory_space<vmem>>) attributes {dimension_semantics = [#tpu.dimension_semantics<parallel>, #tpu.dimension_semantics<arbitrary>], iteration_bounds = array<i64: 2, 1>, scalar_prefetch = 0 : i64, scratch_operands = 1 : i64, tpu.core_type = #tpu.core_type<tc>, window_params = [{transform_indices = @transform_0, window_bounds = array<i64: 256, 512>}, {pipeline_mode = #tpu.pipeline_mode<synchronous>, transform_indices = @transform_1, window_bounds = array<i64: 512, 128>}, {pipeline_mode = #tpu.pipeline_mode<synchronous>, transform_indices = @transform_2, window_bounds = array<i64: 128, 128>}, {transform_indices = @transform_3, window_bounds = array<i64: 256, 128>}, {transform_indices = @transform_4, window_bounds = array<i64: 256, 128>}, {transform_indices = @transform_5, window_bounds = array<i64: 256, 128>}]} {
    %c0_i32 = arith.constant 0 : i32
    %0 = arith.cmpi eq, %arg1, %c0_i32 : i32
    %1 = arith.extui %0 : i1 to i32
    %c0_i32_0 = arith.constant 0 : i32
    %2 = arith.cmpi ne, %1, %c0_i32_0 : i32
    scf.if %2 {
      %cst_9 = arith.constant 0.000000e+00 : f32
      %15 = vector.broadcast %cst_9 : f32 to vector<256x128xf32>
      %c0_10 = arith.constant 0 : index
      %c0_11 = arith.constant 0 : index
      %16 = vector.load %arg8[%c0_10, %c0_11] : memref<256x128xf32, #tpu.memory_space<vmem>>, vector<256x128xf32>
      tpu.vector_store %arg8[%c0_10, %c0_11], %15 {strides = array<i32>} : memref<256x128xf32, #tpu.memory_space<vmem>>, vector<256x128xf32>,
    } else {
    }
    %c512_i32 = arith.constant 512 : i32
    %3 = arith.muli %arg1, %c512_i32 : i32
    %4 = tpu.assume_multiple %3, 512 : i32
    %5 = arith.index_cast %4 : i32 to index
    %c0 = arith.constant 0 : index
    %6 = vector.load %arg3[%5, %c0] : memref<512x128xbf16, #tpu.memory_space<vmem>>, vector<512x128xbf16>
    %c0_1 = arith.constant 0 : index
    %c0_2 = arith.constant 0 : index
    %7 = vector.load %arg8[%c0_1, %c0_2] : memref<256x128xf32, #tpu.memory_space<vmem>>, vector<256x128xf32>
    %c0_3 = arith.constant 0 : index
    %c0_4 = arith.constant 0 : index
    %8 = vector.load %arg2[%c0_3, %c0_4] : memref<256x512xbf16, #tpu.memory_space<vmem>>, vector<256x512xbf16>
    %cst = arith.constant dense<0.000000e+00> : vector<256x128xf32>
    %9 = tpu.matmul %8, %6, %cst {dimension_numbers = #tpu.dot_dimension_numbers<[1], [0], [0], [1], [0, 0, 1, 1], [], []>} : vector<256x512xbf16>, vector<512x128xbf16>, vector<256x128xf32> -> vector<256x128xf32>
    %10 = arith.addf %7, %9 : vector<256x128xf32>
    %c0_5 = arith.constant 0 : index
    %c0_6 = arith.constant 0 : index
    %11 = vector.load %arg8[%c0_5, %c0_6] : memref<256x128xf32, #tpu.memory_space<vmem>>, vector<256x128xf32>
    tpu.vector_store %arg8[%c0_5, %c0_6], %10 {strides = array<i32>} : memref<256x128xf32, #tpu.memory_space<vmem>>, vector<256x128xf32>,
    %c0_i32_7 = arith.constant 0 : i32
    %12 = arith.cmpi eq, %arg1, %c0_i32_7 : i32
    %13 = arith.extui %12 : i1 to i32
    %c0_i32_8 = arith.constant 0 : i32
    %14 = arith.cmpi ne, %13, %c0_i32_8 : i32
    scf.if %14 {
      %c0_9 = arith.constant 0 : index
      %c0_10 = arith.constant 0 : index
      %15 = vector.load %arg8[%c0_9, %c0_10] : memref<256x128xf32, #tpu.memory_space<vmem>>, vector<256x128xf32>
      %16 = arith.truncf %15 : vector<256x128xf32> to vector<256x128xbf16>
      %c0_11 = arith.constant 0 : index
      %c0_12 = arith.constant 0 : index
      %17 = vector.load %arg6[%c0_11, %c0_12] : memref<256x128xbf16, #tpu.memory_space<vmem>>, vector<256x128xbf16>
      tpu.vector_store %arg6[%c0_11, %c0_12], %16 {strides = array<i32>} : memref<256x128xbf16, #tpu.memory_space<vmem>>, vector<256x128xbf16>,
      %c0_13 = arith.constant 0 : index
      %c0_14 = arith.constant 0 : index
      %18 = vector.load %arg5[%c0_13, %c0_14] : memref<256x128xf32, #tpu.memory_space<vmem>>, vector<256x128xf32>
      %c0_15 = arith.constant 0 : index
      %c0_16 = arith.constant 0 : index
      %19 = vector.load %arg4[%c0_15, %c0_16] : memref<128x128xf32, #tpu.memory_space<vmem>>, vector<128x128xf32>
      %cst_17 = arith.constant dense<0.000000e+00> : vector<256x128xf32>
      %20 = tpu.matmul %16, %19, %cst_17 {dimension_numbers = #tpu.dot_dimension_numbers<[1], [0], [0], [1], [0, 0, 1, 1], [], []>} : vector<256x128xbf16>, vector<128x128xf32>, vector<256x128xf32> -> vector<256x128xf32>
      %21 = arith.addf %18, %20 : vector<256x128xf32>
      %c0_18 = arith.constant 0 : index
      %c0_19 = arith.constant 0 : index
      %22 = vector.load %arg7[%c0_18, %c0_19] : memref<256x128xf32, #tpu.memory_space<vmem>>, vector<256x128xf32>
      tpu.vector_store %arg7[%c0_18, %c0_19], %21 {strides = array<i32>} : memref<256x128xf32, #tpu.memory_space<vmem>>, vector<256x128xf32>,
    } else {
    }
    return
  }
  func.func @transform_0(%arg0: i32, %arg1: i32) -> (i32, i32) {
    %c0_i32 = arith.constant 0 : i32
    return %arg0, %arg1 : i32, i32
  }
  func.func @transform_1(%arg0: i32, %arg1: i32) -> (i32, i32) {
    %c0_i32 = arith.constant 0 : i32
    %c0_i32_0 = arith.constant 0 : i32
    %c0_i32_1 = arith.constant 0 : i32
    return %c0_i32, %c0_i32_0 : i32, i32
  }
  func.func @transform_2(%arg0: i32, %arg1: i32) -> (i32, i32) {
    %c0_i32 = arith.constant 0 : i32
    %c0_i32_0 = arith.constant 0 : i32
    %c0_i32_1 = arith.constant 0 : i32
    return %c0_i32, %c0_i32_0 : i32, i32
  }
  func.func @transform_3(%arg0: i32, %arg1: i32) -> (i32, i32) {
    %c0_i32 = arith.constant 0 : i32
    %c0_i32_0 = arith.constant 0 : i32
    return %arg0, %c0_i32 : i32, i32
  }
  func.func @transform_4(%arg0: i32, %arg1: i32) -> (i32, i32) {
    %c0_i32 = arith.constant 0 : i32
    %c0_i32_0 = arith.constant 0 : i32
    return %arg0, %c0_i32 : i32, i32
  }
  func.func @transform_5(%arg0: i32, %arg1: i32) -> (i32, i32) {
    %c0_i32 = arith.constant 0 : i32
    %c0_i32_0 = arith.constant 0 : i32
    return %arg0, %c0_i32 : i32, i32
  }
}

module attributes {stable_mosaic.version = 11 : i64} {
  func.func @_head_kernel(%arg0: i32, %arg1: memref<256x128xf32, #tpu.memory_space<vmem>>, %arg2: memref<128x128xf32, #tpu.memory_space<vmem>>, %arg3: memref<1x128xf32, #tpu.memory_space<vmem>>, %arg4: memref<256x128xf32, #tpu.memory_space<vmem>>, %arg5: memref<256x128xf32, #tpu.memory_space<vmem>>) attributes {dimension_semantics = [#tpu.dimension_semantics<parallel>], iteration_bounds = array<i64: 2>, scalar_prefetch = 0 : i64, scratch_operands = 0 : i64, tpu.core_type = #tpu.core_type<tc>, window_params = [{transform_indices = @transform_0, window_bounds = array<i64: 256, 128>}, {pipeline_mode = #tpu.pipeline_mode<synchronous>, transform_indices = @transform_1, window_bounds = array<i64: 128, 128>}, {pipeline_mode = #tpu.pipeline_mode<synchronous>, transform_indices = @transform_2, window_bounds = array<i64: 1, 128>}, {transform_indices = @transform_3, window_bounds = array<i64: 256, 128>}, {transform_indices = @transform_4, window_bounds = array<i64: 256, 128>}]} {
    %c0 = arith.constant 0 : index
    %c0_0 = arith.constant 0 : index
    %0 = vector.load %arg1[%c0, %c0_0] : memref<256x128xf32, #tpu.memory_space<vmem>>, vector<256x128xf32>
    %cst = arith.constant 0.000000e+00 : f32
    %1 = vector.broadcast %cst : f32 to vector<256x128xf32>
    %2 = arith.maximumf %0, %1 : vector<256x128xf32>
    %c0_1 = arith.constant 0 : index
    %c0_2 = arith.constant 0 : index
    %3 = vector.load %arg5[%c0_1, %c0_2] : memref<256x128xf32, #tpu.memory_space<vmem>>, vector<256x128xf32>
    tpu.vector_store %arg5[%c0_1, %c0_2], %2 {strides = array<i32>} : memref<256x128xf32, #tpu.memory_space<vmem>>, vector<256x128xf32>,
    %c0_3 = arith.constant 0 : index
    %c0_4 = arith.constant 0 : index
    %4 = vector.load %arg2[%c0_3, %c0_4] : memref<128x128xf32, #tpu.memory_space<vmem>>, vector<128x128xf32>
    %cst_5 = arith.constant dense<0.000000e+00> : vector<256x128xf32>
    %5 = tpu.matmul %2, %4, %cst_5 {dimension_numbers = #tpu.dot_dimension_numbers<[1], [0], [0], [1], [0, 0, 1, 1], [], []>} : vector<256x128xf32>, vector<128x128xf32>, vector<256x128xf32> -> vector<256x128xf32>
    %c0_6 = arith.constant 0 : index
    %c0_7 = arith.constant 0 : index
    %6 = vector.load %arg3[%c0_6, %c0_7] : memref<1x128xf32, #tpu.memory_space<vmem>>, vector<1x128xf32>
    %7 = vector.broadcast %6 : vector<1x128xf32> to vector<256x128xf32>
    %8 = arith.addf %5, %7 : vector<256x128xf32>
    %c0_8 = arith.constant 0 : index
    %c0_9 = arith.constant 0 : index
    %9 = vector.load %arg4[%c0_8, %c0_9] : memref<256x128xf32, #tpu.memory_space<vmem>>, vector<256x128xf32>
    tpu.vector_store %arg4[%c0_8, %c0_9], %8 {strides = array<i32>} : memref<256x128xf32, #tpu.memory_space<vmem>>, vector<256x128xf32>,
    return
  }
  func.func @transform_0(%arg0: i32) -> (i32, i32) {
    %c0_i32 = arith.constant 0 : i32
    %c0_i32_0 = arith.constant 0 : i32
    return %arg0, %c0_i32 : i32, i32
  }
  func.func @transform_1(%arg0: i32) -> (i32, i32) {
    %c0_i32 = arith.constant 0 : i32
    %c0_i32_0 = arith.constant 0 : i32
    %c0_i32_1 = arith.constant 0 : i32
    return %c0_i32, %c0_i32_0 : i32, i32
  }
  func.func @transform_2(%arg0: i32) -> (i32, i32) {
    %c0_i32 = arith.constant 0 : i32
    %c0_i32_0 = arith.constant 0 : i32
    %c0_i32_1 = arith.constant 0 : i32
    return %c0_i32, %c0_i32_0 : i32, i32
  }
  func.func @transform_3(%arg0: i32) -> (i32, i32) {
    %c0_i32 = arith.constant 0 : i32
    %c0_i32_0 = arith.constant 0 : i32
    return %arg0, %c0_i32 : i32, i32
  }
  func.func @transform_4(%arg0: i32) -> (i32, i32) {
    %c0_i32 = arith.constant 0 : i32
    %c0_i32_0 = arith.constant 0 : i32
    return %arg0, %c0_i32 : i32, i32
  }
}

</mosaic_0001>

<bundles_post_ra>
// kernel: bwgnn_em_forward.4
= control target key start
LH: loop header
LB: loop body
LE: loop exit
PB: predicated region body
PF: predicated region fallthrough
CT: control target
= control target key end

     0   :  { %s2114_s27 = smov 0   ;;  %s2504_s0 = inlined_call_operand.vmem [shape: f32[512,128], index: 0, kind: input, shape index: {}]   ;;  %s2505_s1 = inlined_call_operand.vmem [shape: f32[128,128], index: 1, kind: input, shape index: {}]   ;;  %s2506_s2 = inlined_call_operand.vmem [shape: f32[1,128], index: 2, kind: input, shape index: {}]   ;;  %s2507_s3 = inlined_call_operand.vmem [shape: f32[128,128], index: 3, kind: input, shape index: {}]   ;;  %s2508_s4 = inlined_call_operand.vmem [shape: f32[1,128], index: 4, kind: input, shape index: {}]   ;;  %s2509_s5 = inlined_call_operand.vmem [shape: f32[128,128], index: 5, kind: input, shape index: {}]   ;;  %s2510_s6 = inlined_call_operand.vmem [shape: f32[1,128], index: 6, kind: input, shape index: {}]   ;;  %s2511_s7 = inlined_call_operand.vmem [shape: bf16[512,128], index: 7, kind: output, shape index: {0}]   ;;  %s2512_s8 = inlined_call_operand.vmem [shape: f32[512,128], index: 8, kind: output, shape index: {1}]  }
   0x1 LB: > { %s1414_s28 = sadd.s32 4294967295, %s2067_s27   ;;  %p1418_p0 = scmp.ge.s32.totalorder %s2067_s27, 1  ;;  %s2067_s27 = sphi %s2114_s27, %s19_s27  }
   0x2   : > { %p266_p1 = scmp.lt.s32.totalorder %s2067_s27, 3 }
   0x4   : > { %p267_p2 = pnand %p1418_p0, %p266_p1 }
   0x5   : > { %v356_v0 = vld [vmem:[%s2505_s1] sm:$0xff] (!%p267_p2)  ;;  %v357_v1 = vld [vmem:[%s2505_s1 + $0x8] sm:$0xff] (!%p267_p2)  ;;  %v358_v2 = vld [vmem:[%s2505_s1 + $0x10] sm:$0xff] (!%p267_p2)  ;;  %s1419_s13 = sshll.u32 (!%p267_p2), %s1414_s28, 5 }
   0x6   : > { %270 = sbr.rel (%p267_p2) target bundleno = 755 (0x2f3), region = 48  ;;  %v1941_v3 = vpack.c.bf16 (!%p267_p2), %v357_v1, %v356_v0  ;;  %v359_v4 = vld [vmem:[%s2505_s1 + $0x18] sm:$0xff] (!%p267_p2)  ;;  %p306_p3 = scmp.lt.s32.totalorder (!%p267_p2), %s1419_s13, 63  ;;  %v360_v6 = vld [vmem:[%s2505_s1 + $0x20] sm:$0xff] (!%p267_p2)  ;;  %v361_v7 = vld [vmem:[%s2505_s1 + $0x28] sm:$0xff] (!%p267_p2) }
   0x7   : > { %v1945_v5 = vpack.c.bf16 (!%p267_p2), %v359_v4, %v358_v2  ;;  %v1949_v8 = vpack.c.bf16 (!%p267_p2), %v361_v7, %v360_v6  ;;  %v362_v9 = vld [vmem:[%s2505_s1 + $0x30] sm:$0xff] (!%p267_p2)  ;;  %v363_v10 = vld [vmem:[%s2505_s1 + $0x38] sm:$0xff] (!%p267_p2)  ;;  %v364_v13 = vld [vmem:[%s2505_s1 + $0x40] sm:$0xff] (!%p267_p2) }
   0x8   : > { %1942 = vmatprep.subr.bf16.mxu0 (!%p267_p2), %v1941_v3  ;;  %2037 = vmatprep.subr.bf16.mxu1 (!%p267_p2), %v1941_v3  ;;  %v1953_v12 = vpack.c.bf16 (!%p267_p2), %v363_v10, %v362_v9  ;;  %v365_v14 = vld [vmem:[%s2505_s1 + $0x48] sm:$0xff] (!%p267_p2)  ;;  %v366_v17 = vld [vmem:[%s2505_s1 + $0x50] sm:$0xff] (!%p267_p2)  ;;  %v367_v18 = vld [vmem:[%s2505_s1 + $0x58] sm:$0xff] (!%p267_p2) }
   0x9   : > { %1944 = vmatpush3.bf16.msra.mxu0 (!%p267_p2), %v1941_v3  ;;  %2045 = vmatpush3.bf16.msra.mxu1 (!%p267_p2), %v1941_v3  ;;  %v1957_v16 = vpack.c.bf16 (!%p267_p2), %v365_v14, %v364_v13  ;;  %v1961_v19 = vpack.c.bf16 (!%p267_p2), %v367_v18, %v366_v17  ;;  %v368_v20 = vld [vmem:[%s2505_s1 + $0x60] sm:$0xff] (!%p267_p2)  ;;  %v369_v21 = vld [vmem:[%s2505_s1 + $0x68] sm:$0xff] (!%p267_p2)  ;;  %v370_v23 = vld [vmem:[%s2505_s1 + $0x70] sm:$0xff] (!%p267_p2) }
   0xa   : > { %1946 = vmatprep.subr.bf16.mxu0 (!%p267_p2), %v1945_v5  ;;  %2038 = vmatprep.subr.bf16.mxu1 (!%p267_p2), %v1945_v5  ;;  %v1965_v22 = vpack.c.bf16 (!%p267_p2), %v369_v21, %v368_v20  ;;  %v371_v24 = vld [vmem:[%s2505_s1 + $0x78] sm:$0xff] (!%p267_p2)  ;;  %v636_v26 = vld [vmem:[%s2507_s3] sm:$0xff] (!%p267_p2)  ;;  %v637_v27 = vld [vmem:[%s2507_s3 + $0x8] sm:$0xff] (!%p267_p2) }
   0xb   : > { %v1969_v25 = vpack.c.bf16 (!%p267_p2), %v371_v24, %v370_v23  ;;  %v1973_v28 = vpack.c.bf16 (!%p267_p2), %v637_v27, %v636_v26  ;;  %v638_v29 = vld [vmem:[%s2507_s3 + $0x10] sm:$0xff] (!%p267_p2)  ;;  %v639_v30 = vld [vmem:[%s2507_s3 + $0x18] sm:$0xff] (!%p267_p2)  ;;  %v640_v36 = vld [vmem:[%s2507_s3 + $0x20] sm:$0xff] (!%p267_p2) }
   0xc   : > { %v1977_v35 = vpack.c.bf16 (!%p267_p2), %v639_v30, %v638_v29  ;;  %v641_v37 = vld [vmem:[%s2507_s3 + $0x28] sm:$0xff] (!%p267_p2)  ;;  %v642_v43 = vld [vmem:[%s2507_s3 + $0x30] sm:$0xff] (!%p267_p2)  ;;  %v643_v44 = vld [vmem:[%s2507_s3 + $0x38] sm:$0xff] (!%p267_p2) }
   0xd   : > { %s2514_s13 = smov (!%p306_p3, %s1419_s13), 63  ;;  %1948 = vmatpush3.bf16.msra.mxu0 %v1945_v5  ;;  %2046 = vmatpush3.bf16.msra.mxu1 %v1945_v5  ;;  %v1981_v42 = vpack.c.bf16 %v641_v37, %v640_v36  ;;  %v1985_v49 = vpack.c.bf16 %v643_v44, %v642_v43  ;;  %v644_v50 = vld [vmem:[%s2507_s3 + $0x40] sm:$0xff]  ;;  %v645_v51 = vld [vmem:[%s2507_s3 + $0x48] sm:$0xff]  ;;  %v646_v57 = vld [vmem:[%s2507_s3 + $0x50] sm:$0xff] }
   0xe   : > { %s1420_s20 = sshll.u32 %s2514_s13, 3  ;;  %1950 = vmatprep.subr.bf16.mxu0 %v1949_v8  ;;  %2039 = vmatprep.subr.bf16.mxu1 %v1949_v8  ;;  %v1989_v56 = vpack.c.bf16 %v645_v51, %v644_v50  ;;  %v647_v58 = vld [vmem:[%s2507_s3 + $0x58] sm:$0xff]  ;;  %v648_v0 = vld [vmem:[%s2507_s3 + $0x60] sm:$0xff]  ;;  %v649_v1 = vld [vmem:[%s2507_s3 + $0x68] sm:$0xff]  ;;  %s1422_s18 = sshll.u32 %s2514_s13, 2 }
   0xf   : > { %s2154_s28 = scalar_lea.vmem %s2504_s0, %s1420_s20  ;;  %v1993_v63 = vpack.c.bf16 %v647_v58, %v646_v57  ;;  %v1997_v6 = vpack.c.bf16 %v649_v1, %v648_v0  ;;  %v650_v13 = vld [vmem:[%s2507_s3 + $0x70] sm:$0xff]  ;;  %v651_v14 = vld [vmem:[%s2507_s3 + $0x78] sm:$0xff]  ;;  %v1077_v17 = vld [vmem:[%s2509_s5 + $0x8] sm:$0xff]  ;;  %s2377_s22 = scalar_lea.vmem %s2511_s7, %s1422_s18 }
  0x10   : > { %v324_v11 = vld [vmem:[%s2154_s28] sm:$0xff]  ;;  %v325_v31 = vld [vmem:[%s2154_s28 + $0x8] sm:$0xff]  ;;  %v326_v32 = vld [vmem:[%s2154_s28 + $0x10] sm:$0xff]  ;;  %s2435_s26 = scalar_lea.vmem %s2512_s8, %s1420_s20 }
  0x11   : > { %1749 = vmatprep.mubr.f32.mxu0 %v324_v11  ;;  %1952 = vmatpush3.bf16.msra.mxu0 %v1949_v8  ;;  %v340_v15 = vld [vmem:[%s2154_s28 + $0x80] sm:$0xff]  ;;  %v341_v33 = vld [vmem:[%s2154_s28 + $0x88] sm:$0xff]  ;;  %v342_v34 = vld [vmem:[%s2154_s28 + $0x90] sm:$0xff] }
  0x12   : > { %1954 = vmatprep.subr.bf16.mxu0 %v1953_v12  ;;  %2047 = vmatpush3.bf16.msra.mxu1 %v1949_v8  ;;  %v327_v38 = vld [vmem:[%s2154_s28 + $0x18] sm:$0xff]  ;;  %v328_v39 = vld [vmem:[%s2154_s28 + $0x20] sm:$0xff]  ;;  %v329_v45 = vld [vmem:[%s2154_s28 + $0x28] sm:$0xff] }
  0x13   : > { %2040 = vmatprep.subr.bf16.mxu1 %v1953_v12  ;;  %1773 = vmatprep.mubr.f32.mxu1 %v340_v15  ;;  %v343_v40 = vld [vmem:[%s2154_s28 + $0x98] sm:$0xff]  ;;  %v344_v41 = vld [vmem:[%s2154_s28 + $0xa0] sm:$0xff]  ;;  %v330_v46 = vld [vmem:[%s2154_s28 + $0x30] sm:$0xff]  ;;  %v2001_v15 = vpack.c.bf16 %v651_v14, %v650_v13 }
  0x14   : > { %v345_v47 = vld [vmem:[%s2154_s28 + $0xa8] sm:$0xff]  ;;  %v346_v48 = vld [vmem:[%s2154_s28 + $0xb0] sm:$0xff]  ;;  %v331_v52 = vld [vmem:[%s2154_s28 + $0x38] sm:$0xff] }
  0x15   : > { %1956 = vmatpush3.bf16.msra.mxu0 %v1953_v12  ;;  %v332_v53 = vld [vmem:[%s2154_s28 + $0x40] sm:$0xff]  ;;  %v347_v54 = vld [vmem:[%s2154_s28 + $0xb8] sm:$0xff]  ;;  %v333_v59 = vld [vmem:[%s2154_s28 + $0x48] sm:$0xff] }
  0x16   : > { %1958 = vmatprep.subr.bf16.mxu0 %v1957_v16  ;;  %2048 = vmatpush3.bf16.msra.mxu1 %v1953_v12  ;;  %v348_v55 = vld [vmem:[%s2154_s28 + $0xc0] sm:$0xff]  ;;  %v334_v60 = vld [vmem:[%s2154_s28 + $0x50] sm:$0xff]  ;;  %v349_v61 = vld [vmem:[%s2154_s28 + $0xc8] sm:$0xff] }
  0x17   : > { %2041 = vmatprep.subr.bf16.mxu1 %v1957_v16  ;;  %v350_v62 = vld [vmem:[%s2154_s28 + $0xd0] sm:$0xff]  ;;  %v335_v2 = vld [vmem:[%s2154_s28 + $0x58] sm:$0xff]  ;;  %v336_v3 = vld [vmem:[%s2154_s28 + $0x60] sm:$0xff] }
  0x18   : > { %v351_v4 = vld [vmem:[%s2154_s28 + $0xd8] sm:$0xff]  ;;  %v352_v5 = vld [vmem:[%s2154_s28 + $0xe0] sm:$0xff]  ;;  %v337_v7 = vld [vmem:[%s2154_s28 + $0x68] sm:$0xff] }
  0x19   : > { %1960 = vmatpush3.bf16.msra.mxu0 %v1957_v16  ;;  %v338_v8 = vld [vmem:[%s2154_s28 + $0x70] sm:$0xff]  ;;  %v353_v9 = vld [vmem:[%s2154_s28 + $0xe8] sm:$0xff]  ;;  %v339_v11 = vld [vmem:[%s2154_s28 + $0x78] sm:$0xff] }
  0x1a   : > { %1962 = vmatprep.subr.bf16.mxu0 %v1961_v19  ;;  %2049 = vmatpush3.bf16.msra.mxu1 %v1957_v16  ;;  %v354_v10 = vld [vmem:[%s2154_s28 + $0xf0] sm:$0xff]  ;;  %v355_v12 = vld [vmem:[%s2154_s28 + $0xf8] sm:$0xff]  ;;  %v1076_v16 = vld [vmem:[%s2509_s5] sm:$0xff] }
  0x1b   : > { %2042 = vmatprep.subr.bf16.mxu1 %v1961_v19  ;;  %v1078_v18 = vld [vmem:[%s2509_s5 + $0x10] sm:$0xff]  ;;  %v1079_v20 = vld [vmem:[%s2509_s5 + $0x18] sm:$0xff]  ;;  %v1081_v23 = vld [vmem:[%s2509_s5 + $0x28] sm:$0xff] }
  0x1c   : > { %v2009_v21 = vpack.c.bf16 %v1079_v20, %v1078_v18  ;;  %v1083_v26 = vld [vmem:[%s2509_s5 + $0x38] sm:$0xff]  ;;  %v1085_v29 = vld [vmem:[%s2509_s5 + $0x48] sm:$0xff] }
  0x1d   : > { %1964 = vmatpush3.bf16.msra.mxu0 %v1961_v19 }
  0x1e   : > { %1966 = vmatprep.subr.bf16.mxu0 %v1965_v22  ;;  %2050 = vmatpush3.bf16.msra.mxu1 %v1961_v19  ;;  %v2005_v19 = vpack.c.bf16 %v1077_v17, %v1076_v16 }
  0x1f   : > { %2043 = vmatprep.subr.bf16.mxu1 %v1965_v22 }
  0x21   : > { %1968 = vmatpush3.bf16.msra.mxu0 %v1965_v22 }
  0x22   : > { %1970 = vmatprep.subr.bf16.mxu0 %v1969_v25  ;;  %2051 = vmatpush3.bf16.msra.mxu1 %v1965_v22  ;;  %v1080_v22 = vld [vmem:[%s2509_s5 + $0x20] sm:$0xff] }
  0x23   : > { %2044 = vmatprep.subr.bf16.mxu1 %v1969_v25  ;;  %v2013_v24 = vpack.c.bf16 %v1081_v23, %v1080_v22 }
  0x25   : > { %1972 = vmatpush3.bf16.msra.mxu0 %v1969_v25 }
  0x26   : > { %2052 = vmatpush3.bf16.msra.mxu1 %v1969_v25  ;;  %2006 = vmatprep.subr.bf16.mxu0 %v2005_v19  ;;  %v1082_v25 = vld [vmem:[%s2509_s5 + $0x30] sm:$0xff] }
  0x27   : > { %1974 = vmatprep.subr.bf16.mxu1 %v1973_v28  ;;  %v2017_v27 = vpack.c.bf16 %v1083_v26, %v1082_v25 }
  0x28   : > { %1750 = vmatmul.mubr.f32.vlgmr.msra.gmra.mrb[0].mxu0 %v325_v31  ;;  %v1086_v31 = vld [vmem:[%s2509_s5 + $0x50] sm:$0xff] }
  0x29   : > { %1752 = vmatprep.mubr.f32.mxu0 %v326_v32  ;;  %1774 = vmatmul.mubr.f32.vlgmr.msra.gmra.mrb[0].mxu1 %v341_v33  ;;  %v1087_v32 = vld [vmem:[%s2509_s5 + $0x58] sm:$0xff] }
  0x2a   : > { %1776 = vmatprep.mubr.f32.mxu1 %v342_v34  ;;  %1976 = vmatpush3.bf16.msra.mxu1 %v1973_v28  ;;  %v1084_v28 = vld [vmem:[%s2509_s5 + $0x40] sm:$0xff]  ;;  %v2025_v33 = vpack.c.bf16 %v1087_v32, %v1086_v31 }
  0x2b   : > { %1978 = vmatprep.subr.bf16.mxu1 %v1977_v35  ;;  %2008 = vmatpush3.bf16.msra.mxu0 %v2005_v19  ;;  %v2021_v30 = vpack.c.bf16 %v1085_v29, %v1084_v28  ;;  %v2299_v34 = vld [vmem:[%s2506_s2] ss:$0 sm:$0xff] }
  0x2c   : > { %1753 = vmatmul.mubr.f32.gmra.mrb[2].mxu0 %v327_v38  ;;  %2010 = vmatprep.subr.bf16.mxu0 %v2009_v21 }
  0x2d   : > { %1755 = vmatprep.mubr.f32.mxu0 %v328_v39  ;;  %1777 = vmatmul.mubr.f32.gmra.mrb[2].mxu1 %v343_v40 }
  0x2e   : > { %1779 = vmatprep.mubr.f32.mxu1 %v344_v41  ;;  %1980 = vmatpush3.bf16.msra.mxu1 %v1977_v35 }
  0x2f   : > { %1982 = vmatprep.subr.bf16.mxu1 %v1981_v42  ;;  %2012 = vmatpush3.bf16.msra.mxu0 %v2009_v21 }
  0x30   : > { %1756 = vmatmul.mubr.f32.gmra.mrb[4].mxu0 %v329_v45  ;;  %2014 = vmatprep.subr.bf16.mxu0 %v2013_v24 }
  0x31   : > { %1758 = vmatprep.mubr.f32.mxu0 %v330_v46  ;;  %1780 = vmatmul.mubr.f32.gmra.mrb[4].mxu1 %v345_v47 }
  0x32   : > { %1782 = vmatprep.mubr.f32.mxu1 %v346_v48  ;;  %1984 = vmatpush3.bf16.msra.mxu1 %v1981_v42 }
  0x33   : > { %1986 = vmatprep.subr.bf16.mxu1 %v1985_v49  ;;  %2016 = vmatpush3.bf16.msra.mxu0 %v2013_v24 }
  0x34   : > { %1759 = vmatmul.mubr.f32.gmra.mrb[6].mxu0 %v331_v52  ;;  %2018 = vmatprep.subr.bf16.mxu0 %v2017_v27 }
  0x35   : > { %1761 = vmatprep.mubr.f32.mxu0 %v332_v53  ;;  %1783 = vmatmul.mubr.f32.gmra.mrb[6].mxu1 %v347_v54 }
  0x36   : > { %1785 = vmatprep.mubr.f32.mxu1 %v348_v55  ;;  %1988 = vmatpush3.bf16.msra.mxu1 %v1985_v49 }
  0x37   : > { %1990 = vmatprep.subr.bf16.mxu1 %v1989_v56  ;;  %2020 = vmatpush3.bf16.msra.mxu0 %v2017_v27 }
  0x38   : > { %1762 = vmatmul.mubr.f32.gmra.mrb[8].mxu0 %v333_v59  ;;  %2022 = vmatprep.subr.bf16.mxu0 %v2021_v30 }
  0x39   : > { %1764 = vmatprep.mubr.f32.mxu0 %v334_v60  ;;  %1786 = vmatmul.mubr.f32.gmra.mrb[8].mxu1 %v349_v61 }
  0x3a   : > { %1788 = vmatprep.mubr.f32.mxu1 %v350_v62  ;;  %1992 = vmatpush3.bf16.msra.mxu1 %v1989_v56 }
  0x3b   : > { %1994 = vmatprep.subr.bf16.mxu1 %v1993_v63  ;;  %2024 = vmatpush3.bf16.msra.mxu0 %v2021_v30 }
  0x3c   : > { %1765 = vmatmul.mubr.f32.gmra.mrb[10].mxu0 %v335_v2  ;;  %2026 = vmatprep.subr.bf16.mxu0 %v2025_v33 }
  0x3d   : > { %1767 = vmatprep.mubr.f32.mxu0 %v336_v3  ;;  %1789 = vmatmul.mubr.f32.gmra.mrb[10].mxu1 %v351_v4 }
  0x3e   : > { %1791 = vmatprep.mubr.f32.mxu1 %v352_v5  ;;  %1996 = vmatpush3.bf16.msra.mxu1 %v1993_v63 }
  0x3f   : > { %1998 = vmatprep.subr.bf16.mxu1 %v1997_v6  ;;  %2028 = vmatpush3.bf16.msra.mxu0 %v2025_v33 }
  0x40   : > { %1768 = vmatmul.mubr.f32.gmra.mrb[12].mxu0 %v337_v7 }
  0x41   : > { %1770 = vmatprep.mubr.f32.mxu0 %v338_v8  ;;  %1792 = vmatmul.mubr.f32.gmra.mrb[12].mxu1 %v353_v9 }
  0x42   : > { %1794 = vmatprep.mubr.f32.mxu1 %v354_v10  ;;  %2000 = vmatpush3.bf16.msra.mxu1 %v1997_v6 }
  0x43   : > { %2002 = vmatprep.subr.bf16.mxu1 %v2001_v15 }
  0x44   : > { %1771 = vmatmul.mubr.f32.gmra.mrb[14].mxu0 %v339_v11 }
  0x45   : > { %1795 = vmatmul.mubr.f32.gmra.mrb[14].mxu1 %v355_v12 }
  0x46   : > { %2004 = vmatpush3.bf16.msra.mxu1 %v2001_v15 }
  0xfb   : > { %v1751_v35 = vpop.f32.mrb[0].mxu0 }
  0xfc   : > { %v451_v36 = vadd.f32 %v1751_v35, %v2299_v34  ;;  %v445_v37 = vpop.f32.mrb[1].mxu0  ;;  %v2302_v38 = vpop.f32.mrb[0].mxu1 }
  0xfd   : > { %v446_v39 = vadd.f32 %v2299_v34, %v445_v37  ;;  %v2305_v40 = vpop.f32.mrb[1].mxu1 }
  0xfe   : > { %v605_v43 = vmax.f32 %v451_v36, 0.0  ;;  %v526_v27 = vadd.f32 %v2299_v34, %v2305_v40 }
  0xff   : > { %v604_v41 = vmax.f32 %v446_v39, 0.0  ;;  %v1754_v42 = vpop.f32.mrb[2].mxu0 }
 0x100   : > { %v461_v44 = vadd.f32 %v1754_v42, %v2299_v34  ;;  %v455_v45 = vpop.f32.mrb[3].mxu0  ;;  %v2308_v46 = vpop.f32.mrb[2].mxu1  ;;  %v620_v36 = vmax.f32 %v526_v27, 0.0 }
 0x101   : > { %v456_v47 = vadd.f32 %v2299_v34, %v455_v45  ;;  %1829 = vmatprep.mubr.f32.mxu1 %v604_v41  ;;  %v2311_v48 = vpop.f32.mrb[3].mxu1  ;;  %v531_v41 = vadd.f32 %v2302_v38, %v2299_v34 }
 0x102   : > { %1830 = vmatmul.mubr.f32.vlgmr.msra.gmra.mrb[16].mxu1 %v605_v43  ;;  %v607_v51 = vmax.f32 %v461_v44, 0.0  ;;  %v536_v37 = vadd.f32 %v2299_v34, %v2311_v48  ;;  %v541_v44 = vadd.f32 %v2308_v46, %v2299_v34 }
 0x103   : > { %v606_v49 = vmax.f32 %v456_v47, 0.0  ;;  %v1757_v50 = vpop.f32.mrb[4].mxu0  ;;  %v621_v43 = vmax.f32 %v531_v41, 0.0 }
 0x104   : > { %v471_v52 = vadd.f32 %v1757_v50, %v2299_v34  ;;  %v465_v53 = vpop.f32.mrb[5].mxu0  ;;  %v2314_v54 = vpop.f32.mrb[4].mxu1  ;;  %v622_v40 = vmax.f32 %v536_v37, 0.0  ;;  %v623_v48 = vmax.f32 %v541_v44, 0.0 }
 0x105   : > { %v466_v55 = vadd.f32 %v2299_v34, %v465_v53  ;;  %1832 = vmatprep.mubr.f32.mxu1 %v606_v49  ;;  %v545_v56 = vpop.f32.mrb[5].mxu1  ;;  %v551_v49 = vadd.f32 %v2314_v54, %v2299_v34 }
 0x106   : > { %1833 = vmatmul.mubr.f32.gmra.mrb[18].mxu1 %v607_v51  ;;  %v609_v59 = vmax.f32 %v471_v52, 0.0  ;;  %v546_v42 = vadd.f32 %v2299_v34, %v545_v56 }
 0x107   : > { %v608_v57 = vmax.f32 %v466_v55, 0.0  ;;  %v1760_v58 = vpop.f32.mrb[6].mxu0  ;;  %v625_v51 = vmax.f32 %v551_v49, 0.0 }
 0x108   : > { %v481_v60 = vadd.f32 %v1760_v58, %v2299_v34  ;;  %v475_v61 = vpop.f32.mrb[7].mxu0  ;;  %v2318_v62 = vpop.f32.mrb[6].mxu1  ;;  %v624_v45 = vmax.f32 %v546_v42, 0.0 }
 0x109   : > { %v476_v63 = vadd.f32 %v2299_v34, %v475_v61  ;;  %1835 = vmatprep.mubr.f32.mxu1 %v608_v57  ;;  %v555_v0 = vpop.f32.mrb[7].mxu1  ;;  %v561_v52 = vadd.f32 %v2318_v62, %v2299_v34 }
 0x10a   : > { %1836 = vmatmul.mubr.f32.gmra.mrb[20].mxu1 %v609_v59  ;;  %v611_v3 = vmax.f32 %v481_v60, 0.0  ;;  %v556_v47 = vadd.f32 %v2299_v34, %v555_v0 }
 0x10b   : > { %v610_v1 = vmax.f32 %v476_v63, 0.0  ;;  %v1763_v2 = vpop.f32.mrb[8].mxu0  ;;  %v627_v55 = vmax.f32 %v561_v52, 0.0 }
 0x10c   : > { %v491_v4 = vadd.f32 %v1763_v2, %v2299_v34  ;;  %v485_v5 = vpop.f32.mrb[9].mxu0  ;;  %v2322_v6 = vpop.f32.mrb[8].mxu1  ;;  %v626_v38 = vmax.f32 %v556_v47, 0.0 }
 0x10d   : > { %v486_v7 = vadd.f32 %v2299_v34, %v485_v5  ;;  %1838 = vmatprep.mubr.f32.mxu1 %v610_v1  ;;  %v565_v8 = vpop.f32.mrb[9].mxu1  ;;  %v571_v56 = vadd.f32 %v2322_v6, %v2299_v34  ;;  %v1089_v5 = vld [vmem:[%s2509_s5 + $0x68] sm:$0xff] }
 0x10e   : > { %1839 = vmatmul.mubr.f32.gmra.mrb[22].mxu1 %v611_v3  ;;  %v613_v11 = vmax.f32 %v491_v4, 0.0  ;;  %v566_v50 = vadd.f32 %v2299_v34, %v565_v8  ;;  %v1088_v4 = vld [vmem:[%s2509_s5 + $0x60] sm:$0xff] }
 0x10f   : > { %v612_v9 = vmax.f32 %v486_v7, 0.0  ;;  %v1766_v10 = vpop.f32.mrb[10].mxu0  ;;  %v629_v58 = vmax.f32 %v571_v56, 0.0  ;;  %v2029_v6 = vpack.c.bf16 %v1089_v5, %v1088_v4  ;;  %v1091_v7 = vld [vmem:[%s2509_s5 + $0x78] sm:$0xff] }
 0x110   : > { %v501_v12 = vadd.f32 %v1766_v10, %v2299_v34  ;;  %v495_v13 = vpop.f32.mrb[11].mxu0  ;;  %v1790_v14 = vpop.f32.mrb[10].mxu1  ;;  %v628_v46 = vmax.f32 %v566_v50, 0.0 }
 0x111   : > { %v496_v15 = vadd.f32 %v2299_v34, %v495_v13  ;;  %1841 = vmatprep.mubr.f32.mxu1 %v612_v9  ;;  %v575_v16 = vpop.f32.mrb[11].mxu1  ;;  %v581_v59 = vadd.f32 %v1790_v14, %v2299_v34  ;;  %2030 = vmatprep.subr.bf16.mxu0 %v2029_v6  ;;  %v2369_v9 = vld [vmem:[%s2508_s4] ss:$0 sm:$0xff] }
 0x112   : > { %1842 = vmatmul.mubr.f32.gmra.mrb[24].mxu1 %v613_v11  ;;  %v615_v19 = vmax.f32 %v501_v12, 0.0  ;;  %v576_v53 = vadd.f32 %v2299_v34, %v575_v16  ;;  %2032 = vmatpush3.bf16.msra.mxu0 %v2029_v6 }
 0x113   : > { %v614_v17 = vmax.f32 %v496_v15, 0.0  ;;  %v1769_v18 = vpop.f32.mrb[12].mxu0  ;;  %v631_v62 = vmax.f32 %v581_v59, 0.0 }
 0x114   : > { %v511_v20 = vadd.f32 %v1769_v18, %v2299_v34  ;;  %v505_v21 = vpop.f32.mrb[13].mxu0  ;;  %v1793_v22 = vpop.f32.mrb[12].mxu1  ;;  %v630_v54 = vmax.f32 %v576_v53, 0.0 }
 0x115   : > { %v506_v23 = vadd.f32 %v2299_v34, %v505_v21  ;;  %1844 = vmatprep.mubr.f32.mxu1 %v614_v17  ;;  %v585_v24 = vpop.f32.mrb[13].mxu1  ;;  %v591_v63 = vadd.f32 %v1793_v22, %v2299_v34 }
 0x116   : > { %1845 = vmatmul.mubr.f32.gmra.mrb[26].mxu1 %v615_v19  ;;  %v617_v28 = vmax.f32 %v511_v20, 0.0  ;;  %v586_v57 = vadd.f32 %v2299_v34, %v585_v24 }
 0x117   : > { %v616_v25 = vmax.f32 %v506_v23, 0.0  ;;  %v1772_v26 = vpop.f32.mrb[14].mxu0  ;;  %v633_v1 = vmax.f32 %v591_v63, 0.0 }
 0x118   : > { %v521_v29 = vadd.f32 %v1772_v26, %v2299_v34  ;;  %v515_v30 = vpop.f32.mrb[15].mxu0  ;;  %v1796_v31 = vpop.f32.mrb[14].mxu1  ;;  %v632_v60 = vmax.f32 %v586_v57, 0.0 }
 0x119   : > { %v516_v32 = vadd.f32 %v2299_v34, %v515_v30  ;;  %1847 = vmatprep.mubr.f32.mxu1 %v616_v25  ;;  %v595_v33 = vpop.f32.mrb[15].mxu1  ;;  %v601_v2 = vadd.f32 %v1796_v31, %v2299_v34 }
 0x11a   : > { %1848 = vmatmul.mubr.f32.gmra.mrb[28].mxu1 %v617_v28  ;;  %v619_v39 = vmax.f32 %v521_v29, 0.0  ;;  %v596_v61 = vadd.f32 %v2299_v34, %v595_v33  ;;  %v1090_v34 = vld [vmem:[%s2509_s5 + $0x70] sm:$0xff] }
 0x11b   : > { %v618_v35 = vmax.f32 %v516_v32, 0.0  ;;  %v635_v3 = vmax.f32 %v601_v2, 0.0  ;;  %v2033_v8 = vpack.c.bf16 %v1091_v7, %v1090_v34 }
 0x11c   : > { %v634_v0 = vmax.f32 %v596_v61, 0.0 }
 0x11d   : > { %1850 = vmatprep.mubr.f32.mxu1 %v618_v35  ;;  %2034 = vmatprep.subr.bf16.mxu0 %v2033_v8 }
 0x11e   : > { %1851 = vmatmul.mubr.f32.gmra.mrb[30].mxu1 %v619_v39  ;;  %2036 = vmatpush3.bf16.msra.mxu0 %v2033_v8 }
 0x11f   : > { %1853 = vmatprep.mubr.f32.mxu1 %v620_v36 }
 0x122   : > { %1854 = vmatmul.mubr.f32.gmra.mrb[32].mxu1 %v621_v43 }
 0x123   : > { %1856 = vmatprep.mubr.f32.mxu1 %v622_v40 }
 0x126   : > { %1857 = vmatmul.mubr.f32.gmra.mrb[34].mxu1 %v623_v48 }
 0x127   : > { %1859 = vmatprep.mubr.f32.mxu1 %v624_v45 }
 0x12a   : > { %1860 = vmatmul.mubr.f32.gmra.mrb[36].mxu1 %v625_v51 }
 0x12b   : > { %1862 = vmatprep.mubr.f32.mxu1 %v626_v38 }
 0x12e   : > { %1863 = vmatmul.mubr.f32.gmra.mrb[38].mxu1 %v627_v55 }
 0x12f   : > { %1865 = vmatprep.mubr.f32.mxu1 %v628_v46 }
 0x132   : > { %1866 = vmatmul.mubr.f32.gmra.mrb[40].mxu1 %v629_v58 }
 0x133   : > { %1868 = vmatprep.mubr.f32.mxu1 %v630_v54 }
 0x136   : > { %1869 = vmatmul.mubr.f32.gmra.mrb[42].mxu1 %v631_v62 }
 0x137   : > { %1871 = vmatprep.mubr.f32.mxu1 %v632_v60 }
 0x13a   : > { %1872 = vmatmul.mubr.f32.gmra.mrb[44].mxu1 %v633_v1 }
 0x13b   : > { %1874 = vmatprep.mubr.f32.mxu1 %v634_v0 }
 0x13e   : > { %1875 = vmatmul.mubr.f32.gmra.mrb[46].mxu1 %v635_v3 }
 0x1d5   : > { %v1831_v10 = vpop.f32.mrb[16].mxu1 }
 0x1d6   : > { %v731_v11 = vadd.f32 %v1831_v10, %v2369_v9  ;;  %v725_v12 = vpop.f32.mrb[17].mxu1 }
 0x1d7   : > { %v726_v13 = vadd.f32 %v2369_v9, %v725_v12 }
 0x1d8   : > { %v885_v14 = vmax.f32 %v731_v11, 0.0 }
 0x1d9   : > { %v884_v15 = vmax.f32 %v726_v13, 0.0  ;;  %v1834_v16 = vpop.f32.mrb[18].mxu1 }
 0x1da   : > { %v741_v17 = vadd.f32 %v1834_v16, %v2369_v9  ;;  %v735_v18 = vpop.f32.mrb[19].mxu1 }
 0x1db   : > { %v916_v19 = vpack.c.bf16 %v885_v14, %v884_v15  ;;  %v736_v20 = vadd.f32 %v2369_v9, %v735_v18 }
 0x1dc   : > { %v887_v21 = vmax.f32 %v741_v17, 0.0 }
 0x1dd   : > { %1498 = vst [vmem:[%s2377_s22] sm:$0xff] %v916_v19   ;;  %v886_v22 = vmax.f32 %v736_v20, 0.0  ;;  %v1837_v23 = vpop.f32.mrb[20].mxu1  ;;  %1909 = vmatprep.mubr.bf16.mxu0 %v916_v19 }
 0x1de   : > { %v751_v24 = vadd.f32 %v1837_v23, %v2369_v9  ;;  %v745_v25 = vpop.f32.mrb[21].mxu1 }
 0x1df   : > { %v917_v26 = vpack.c.bf16 %v887_v21, %v886_v22  ;;  %v746_v27 = vadd.f32 %v2369_v9, %v745_v25 }
 0x1e0   : > { %v889_v28 = vmax.f32 %v751_v24, 0.0 }
 0x1e1   : > { %1574 = vst [vmem:[%s2377_s22 + $0x8] sm:$0xff] %v917_v26   ;;  %v888_v29 = vmax.f32 %v746_v27, 0.0  ;;  %v1840_v30 = vpop.f32.mrb[22].mxu1  ;;  %1910 = vmatmul.mubr.bf16.vlgmr.msra.gmra.mrb[16].mxu0 %v917_v26 }
 0x1e2   : > { %v761_v31 = vadd.f32 %v1840_v30, %v2369_v9  ;;  %v755_v32 = vpop.f32.mrb[23].mxu1 }
 0x1e3   : > { %v918_v33 = vpack.c.bf16 %v889_v28, %v888_v29  ;;  %v756_v35 = vadd.f32 %v2369_v9, %v755_v32 }
 0x1e4   : > { %v891_v36 = vmax.f32 %v761_v31, 0.0 }
 0x1e5   : > { %1575 = vst [vmem:[%s2377_s22 + $0x10] sm:$0xff] %v918_v33   ;;  %v890_v37 = vmax.f32 %v756_v35, 0.0  ;;  %v1843_v39 = vpop.f32.mrb[24].mxu1  ;;  %1913 = vmatprep.mubr.bf16.mxu0 %v918_v33 }
 0x1e6   : > { %v771_v41 = vadd.f32 %v1843_v39, %v2369_v9  ;;  %v765_v40 = vpop.f32.mrb[25].mxu1 }
 0x1e7   : > { %v919_v42 = vpack.c.bf16 %v891_v36, %v890_v37  ;;  %v766_v43 = vadd.f32 %v2369_v9, %v765_v40 }
 0x1e8   : > { %v893_v44 = vmax.f32 %v771_v41, 0.0 }
 0x1e9   : > { %1576 = vst [vmem:[%s2377_s22 + $0x18] sm:$0xff] %v919_v42   ;;  %v892_v45 = vmax.f32 %v766_v43, 0.0  ;;  %v1846_v47 = vpop.f32.mrb[26].mxu1  ;;  %1914 = vmatmul.mubr.bf16.gmra.mrb[20].mxu0 %v919_v42 }
 0x1ea   : > { %v781_v48 = vadd.f32 %v1846_v47, %v2369_v9  ;;  %v775_v49 = vpop.f32.mrb[27].mxu1 }
 0x1eb   : > { %v920_v38 = vpack.c.bf16 %v893_v44, %v892_v45  ;;  %v776_v50 = vadd.f32 %v2369_v9, %v775_v49 }
 0x1ec   : > { %v895_v51 = vmax.f32 %v781_v48, 0.0 }
 0x1ed   : > { %1577 = vst [vmem:[%s2377_s22 + $0x20] sm:$0xff] %v920_v38   ;;  %v894_v52 = vmax.f32 %v776_v50, 0.0  ;;  %v1849_v46 = vpop.f32.mrb[28].mxu1  ;;  %1917 = vmatprep.mubr.bf16.mxu0 %v920_v38 }
 0x1ee   : > { %v791_v53 = vadd.f32 %v1849_v46, %v2369_v9  ;;  %v785_v55 = vpop.f32.mrb[29].mxu1 }
 0x1ef   : > { %v921_v56 = vpack.c.bf16 %v895_v51, %v894_v52  ;;  %v786_v54 = vadd.f32 %v2369_v9, %v785_v55 }
 0x1f0   : > { %v897_v57 = vmax.f32 %v791_v53, 0.0 }
 0x1f1   : > { %1578 = vst [vmem:[%s2377_s22 + $0x28] sm:$0xff] %v921_v56   ;;  %v896_v58 = vmax.f32 %v786_v54, 0.0  ;;  %v1852_v59 = vpop.f32.mrb[30].mxu1  ;;  %1918 = vmatmul.mubr.bf16.gmra.mrb[24].mxu0 %v921_v56 }
 0x1f2   : > { %v801_v60 = vadd.f32 %v1852_v59, %v2369_v9  ;;  %v795_v61 = vpop.f32.mrb[31].mxu1 }
 0x1f3   : > { %v922_v62 = vpack.c.bf16 %v897_v57, %v896_v58  ;;  %v796_v63 = vadd.f32 %v2369_v9, %v795_v61 }
 0x1f4   : > { %v899_v0 = vmax.f32 %v801_v60, 0.0  ;;  %v2428_v60 = vld [vmem:[%s2510_s6] ss:$0 sm:$0xff] }
 0x1f5   : > { %1579 = vst [vmem:[%s2377_s22 + $0x30] sm:$0xff] %v922_v62   ;;  %v898_v1 = vmax.f32 %v796_v63, 0.0  ;;  %v1855_v2 = vpop.f32.mrb[32].mxu1  ;;  %1921 = vmatprep.mubr.bf16.mxu0 %v922_v62 }
 0x1f6   : > { %v811_v3 = vadd.f32 %v1855_v2, %v2369_v9  ;;  %v805_v4 = vpop.f32.mrb[33].mxu1 }
 0x1f7   : > { %v923_v5 = vpack.c.bf16 %v899_v0, %v898_v1  ;;  %v806_v6 = vadd.f32 %v2369_v9, %v805_v4 }
 0x1f8   : > { %v901_v34 = vmax.f32 %v811_v3, 0.0 }
 0x1f9   : > { %1580 = vst [vmem:[%s2377_s22 + $0x38] sm:$0xff] %v923_v5   ;;  %v900_v7 = vmax.f32 %v806_v6, 0.0  ;;  %v1858_v8 = vpop.f32.mrb[34].mxu1  ;;  %1922 = vmatmul.mubr.bf16.gmra.mrb[28].mxu0 %v923_v5 }
 0x1fa   : > { %v821_v10 = vadd.f32 %v1858_v8, %v2369_v9  ;;  %v815_v11 = vpop.f32.mrb[35].mxu1 }
 0x1fb   : > { %v924_v12 = vpack.c.bf16 %v901_v34, %v900_v7  ;;  %v816_v13 = vadd.f32 %v2369_v9, %v815_v11 }
 0x1fc   : > { %v903_v14 = vmax.f32 %v821_v10, 0.0 }
 0x1fd   : > { %1581 = vst [vmem:[%s2377_s22 + $0x40] sm:$0xff] %v924_v12   ;;  %v902_v15 = vmax.f32 %v816_v13, 0.0  ;;  %v1861_v16 = vpop.f32.mrb[36].mxu1  ;;  %1925 = vmatprep.mubr.bf16.mxu0 %v924_v12 }
 0x1fe   : > { %v831_v17 = vadd.f32 %v1861_v16, %v2369_v9  ;;  %v825_v18 = vpop.f32.mrb[37].mxu1 }
 0x1ff   : > { %v925_v19 = vpack.c.bf16 %v903_v14, %v902_v15  ;;  %v826_v20 = vadd.f32 %v2369_v9, %v825_v18 }
 0x200   : > { %v905_v21 = vmax.f32 %v831_v17, 0.0 }
 0x201   : > { %1582 = vst [vmem:[%s2377_s22 + $0x48] sm:$0xff] %v925_v19   ;;  %v904_v22 = vmax.f32 %v826_v20, 0.0  ;;  %v1864_v23 = vpop.f32.mrb[38].mxu1  ;;  %1926 = vmatmul.mubr.bf16.gmra.mrb[32].mxu0 %v925_v19 }
 0x202   : > { %v841_v24 = vadd.f32 %v1864_v23, %v2369_v9  ;;  %v835_v25 = vpop.f32.mrb[39].mxu1 }
 0x203   : > { %v926_v26 = vpack.c.bf16 %v905_v21, %v904_v22  ;;  %v836_v27 = vadd.f32 %v2369_v9, %v835_v25 }
 0x204   : > { %v907_v28 = vmax.f32 %v841_v24, 0.0 }
 0x205   : > { %1583 = vst [vmem:[%s2377_s22 + $0x50] sm:$0xff] %v926_v26   ;;  %v906_v29 = vmax.f32 %v836_v27, 0.0  ;;  %v1867_v30 = vpop.f32.mrb[40].mxu1  ;;  %1929 = vmatprep.mubr.bf16.mxu0 %v926_v26 }
 0x206   : > { %v851_v31 = vadd.f32 %v1867_v30, %v2369_v9  ;;  %v845_v32 = vpop.f32.mrb[41].mxu1 }
 0x207   : > { %v927_v33 = vpack.c.bf16 %v907_v28, %v906_v29  ;;  %v846_v35 = vadd.f32 %v2369_v9, %v845_v32 }
 0x208   : > { %v909_v36 = vmax.f32 %v851_v31, 0.0 }
 0x209   : > { %1584 = vst [vmem:[%s2377_s22 + $0x58] sm:$0xff] %v927_v33   ;;  %v908_v37 = vmax.f32 %v846_v35, 0.0  ;;  %v1870_v39 = vpop.f32.mrb[42].mxu1  ;;  %1930 = vmatmul.mubr.bf16.gmra.mrb[36].mxu0 %v927_v33 }
 0x20a   : > { %v861_v41 = vadd.f32 %v1870_v39, %v2369_v9  ;;  %v855_v40 = vpop.f32.mrb[43].mxu1 }
 0x20b   : > { %v928_v42 = vpack.c.bf16 %v909_v36, %v908_v37  ;;  %v856_v43 = vadd.f32 %v2369_v9, %v855_v40 }
 0x20c   : > { %v911_v44 = vmax.f32 %v861_v41, 0.0 }
 0x20d   : > { %1585 = vst [vmem:[%s2377_s22 + $0x60] sm:$0xff] %v928_v42   ;;  %v910_v45 = vmax.f32 %v856_v43, 0.0  ;;  %v1873_v47 = vpop.f32.mrb[44].mxu1  ;;  %1933 = vmatprep.mubr.bf16.mxu0 %v928_v42 }
 0x20e   : > { %v871_v48 = vadd.f32 %v1873_v47, %v2369_v9  ;;  %v865_v49 = vpop.f32.mrb[45].mxu1 }
 0x20f   : > { %v929_v38 = vpack.c.bf16 %v911_v44, %v910_v45  ;;  %v866_v50 = vadd.f32 %v2369_v9, %v865_v49 }
 0x210   : > { %v913_v51 = vmax.f32 %v871_v48, 0.0 }
 0x211   : > { %1586 = vst [vmem:[%s2377_s22 + $0x68] sm:$0xff] %v929_v38   ;;  %v912_v52 = vmax.f32 %v866_v50, 0.0  ;;  %v1876_v46 = vpop.f32.mrb[46].mxu1  ;;  %1934 = vmatmul.mubr.bf16.gmra.mrb[40].mxu0 %v929_v38 }
 0x212   : > { %v881_v53 = vadd.f32 %v1876_v46, %v2369_v9  ;;  %v875_v55 = vpop.f32.mrb[47].mxu1 }
 0x213   : > { %v930_v56 = vpack.c.bf16 %v913_v51, %v912_v52  ;;  %v876_v54 = vadd.f32 %v2369_v9, %v875_v55 }
 0x214   : > { %v915_v57 = vmax.f32 %v881_v53, 0.0 }
 0x215   : > { %1587 = vst [vmem:[%s2377_s22 + $0x70] sm:$0xff] %v930_v56   ;;  %v914_v58 = vmax.f32 %v876_v54, 0.0  ;;  %1937 = vmatprep.mubr.bf16.mxu0 %v930_v56 }
 0x217   : > { %v931_v59 = vpack.c.bf16 %v915_v57, %v914_v58 }
 0x219   : > { %1588 = vst [vmem:[%s2377_s22 + $0x78] sm:$0xff] %v931_v59   ;;  %1938 = vmatmul.mubr.bf16.gmra.mrb[44].mxu0 %v931_v59 }
 0x2b4   : > { %v1911_v9 = vpop.f32.mrb[16].mxu0 }
 0x2b5   : > { %v1174_v61 = vadd.f32 %v1911_v9, %v2428_v60  ;;  %v1165_v62 = vpop.f32.mrb[17].mxu0 }
 0x2b6   : > { %v1166_v63 = vadd.f32 %v2428_v60, %v1165_v62  ;;  %v1912_v0 = vpop.f32.mrb[18].mxu0 }
 0x2b7   : > { %1294 = vst [vmem:[%s2435_s26 + $0x10] sm:$0xff] %v1174_v61  ;;  %v1177_v1 = vadd.f32 %v1912_v0, %v2428_v60  ;;  %v1168_v2 = vpop.f32.mrb[19].mxu0 }
 0x2b8   : > { %1292 = vst [vmem:[%s2435_s26] sm:$0xff] %v1166_v63  ;;  %v1169_v3 = vadd.f32 %v2428_v60, %v1168_v2 }
 0x2b9   : > { %1295 = vst [vmem:[%s2435_s26 + $0x18] sm:$0xff] %v1177_v1 }
 0x2ba   : > { %1293 = vst [vmem:[%s2435_s26 + $0x8] sm:$0xff] %v1169_v3 }
 0x2bc   : > { %v1915_v4 = vpop.f32.mrb[20].mxu0 }
 0x2bd   : > { %v1190_v5 = vadd.f32 %v1915_v4, %v2428_v60  ;;  %v1181_v6 = vpop.f32.mrb[21].mxu0 }
 0x2be   : > { %v1182_v34 = vadd.f32 %v2428_v60, %v1181_v6  ;;  %v1916_v7 = vpop.f32.mrb[22].mxu0 }
 0x2bf   : > { %1298 = vst [vmem:[%s2435_s26 + $0x30] sm:$0xff] %v1190_v5  ;;  %v1193_v8 = vadd.f32 %v1916_v7, %v2428_v60  ;;  %v1184_v10 = vpop.f32.mrb[23].mxu0 }
 0x2c0   : > { %1296 = vst [vmem:[%s2435_s26 + $0x20] sm:$0xff] %v1182_v34  ;;  %v1185_v11 = vadd.f32 %v2428_v60, %v1184_v10 }
 0x2c1   : > { %1299 = vst [vmem:[%s2435_s26 + $0x38] sm:$0xff] %v1193_v8 }
 0x2c2   : > { %1297 = vst [vmem:[%s2435_s26 + $0x28] sm:$0xff] %v1185_v11 }
 0x2c4   : > { %v1919_v12 = vpop.f32.mrb[24].mxu0 }
 0x2c5   : > { %v1206_v13 = vadd.f32 %v1919_v12, %v2428_v60  ;;  %v1197_v14 = vpop.f32.mrb[25].mxu0 }
 0x2c6   : > { %v1198_v15 = vadd.f32 %v2428_v60, %v1197_v14  ;;  %v1920_v16 = vpop.f32.mrb[26].mxu0 }
 0x2c7   : > { %1302 = vst [vmem:[%s2435_s26 + $0x50] sm:$0xff] %v1206_v13  ;;  %v1209_v17 = vadd.f32 %v1920_v16, %v2428_v60  ;;  %v1200_v18 = vpop.f32.mrb[27].mxu0 }
 0x2c8   : > { %1300 = vst [vmem:[%s2435_s26 + $0x40] sm:$0xff] %v1198_v15  ;;  %v1201_v19 = vadd.f32 %v2428_v60, %v1200_v18 }
 0x2c9   : > { %1303 = vst [vmem:[%s2435_s26 + $0x58] sm:$0xff] %v1209_v17 }
 0x2ca   : > { %1301 = vst [vmem:[%s2435_s26 + $0x48] sm:$0xff] %v1201_v19 }
 0x2cc   : > { %v1923_v20 = vpop.f32.mrb[28].mxu0 }
 0x2cd   : > { %v1222_v21 = vadd.f32 %v1923_v20, %v2428_v60  ;;  %v1213_v22 = vpop.f32.mrb[29].mxu0 }
 0x2ce   : > { %v1214_v23 = vadd.f32 %v2428_v60, %v1213_v22  ;;  %v1924_v24 = vpop.f32.mrb[30].mxu0 }
 0x2cf   : > { %1306 = vst [vmem:[%s2435_s26 + $0x70] sm:$0xff] %v1222_v21  ;;  %v1225_v25 = vadd.f32 %v1924_v24, %v2428_v60  ;;  %v1216_v26 = vpop.f32.mrb[31].mxu0 }
 0x2d0   : > { %1304 = vst [vmem:[%s2435_s26 + $0x60] sm:$0xff] %v1214_v23  ;;  %v1217_v27 = vadd.f32 %v2428_v60, %v1216_v26 }
 0x2d1   : > { %1307 = vst [vmem:[%s2435_s26 + $0x78] sm:$0xff] %v1225_v25 }
 0x2d2   : > { %1305 = vst [vmem:[%s2435_s26 + $0x68] sm:$0xff] %v1217_v27 }
 0x2d4   : > { %v1927_v28 = vpop.f32.mrb[32].mxu0 }
 0x2d5   : > { %v1238_v29 = vadd.f32 %v1927_v28, %v2428_v60  ;;  %v1229_v30 = vpop.f32.mrb[33].mxu0 }
 0x2d6   : > { %v1230_v31 = vadd.f32 %v2428_v60, %v1229_v30  ;;  %v1928_v32 = vpop.f32.mrb[34].mxu0 }
 0x2d7   : > { %1310 = vst [vmem:[%s2435_s26 + $0x90] sm:$0xff] %v1238_v29  ;;  %v1241_v33 = vadd.f32 %v1928_v32, %v2428_v60  ;;  %v1232_v35 = vpop.f32.mrb[35].mxu0 }
 0x2d8   : > { %1308 = vst [vmem:[%s2435_s26 + $0x80] sm:$0xff] %v1230_v31  ;;  %v1233_v36 = vadd.f32 %v2428_v60, %v1232_v35 }
 0x2d9   : > { %1311 = vst [vmem:[%s2435_s26 + $0x98] sm:$0xff] %v1241_v33 }
 0x2da   : > { %1309 = vst [vmem:[%s2435_s26 + $0x88] sm:$0xff] %v1233_v36 }
 0x2dc   : > { %v1931_v37 = vpop.f32.mrb[36].mxu0 }
 0x2dd   : > { %v1254_v39 = vadd.f32 %v1931_v37, %v2428_v60  ;;  %v1245_v41 = vpop.f32.mrb[37].mxu0 }
 0x2de   : > { %v1246_v40 = vadd.f32 %v2428_v60, %v1245_v41  ;;  %v1932_v42 = vpop.f32.mrb[38].mxu0 }
 0x2df   : > { %1314 = vst [vmem:[%s2435_s26 + $0xb0] sm:$0xff] %v1254_v39  ;;  %v1257_v43 = vadd.f32 %v1932_v42, %v2428_v60  ;;  %v1248_v44 = vpop.f32.mrb[39].mxu0 }
 0x2e0   : > { %1312 = vst [vmem:[%s2435_s26 + $0xa0] sm:$0xff] %v1246_v40  ;;  %v1249_v45 = vadd.f32 %v2428_v60, %v1248_v44 }
 0x2e1   : > { %1315 = vst [vmem:[%s2435_s26 + $0xb8] sm:$0xff] %v1257_v43 }
 0x2e2   : > { %1313 = vst [vmem:[%s2435_s26 + $0xa8] sm:$0xff] %v1249_v45 }
 0x2e4   : > { %v1935_v47 = vpop.f32.mrb[40].mxu0 }
 0x2e5   : > { %v1270_v48 = vadd.f32 %v1935_v47, %v2428_v60  ;;  %v1261_v49 = vpop.f32.mrb[41].mxu0 }
 0x2e6   : > { %v1262_v38 = vadd.f32 %v2428_v60, %v1261_v49  ;;  %v1936_v50 = vpop.f32.mrb[42].mxu0 }
 0x2e7   : > { %1318 = vst [vmem:[%s2435_s26 + $0xd0] sm:$0xff] %v1270_v48  ;;  %v1273_v51 = vadd.f32 %v1936_v50, %v2428_v60  ;;  %v1264_v52 = vpop.f32.mrb[43].mxu0 }
 0x2e8   : > { %1316 = vst [vmem:[%s2435_s26 + $0xc0] sm:$0xff] %v1262_v38  ;;  %v1265_v46 = vadd.f32 %v2428_v60, %v1264_v52 }
 0x2e9   : > { %1319 = vst [vmem:[%s2435_s26 + $0xd8] sm:$0xff] %v1273_v51 }
 0x2ea   : > { %1317 = vst [vmem:[%s2435_s26 + $0xc8] sm:$0xff] %v1265_v46 }
 0x2ec   : > { %v1939_v53 = vpop.f32.mrb[44].mxu0 }
 0x2ed   : > { %v1286_v55 = vadd.f32 %v1939_v53, %v2428_v60  ;;  %v1277_v56 = vpop.f32.mrb[45].mxu0 }
 0x2ee   : > { %v1278_v54 = vadd.f32 %v2428_v60, %v1277_v56  ;;  %v1940_v57 = vpop.f32.mrb[46].mxu0 }
 0x2ef   : > { %1322 = vst [vmem:[%s2435_s26 + $0xf0] sm:$0xff] %v1286_v55  ;;  %v1289_v58 = vadd.f32 %v1940_v57, %v2428_v60  ;;  %v1280_v59 = vpop.f32.mrb[47].mxu0 }
 0x2f0   : > { %1320 = vst [vmem:[%s2435_s26 + $0xe0] sm:$0xff] %v1278_v54  ;;  %v1281_v9 = vadd.f32 %v2428_v60, %v1280_v59 }
 0x2f1   : > { %1323 = vst [vmem:[%s2435_s26 + $0xf8] sm:$0xff] %v1289_v58 }
 0x2f2   : > { %1321 = vst [vmem:[%s2435_s26 + $0xe8] sm:$0xff] %v1281_v9 }
 0x2f3 PF: > { %s19_s27 = sadd.s32 1, %s2067_s27  }
 0x2f4   : > { %p16_p4 = scmp.ge.s32.totalorder %s19_s27, 4  }
 0x2f6   :  { %18 = sbr.rel (!%p16_p4) target bundleno = 1 (0x1), region = 90 }

// kernel: bwgnn_em_forward.7
= control target key start
LH: loop header
LB: loop body
LE: loop exit
PB: predicated region body
PF: predicated region fallthrough
CT: control target
= control target key end

     0   :  { %s912_s15 = smov 0   ;;  %s1314_s0 = inlined_call_operand.vmem [shape: f32[512,128], index: 0, kind: input, shape index: {}]   ;;  %s1315_s1 = inlined_call_operand.vmem [shape: f32[128,128], index: 1, kind: input, shape index: {}]   ;;  %s1316_s2 = inlined_call_operand.vmem [shape: f32[1,128], index: 2, kind: input, shape index: {}]   ;;  %s1317_s3 = inlined_call_operand.vmem [shape: f32[512,128], index: 3, kind: output, shape index: {0}]   ;;  %s1318_s4 = inlined_call_operand.vmem [shape: f32[512,128], index: 4, kind: output, shape index: {1}]  }
   0x1 LB: > { %s681_s16 = sadd.s32 4294967295, %s885_s15   ;;  %p685_p0 = scmp.ge.s32.totalorder %s885_s15, 1  ;;  %s885_s15 = sphi %s912_s15, %s15_s15  }
   0x2   : > { %p166_p1 = scmp.lt.s32.totalorder %s885_s15, 3 }
   0x4   : > { %p167_p2 = pnand %p685_p0, %p166_p1 }
   0x5   : > { %v311_v0 = vld [vmem:[%s1315_s1] sm:$0xff] (!%p167_p2)  ;;  %v312_v1 = vld [vmem:[%s1315_s1 + $0x8] sm:$0xff] (!%p167_p2)  ;;  %v313_v2 = vld [vmem:[%s1315_s1 + $0x10] sm:$0xff] (!%p167_p2)  ;;  %s686_s23 = sshll.u32 (!%p167_p2), %s681_s16, 5 }
   0x6   : > { %170 = sbr.rel (%p167_p2) target bundleno = 286 (0x11e), region = 32  ;;  %v823_v3 = vpack.c.bf16 (!%p167_p2), %v312_v1, %v311_v0  ;;  %v314_v4 = vld [vmem:[%s1315_s1 + $0x18] sm:$0xff] (!%p167_p2)  ;;  %p198_p3 = scmp.lt.s32.totalorder (!%p167_p2), %s686_s23, 63  ;;  %v315_v6 = vld [vmem:[%s1315_s1 + $0x20] sm:$0xff] (!%p167_p2)  ;;  %v316_v7 = vld [vmem:[%s1315_s1 + $0x28] sm:$0xff] (!%p167_p2) }
   0x7   : > { %v827_v5 = vpack.c.bf16 (!%p167_p2), %v314_v4, %v313_v2  ;;  %v831_v8 = vpack.c.bf16 (!%p167_p2), %v316_v7, %v315_v6  ;;  %v317_v9 = vld [vmem:[%s1315_s1 + $0x30] sm:$0xff] (!%p167_p2)  ;;  %v318_v10 = vld [vmem:[%s1315_s1 + $0x38] sm:$0xff] (!%p167_p2)  ;;  %v319_v14 = vld [vmem:[%s1315_s1 + $0x40] sm:$0xff] (!%p167_p2) }
   0x8   : > { %824 = vmatprep.subr.bf16.mxu0 (!%p167_p2), %v823_v3  ;;  %855 = vmatprep.subr.bf16.mxu1 (!%p167_p2), %v823_v3  ;;  %v320_v15 = vld [vmem:[%s1315_s1 + $0x48] sm:$0xff] (!%p167_p2)  ;;  %v979_v22 = vpack.c.bf16 (!%p167_p2), %v318_v10, %v317_v9  ;;  %v321_v41 = vld [vmem:[%s1315_s1 + $0x50] sm:$0xff] (!%p167_p2)  ;;  %v322_v42 = vld [vmem:[%s1315_s1 + $0x58] sm:$0xff] (!%p167_p2) }
   0x9   : > { %826 = vmatpush3.bf16.msra.mxu0 (!%p167_p2), %v823_v3  ;;  %863 = vmatpush3.bf16.msra.mxu1 (!%p167_p2), %v823_v3  ;;  %v839_v49 = vpack.c.bf16 (!%p167_p2), %v320_v15, %v319_v14  ;;  %v843_v10 = vpack.c.bf16 (!%p167_p2), %v322_v42, %v321_v41 }
   0xa   : > { %828 = vmatprep.subr.bf16.mxu0 (!%p167_p2), %v827_v5  ;;  %856 = vmatprep.subr.bf16.mxu1 (!%p167_p2), %v827_v5 }
   0xd   : > { %s1320_s23 = smov (!%p198_p3, %s686_s23), 63  ;;  %830 = vmatpush3.bf16.msra.mxu0 %v827_v5  ;;  %864 = vmatpush3.bf16.msra.mxu1 %v827_v5 }
   0xe   : > { %s938_s30 = sshll.u32 %s1320_s23, 3  ;;  %832 = vmatprep.subr.bf16.mxu0 %v831_v8  ;;  %857 = vmatprep.subr.bf16.mxu1 %v831_v8 }
   0xf   : > { %s950_s11 = scalar_lea.vmem %s1314_s0, %s938_s30  ;;  %s956_s14 = scalar_lea.vmem %s1318_s4, %s938_s30 }
  0x10   : > { %v215_v11 = vld [vmem:[%s950_s11] sm:$0xff]  ;;  %v961_v13 = vld [vmem:[%s950_s11 + $0x8] sm:$0xff]  ;;  %v974_v20 = vld [vmem:[%s950_s11 + $0x10] sm:$0xff] }
  0x11   : > { %v231_v12 = vld [vmem:[%s950_s11 + $0x80] sm:$0xff]  ;;  %v247_v16 = vmax.f32 %v215_v11, 0.0  ;;  %v248_v18 = vmax.f32 %v961_v13, 0.0  ;;  %v971_v19 = vld [vmem:[%s950_s11 + $0x88] sm:$0xff]  ;;  %v977_v21 = vld [vmem:[%s950_s11 + $0x90] sm:$0xff]  ;;  %v249_v24 = vmax.f32 %v974_v20, 0.0  ;;  %834 = vmatpush3.bf16.msra.mxu0 %v831_v8  ;;  %865 = vmatpush3.bf16.msra.mxu1 %v831_v8 }
  0x12   : > { %v263_v17 = vmax.f32 %v231_v12, 0.0  ;;  %v264_v23 = vmax.f32 %v971_v19, 0.0  ;;  %v265_v25 = vmax.f32 %v977_v21, 0.0  ;;  %v985_v26 = vld [vmem:[%s950_s11 + $0x18] sm:$0xff]  ;;  %v991_v28 = vld [vmem:[%s950_s11 + $0x20] sm:$0xff]  ;;  %v1005_v33 = vld [vmem:[%s950_s11 + $0x28] sm:$0xff]  ;;  %836 = vmatprep.subr.bf16.mxu0 %v979_v22  ;;  %858 = vmatprep.subr.bf16.mxu1 %v979_v22 }
  0x13   : > { %v988_v27 = vld [vmem:[%s950_s11 + $0x98] sm:$0xff]  ;;  %279 = vst [vmem:[%s956_s14] sm:$0xff] %v247_v16  ;;  %775 = vmatprep.mubr.f32.mxu0 %v247_v16  ;;  %280 = vst [vmem:[%s956_s14 + $0x8] sm:$0xff] %v248_v18  ;;  %v250_v29 = vmax.f32 %v985_v26, 0.0  ;;  %v251_v31 = vmax.f32 %v991_v28, 0.0  ;;  %v1002_v32 = vld [vmem:[%s950_s11 + $0xa0] sm:$0xff]  ;;  %v252_v36 = vmax.f32 %v1005_v33, 0.0 }
  0x14   : > { %295 = vst [vmem:[%s956_s14 + $0x80] sm:$0xff] %v263_v17  ;;  %799 = vmatprep.mubr.f32.mxu1 %v263_v17  ;;  %v266_v30 = vmax.f32 %v988_v27, 0.0  ;;  %v1008_v34 = vld [vmem:[%s950_s11 + $0xa8] sm:$0xff]  ;;  %296 = vst [vmem:[%s956_s14 + $0x88] sm:$0xff] %v264_v23  ;;  %v267_v35 = vmax.f32 %v1002_v32, 0.0  ;;  %v1023_v38 = vld [vmem:[%s950_s11 + $0x30] sm:$0xff] }
  0x15   : > { %281 = vst [vmem:[%s956_s14 + $0x10] sm:$0xff] %v249_v24  ;;  %297 = vst [vmem:[%s956_s14 + $0x90] sm:$0xff] %v265_v25  ;;  %v268_v37 = vmax.f32 %v1008_v34, 0.0  ;;  %v1026_v39 = vld [vmem:[%s950_s11 + $0xb0] sm:$0xff]  ;;  %v1029_v40 = vld [vmem:[%s950_s11 + $0x38] sm:$0xff]  ;;  %v253_v43 = vmax.f32 %v1023_v38, 0.0  ;;  %838 = vmatpush3.bf16.msra.mxu0 %v979_v22  ;;  %866 = vmatpush3.bf16.msra.mxu1 %v979_v22 }
  0x16   : > { %282 = vst [vmem:[%s956_s14 + $0x18] sm:$0xff] %v250_v29  ;;  %298 = vst [vmem:[%s956_s14 + $0x98] sm:$0xff] %v266_v30  ;;  %v269_v44 = vmax.f32 %v1026_v39, 0.0  ;;  %v254_v45 = vmax.f32 %v1029_v40, 0.0  ;;  %v1050_v46 = vld [vmem:[%s950_s11 + $0xb8] sm:$0xff]  ;;  %v1053_v47 = vld [vmem:[%s950_s11 + $0x40] sm:$0xff]  ;;  %840 = vmatprep.subr.bf16.mxu0 %v839_v49  ;;  %859 = vmatprep.subr.bf16.mxu1 %v839_v49 }
  0x17   : > { %283 = vst [vmem:[%s956_s14 + $0x20] sm:$0xff] %v251_v31  ;;  %v1056_v48 = vld [vmem:[%s950_s11 + $0xc0] sm:$0xff]  ;;  %299 = vst [vmem:[%s956_s14 + $0xa0] sm:$0xff] %v267_v35  ;;  %v270_v50 = vmax.f32 %v1050_v46, 0.0  ;;  %v255_v51 = vmax.f32 %v1053_v47, 0.0  ;;  %v1073_v53 = vld [vmem:[%s950_s11 + $0x48] sm:$0xff] }
  0x18   : > { %284 = vst [vmem:[%s956_s14 + $0x28] sm:$0xff] %v252_v36  ;;  %300 = vst [vmem:[%s956_s14 + $0xa8] sm:$0xff] %v268_v37  ;;  %v271_v52 = vmax.f32 %v1056_v48, 0.0  ;;  %v1076_v54 = vld [vmem:[%s950_s11 + $0xc8] sm:$0xff]  ;;  %v1079_v55 = vld [vmem:[%s950_s11 + $0x50] sm:$0xff]  ;;  %v256_v56 = vmax.f32 %v1073_v53, 0.0 }
  0x19   : > { %285 = vst [vmem:[%s956_s14 + $0x30] sm:$0xff] %v253_v43  ;;  %301 = vst [vmem:[%s956_s14 + $0xb0] sm:$0xff] %v269_v44  ;;  %v272_v57 = vmax.f32 %v1076_v54, 0.0  ;;  %v257_v58 = vmax.f32 %v1079_v55, 0.0  ;;  %v1094_v59 = vld [vmem:[%s950_s11 + $0xd0] sm:$0xff]  ;;  %v1097_v60 = vld [vmem:[%s950_s11 + $0x58] sm:$0xff]  ;;  %842 = vmatpush3.bf16.msra.mxu0 %v839_v49  ;;  %867 = vmatpush3.bf16.msra.mxu1 %v839_v49 }
  0x1a   : > { %286 = vst [vmem:[%s956_s14 + $0x38] sm:$0xff] %v254_v45  ;;  %v1100_v61 = vld [vmem:[%s950_s11 + $0xd8] sm:$0xff]  ;;  %302 = vst [vmem:[%s956_s14 + $0xb8] sm:$0xff] %v270_v50  ;;  %v273_v62 = vmax.f32 %v1094_v59, 0.0  ;;  %v258_v63 = vmax.f32 %v1097_v60, 0.0  ;;  %v1115_v1 = vld [vmem:[%s950_s11 + $0x60] sm:$0xff]  ;;  %844 = vmatprep.subr.bf16.mxu0 %v843_v10  ;;  %860 = vmatprep.subr.bf16.mxu1 %v843_v10 }
  0x1b   : > { %287 = vst [vmem:[%s956_s14 + $0x40] sm:$0xff] %v255_v51  ;;  %303 = vst [vmem:[%s956_s14 + $0xc0] sm:$0xff] %v271_v52  ;;  %v274_v0 = vmax.f32 %v1100_v61, 0.0  ;;  %v1118_v2 = vld [vmem:[%s950_s11 + $0xe0] sm:$0xff]  ;;  %v1121_v3 = vld [vmem:[%s950_s11 + $0x68] sm:$0xff]  ;;  %v259_v4 = vmax.f32 %v1115_v1, 0.0 }
  0x1c   : > { %288 = vst [vmem:[%s956_s14 + $0x48] sm:$0xff] %v256_v56  ;;  %304 = vst [vmem:[%s956_s14 + $0xc8] sm:$0xff] %v272_v57  ;;  %v275_v5 = vmax.f32 %v1118_v2, 0.0  ;;  %v260_v6 = vmax.f32 %v1121_v3, 0.0  ;;  %v1138_v7 = vld [vmem:[%s950_s11 + $0xe8] sm:$0xff]  ;;  %v1141_v8 = vld [vmem:[%s950_s11 + $0x70] sm:$0xff] }
  0x1d   : > { %289 = vst [vmem:[%s956_s14 + $0x50] sm:$0xff] %v257_v58  ;;  %v1144_v9 = vld [vmem:[%s950_s11 + $0xf0] sm:$0xff]  ;;  %305 = vst [vmem:[%s956_s14 + $0xd0] sm:$0xff] %v273_v62  ;;  %v276_v11 = vmax.f32 %v1138_v7, 0.0  ;;  %v261_v12 = vmax.f32 %v1141_v8, 0.0  ;;  %v230_v15 = vld [vmem:[%s950_s11 + $0x78] sm:$0xff]  ;;  %846 = vmatpush3.bf16.msra.mxu0 %v843_v10  ;;  %868 = vmatpush3.bf16.msra.mxu1 %v843_v10 }
  0x1e   : > { %290 = vst [vmem:[%s956_s14 + $0x58] sm:$0xff] %v258_v63  ;;  %306 = vst [vmem:[%s956_s14 + $0xd8] sm:$0xff] %v274_v0  ;;  %v277_v14 = vmax.f32 %v1144_v9, 0.0  ;;  %v246_v16 = vld [vmem:[%s950_s11 + $0xf8] sm:$0xff]  ;;  %v323_v17 = vld [vmem:[%s1315_s1 + $0x60] sm:$0xff]  ;;  %v262_v41 = vmax.f32 %v230_v15, 0.0  ;;  %s1245_s11 = scalar_lea.vmem %s1317_s3, %s938_s30 }
  0x1f   : > { %v324_v22 = vld [vmem:[%s1315_s1 + $0x68] sm:$0xff]  ;;  %291 = vst [vmem:[%s956_s14 + $0x60] sm:$0xff] %v259_v4  ;;  %307 = vst [vmem:[%s956_s14 + $0xe0] sm:$0xff] %v275_v5  ;;  %v278_v42 = vmax.f32 %v246_v16, 0.0  ;;  %v325_v8 = vld [vmem:[%s1315_s1 + $0x70] sm:$0xff] }
  0x20   : > { %292 = vst [vmem:[%s956_s14 + $0x68] sm:$0xff] %v260_v6  ;;  %308 = vst [vmem:[%s956_s14 + $0xe8] sm:$0xff] %v276_v11  ;;  %v847_v7 = vpack.c.bf16 %v324_v22, %v323_v17  ;;  %v326_v9 = vld [vmem:[%s1315_s1 + $0x78] sm:$0xff]  ;;  %v1239_v13 = vld [vmem:[%s1316_s2] ss:$0 sm:$0xff] }
  0x21   : > { %293 = vst [vmem:[%s956_s14 + $0x70] sm:$0xff] %v261_v12  ;;  %309 = vst [vmem:[%s956_s14 + $0xf0] sm:$0xff] %v277_v14  ;;  %v851_v15 = vpack.c.bf16 %v326_v9, %v325_v8 }
  0x22   : > { %294 = vst [vmem:[%s956_s14 + $0x78] sm:$0xff] %v262_v41  ;;  %310 = vst [vmem:[%s956_s14 + $0xf8] sm:$0xff] %v278_v42  ;;  %848 = vmatprep.subr.bf16.mxu0 %v847_v7  ;;  %861 = vmatprep.subr.bf16.mxu1 %v847_v7 }
  0x23   : > { %850 = vmatpush3.bf16.msra.mxu0 %v847_v7  ;;  %869 = vmatpush3.bf16.msra.mxu1 %v847_v7 }
  0x24   : > { %852 = vmatprep.subr.bf16.mxu0 %v851_v15  ;;  %862 = vmatprep.subr.bf16.mxu1 %v851_v15 }
  0x27   : > { %854 = vmatpush3.bf16.msra.mxu0 %v851_v15  ;;  %870 = vmatpush3.bf16.msra.mxu1 %v851_v15 }
  0x2a   : > { %776 = vmatmul.mubr.f32.vlgmr.msra.gmra.mrb[0].mxu0 %v248_v18  ;;  %800 = vmatmul.mubr.f32.vlgmr.msra.gmra.mrb[0].mxu1 %v264_v23 }
  0x2b   : > { %778 = vmatprep.mubr.f32.mxu0 %v249_v24  ;;  %802 = vmatprep.mubr.f32.mxu1 %v265_v25 }
  0x2e   : > { %779 = vmatmul.mubr.f32.gmra.mrb[2].mxu0 %v250_v29  ;;  %803 = vmatmul.mubr.f32.gmra.mrb[2].mxu1 %v266_v30 }
  0x2f   : > { %781 = vmatprep.mubr.f32.mxu0 %v251_v31  ;;  %805 = vmatprep.mubr.f32.mxu1 %v267_v35 }
  0x32   : > { %782 = vmatmul.mubr.f32.gmra.mrb[4].mxu0 %v252_v36  ;;  %806 = vmatmul.mubr.f32.gmra.mrb[4].mxu1 %v268_v37 }
  0x33   : > { %784 = vmatprep.mubr.f32.mxu0 %v253_v43  ;;  %808 = vmatprep.mubr.f32.mxu1 %v269_v44 }
  0x36   : > { %785 = vmatmul.mubr.f32.gmra.mrb[6].mxu0 %v254_v45  ;;  %809 = vmatmul.mubr.f32.gmra.mrb[6].mxu1 %v270_v50 }
  0x37   : > { %787 = vmatprep.mubr.f32.mxu0 %v255_v51  ;;  %811 = vmatprep.mubr.f32.mxu1 %v271_v52 }
  0x3a   : > { %788 = vmatmul.mubr.f32.gmra.mrb[8].mxu0 %v256_v56  ;;  %812 = vmatmul.mubr.f32.gmra.mrb[8].mxu1 %v272_v57 }
  0x3b   : > { %790 = vmatprep.mubr.f32.mxu0 %v257_v58  ;;  %814 = vmatprep.mubr.f32.mxu1 %v273_v62 }
  0x3e   : > { %791 = vmatmul.mubr.f32.gmra.mrb[10].mxu0 %v258_v63  ;;  %815 = vmatmul.mubr.f32.gmra.mrb[10].mxu1 %v274_v0 }
  0x3f   : > { %793 = vmatprep.mubr.f32.mxu0 %v259_v4  ;;  %817 = vmatprep.mubr.f32.mxu1 %v275_v5 }
  0x42   : > { %794 = vmatmul.mubr.f32.gmra.mrb[12].mxu0 %v260_v6  ;;  %818 = vmatmul.mubr.f32.gmra.mrb[12].mxu1 %v276_v11 }
  0x43   : > { %796 = vmatprep.mubr.f32.mxu0 %v261_v12  ;;  %820 = vmatprep.mubr.f32.mxu1 %v277_v14 }
  0x46   : > { %797 = vmatmul.mubr.f32.gmra.mrb[14].mxu0 %v262_v41  ;;  %821 = vmatmul.mubr.f32.gmra.mrb[14].mxu1 %v278_v42 }
  0xfd   : > { %v777_v18 = vpop.f32.mrb[0].mxu0  ;;  %v801_v19 = vpop.f32.mrb[0].mxu1 }
  0xfe   : > { %v406_v20 = vadd.f32 %v777_v18, %v1239_v13  ;;  %v486_v21 = vadd.f32 %v801_v19, %v1239_v13  ;;  %v400_v23 = vpop.f32.mrb[1].mxu0  ;;  %v480_v24 = vpop.f32.mrb[1].mxu1 }
  0xff   : > { %v401_v25 = vadd.f32 %v1239_v13, %v400_v23  ;;  %v481_v26 = vadd.f32 %v1239_v13, %v480_v24 }
 0x100   : > { %560 = vst [vmem:[%s1245_s11 + $0x8] sm:$0xff] %v406_v20  ;;  %576 = vst [vmem:[%s1245_s11 + $0x88] sm:$0xff] %v486_v21 }
 0x101   : > { %559 = vst [vmem:[%s1245_s11] sm:$0xff] %v401_v25  ;;  %575 = vst [vmem:[%s1245_s11 + $0x80] sm:$0xff] %v481_v26  ;;  %v780_v27 = vpop.f32.mrb[2].mxu0  ;;  %v804_v28 = vpop.f32.mrb[2].mxu1 }
 0x102   : > { %v416_v29 = vadd.f32 %v780_v27, %v1239_v13  ;;  %v496_v30 = vadd.f32 %v804_v28, %v1239_v13  ;;  %v410_v31 = vpop.f32.mrb[3].mxu0  ;;  %v490_v32 = vpop.f32.mrb[3].mxu1 }
 0x103   : > { %v411_v33 = vadd.f32 %v1239_v13, %v410_v31  ;;  %v491_v34 = vadd.f32 %v1239_v13, %v490_v32 }
 0x104   : > { %562 = vst [vmem:[%s1245_s11 + $0x18] sm:$0xff] %v416_v29  ;;  %578 = vst [vmem:[%s1245_s11 + $0x98] sm:$0xff] %v496_v30 }
 0x105   : > { %561 = vst [vmem:[%s1245_s11 + $0x10] sm:$0xff] %v411_v33  ;;  %577 = vst [vmem:[%s1245_s11 + $0x90] sm:$0xff] %v491_v34  ;;  %v783_v35 = vpop.f32.mrb[4].mxu0  ;;  %v807_v36 = vpop.f32.mrb[4].mxu1 }
 0x106   : > { %v426_v37 = vadd.f32 %v783_v35, %v1239_v13  ;;  %v506_v38 = vadd.f32 %v807_v36, %v1239_v13  ;;  %v420_v39 = vpop.f32.mrb[5].mxu0  ;;  %v500_v40 = vpop.f32.mrb[5].mxu1 }
 0x107   : > { %v421_v43 = vadd.f32 %v1239_v13, %v420_v39  ;;  %v501_v44 = vadd.f32 %v1239_v13, %v500_v40 }
 0x108   : > { %564 = vst [vmem:[%s1245_s11 + $0x28] sm:$0xff] %v426_v37  ;;  %580 = vst [vmem:[%s1245_s11 + $0xa8] sm:$0xff] %v506_v38 }
 0x109   : > { %563 = vst [vmem:[%s1245_s11 + $0x20] sm:$0xff] %v421_v43  ;;  %579 = vst [vmem:[%s1245_s11 + $0xa0] sm:$0xff] %v501_v44  ;;  %v786_v45 = vpop.f32.mrb[6].mxu0  ;;  %v810_v46 = vpop.f32.mrb[6].mxu1 }
 0x10a   : > { %v436_v47 = vadd.f32 %v786_v45, %v1239_v13  ;;  %v516_v48 = vadd.f32 %v810_v46, %v1239_v13  ;;  %v430_v49 = vpop.f32.mrb[7].mxu0  ;;  %v510_v50 = vpop.f32.mrb[7].mxu1 }
 0x10b   : > { %v431_v51 = vadd.f32 %v1239_v13, %v430_v49  ;;  %v511_v52 = vadd.f32 %v1239_v13, %v510_v50 }
 0x10c   : > { %566 = vst [vmem:[%s1245_s11 + $0x38] sm:$0xff] %v436_v47  ;;  %582 = vst [vmem:[%s1245_s11 + $0xb8] sm:$0xff] %v516_v48 }
 0x10d   : > { %565 = vst [vmem:[%s1245_s11 + $0x30] sm:$0xff] %v431_v51  ;;  %581 = vst [vmem:[%s1245_s11 + $0xb0] sm:$0xff] %v511_v52  ;;  %v789_v53 = vpop.f32.mrb[8].mxu0  ;;  %v813_v54 = vpop.f32.mrb[8].mxu1 }
 0x10e   : > { %v446_v55 = vadd.f32 %v789_v53, %v1239_v13  ;;  %v526_v56 = vadd.f32 %v813_v54, %v1239_v13  ;;  %v440_v57 = vpop.f32.mrb[9].mxu0  ;;  %v520_v58 = vpop.f32.mrb[9].mxu1 }
 0x10f   : > { %v441_v59 = vadd.f32 %v1239_v13, %v440_v57  ;;  %v521_v60 = vadd.f32 %v1239_v13, %v520_v58 }
 0x110   : > { %568 = vst [vmem:[%s1245_s11 + $0x48] sm:$0xff] %v446_v55  ;;  %584 = vst [vmem:[%s1245_s11 + $0xc8] sm:$0xff] %v526_v56 }
 0x111   : > { %567 = vst [vmem:[%s1245_s11 + $0x40] sm:$0xff] %v441_v59  ;;  %583 = vst [vmem:[%s1245_s11 + $0xc0] sm:$0xff] %v521_v60  ;;  %v792_v61 = vpop.f32.mrb[10].mxu0  ;;  %v816_v62 = vpop.f32.mrb[10].mxu1 }
 0x112   : > { %v456_v63 = vadd.f32 %v792_v61, %v1239_v13  ;;  %v536_v0 = vadd.f32 %v816_v62, %v1239_v13  ;;  %v450_v1 = vpop.f32.mrb[11].mxu0  ;;  %v530_v2 = vpop.f32.mrb[11].mxu1 }
 0x113   : > { %v451_v3 = vadd.f32 %v1239_v13, %v450_v1  ;;  %v531_v4 = vadd.f32 %v1239_v13, %v530_v2 }
 0x114   : > { %570 = vst [vmem:[%s1245_s11 + $0x58] sm:$0xff] %v456_v63  ;;  %586 = vst [vmem:[%s1245_s11 + $0xd8] sm:$0xff] %v536_v0 }
 0x115   : > { %569 = vst [vmem:[%s1245_s11 + $0x50] sm:$0xff] %v451_v3  ;;  %585 = vst [vmem:[%s1245_s11 + $0xd0] sm:$0xff] %v531_v4  ;;  %v795_v5 = vpop.f32.mrb[12].mxu0  ;;  %v819_v6 = vpop.f32.mrb[12].mxu1 }
 0x116   : > { %v466_v10 = vadd.f32 %v795_v5, %v1239_v13  ;;  %v546_v11 = vadd.f32 %v819_v6, %v1239_v13  ;;  %v460_v12 = vpop.f32.mrb[13].mxu0  ;;  %v540_v14 = vpop.f32.mrb[13].mxu1 }
 0x117   : > { %v461_v16 = vadd.f32 %v1239_v13, %v460_v12  ;;  %v541_v17 = vadd.f32 %v1239_v13, %v540_v14 }
 0x118   : > { %572 = vst [vmem:[%s1245_s11 + $0x68] sm:$0xff] %v466_v10  ;;  %588 = vst [vmem:[%s1245_s11 + $0xe8] sm:$0xff] %v546_v11 }
 0x119   : > { %571 = vst [vmem:[%s1245_s11 + $0x60] sm:$0xff] %v461_v16  ;;  %587 = vst [vmem:[%s1245_s11 + $0xe0] sm:$0xff] %v541_v17  ;;  %v798_v22 = vpop.f32.mrb[14].mxu0  ;;  %v822_v41 = vpop.f32.mrb[14].mxu1 }
 0x11a   : > { %v476_v42 = vadd.f32 %v798_v22, %v1239_v13  ;;  %v556_v7 = vadd.f32 %v822_v41, %v1239_v13  ;;  %v470_v8 = vpop.f32.mrb[15].mxu0  ;;  %v550_v9 = vpop.f32.mrb[15].mxu1 }
 0x11b   : > { %v471_v15 = vadd.f32 %v1239_v13, %v470_v8  ;;  %v551_v18 = vadd.f32 %v1239_v13, %v550_v9 }
 0x11c   : > { %574 = vst [vmem:[%s1245_s11 + $0x78] sm:$0xff] %v476_v42  ;;  %590 = vst [vmem:[%s1245_s11 + $0xf8] sm:$0xff] %v556_v7 }
 0x11d   : > { %573 = vst [vmem:[%s1245_s11 + $0x70] sm:$0xff] %v471_v15  ;;  %589 = vst [vmem:[%s1245_s11 + $0xf0] sm:$0xff] %v551_v18 }
 0x11e PF: > { %s15_s15 = sadd.s32 1, %s885_s15  }
 0x11f   : > { %p12_p4 = scmp.ge.s32.totalorder %s15_s15, 4  }
 0x121   :  { %14 = sbr.rel (!%p12_p4) target bundleno = 1 (0x1), region = 74 }

// kernel: bwgnn_em_forward.5
= control target key start
LH: loop header
LB: loop body
LE: loop exit
PB: predicated region body
PF: predicated region fallthrough
CT: control target
= control target key end

     0   :  { %s2860_s18 = smov 0   ;;  %s2862_s19 = smov 0   ;;  %s3276_s0 = inlined_call_operand.vmem [shape: bf16[512,512], index: 0, kind: input, shape index: {}]   ;;  %s3277_s1 = inlined_call_operand.vmem [shape: bf16[512,128], index: 1, kind: input, shape index: {}]   ;;  %s3278_s2 = inlined_call_operand.vmem [shape: f32[128,128], index: 2, kind: input, shape index: {}]   ;;  %s3279_s3 = inlined_call_operand.vmem [shape: f32[512,128], index: 3, kind: input, shape index: {}, may-alias: {3,5}]   ;;  %s3280_s4 = inlined_call_operand.vmem [shape: bf16[512,128], index: 4, kind: output, shape index: {0}]   ;;  %s3281_s5 = inlined_call_operand.vmem [shape: f32[512,128], index: 5, kind: output, shape index: {1}, may-alias: {3,5}]  }
   0x1   :  { %s2864_s20 = smov 0  }
   0x2 LB: > { %s28_s21 = sadd.s32 1, %s2824_s19  ;;  %p2018_p0 = scmp.ge.s32.totalorder %s2828_s20, 1  ;;  %s2828_s20 = sphi %s2864_s20, %s16_s20   ;;  %s2824_s19 = sphi %s2862_s19, %s3283_s19   ;;  %s2820_s18 = sphi %s2860_s18, %s3282_s18  }
   0x3   : > { %p30_p1 = scmp.ge.s32.totalorder %s28_s21, 2  ;;  %p222_p2 = scmp.lt.s32.totalorder %s2828_s20, 3 }
   0x5   : > { %s3285_s21 = smov (%p30_p1, %s28_s21), 0  ;;  %p223_p3 = pnand %p2018_p0, %p222_p2 }
   0x6   : > { %v2678_v0 = vld [vmem:[%s3277_s1 + $0x40] sm:$0xff] (!%p223_p3)   ;;  %s2019_s24 = sshll.u32 (!%p223_p3), %s2820_s18, 5  ;;  %v2680_v2 = vld [vmem:[%s3277_s1 + $0x48] sm:$0xff] (!%p223_p3)   ;;  %v2682_v4 = vld [vmem:[%s3277_s1 + $0x50] sm:$0xff] (!%p223_p3)  }
   0x7   : > { %226 = sbr.rel (%p223_p3) target bundleno = 630 (0x276), region = 36  ;;  %v2679_v1 = vld [vmem:[%s3277_s1] sm:$0xff] (!%p223_p3)   ;;  %2638 = vmatprep.subr.bf16.mxu1 (!%p223_p3), %v2678_v0  ;;  %2286 = vmatprep.subr.bf16.mxu0 (!%p223_p3), %v2678_v0  ;;  %v2681_v3 = vld [vmem:[%s3277_s1 + $0x8] sm:$0xff] (!%p223_p3)   ;;  %p267_p4 = scmp.lt.s32.totalorder (!%p223_p3), %s2019_s24, 63  ;;  %v2683_v5 = vld [vmem:[%s3277_s1 + $0x10] sm:$0xff] (!%p223_p3)  }
   0x8   : > { %2646 = vmatpush3.bf16.msra.mxu1 (!%p223_p3), %v2679_v1  ;;  %2287 = vmatpush3.bf16.msra.mxu0 (!%p223_p3), %v2679_v1  ;;  %v2684_v6 = vld [vmem:[%s3277_s1 + $0x58] sm:$0xff] (!%p223_p3)   ;;  %v2686_v8 = vld [vmem:[%s3277_s1 + $0x60] sm:$0xff] (!%p223_p3)   ;;  %v2688_v10 = vld [vmem:[%s3277_s1 + $0x68] sm:$0xff] (!%p223_p3)  }
   0x9   : > { %2639 = vmatprep.subr.bf16.mxu1 (!%p223_p3), %v2680_v2  ;;  %2288 = vmatprep.subr.bf16.mxu0 (!%p223_p3), %v2680_v2  ;;  %v2685_v7 = vld [vmem:[%s3277_s1 + $0x18] sm:$0xff] (!%p223_p3)   ;;  %v2687_v9 = vld [vmem:[%s3277_s1 + $0x20] sm:$0xff] (!%p223_p3)   ;;  %v2689_v12 = vld [vmem:[%s3277_s1 + $0x28] sm:$0xff] (!%p223_p3)  }
   0xa   : > { %v2690_v13 = vld [vmem:[%s3277_s1 + $0x70] sm:$0xff] (!%p223_p3)   ;;  %v2692_v15 = vld [vmem:[%s3277_s1 + $0x78] sm:$0xff] (!%p223_p3)   ;;  %v2697_v17 = vld [vmem:[%s3277_s1 + $0xc0] sm:$0xff] (!%p223_p3)  }
   0xb   : > { %v2691_v14 = vld [vmem:[%s3277_s1 + $0x30] sm:$0xff] (!%p223_p3)   ;;  %v2693_v16 = vld [vmem:[%s3277_s1 + $0x38] sm:$0xff] (!%p223_p3)   ;;  %v2698_v19 = vld [vmem:[%s3277_s1 + $0x80] sm:$0xff] (!%p223_p3)  }
   0xc   : > { %2647 = vmatpush3.bf16.msra.mxu1 (!%p223_p3), %v2681_v3  ;;  %2289 = vmatpush3.bf16.msra.mxu0 (!%p223_p3), %v2681_v3  ;;  %v2699_v21 = vld [vmem:[%s3277_s1 + $0xc8] sm:$0xff] (!%p223_p3)   ;;  %v2704_v24 = vld [vmem:[%s3277_s1 + $0xd0] sm:$0xff] (!%p223_p3)   ;;  %v2706_v28 = vld [vmem:[%s3277_s1 + $0xd8] sm:$0xff] (!%p223_p3)  }
   0xd   : > { %2640 = vmatprep.subr.bf16.mxu1 (!%p223_p3), %v2682_v4  ;;  %2290 = vmatprep.subr.bf16.mxu0 (!%p223_p3), %v2682_v4  ;;  %v2700_v22 = vld [vmem:[%s3277_s1 + $0x88] sm:$0xff] (!%p223_p3)   ;;  %v2705_v25 = vld [vmem:[%s3277_s1 + $0x90] sm:$0xff] (!%p223_p3)   ;;  %v2707_v31 = vld [vmem:[%s3277_s1 + $0x98] sm:$0xff] (!%p223_p3)  }
   0xe   : > { %s3287_s24 = smov (!%p267_p4, %s2019_s24), 63  ;;  %v2711_v33 = vld [vmem:[%s3277_s1 + $0xe0] sm:$0xff]   ;;  %v2713_v38 = vld [vmem:[%s3277_s1 + $0xe8] sm:$0xff]   ;;  %v2718_v41 = vld [vmem:[%s3277_s1 + $0xf0] sm:$0xff]  }
   0xf   : > { %s2158_s14 = sshll.u32 %s3287_s24, 4  ;;  %v2712_v36 = vld [vmem:[%s3277_s1 + $0xa0] sm:$0xff]   ;;  %v2714_v39 = vld [vmem:[%s3277_s1 + $0xa8] sm:$0xff]   ;;  %v2719_v44 = vld [vmem:[%s3277_s1 + $0xb0] sm:$0xff]   ;;  %s2023_s25 = sshll.u32 %s3287_s24, 3 }
  0x10   : > { %2648 = vmatpush3.bf16.msra.mxu1 %v2683_v5  ;;  %2291 = vmatpush3.bf16.msra.mxu0 %v2683_v5  ;;  %s2911_s22 = scalar_lea.vmem %s3276_s0, %s2158_s14  ;;  %v2720_v46 = vld [vmem:[%s3277_s1 + $0xf8] sm:$0xff]   ;;  %s3146_s28 = scalar_lea.vmem %s3279_s3, %s2023_s25 }
  0x11   : > { %2641 = vmatprep.subr.bf16.mxu1 %v2684_v6  ;;  %2292 = vmatprep.subr.bf16.mxu0 %v2684_v6  ;;  %v2696_v11 = vld [vmem:[%s2911_s22 + $0x184] ss:$16 sps:$4 sm:$0xff]   ;;  %v2694_v18 = vld [vmem:[%s2911_s22 + $0x180] ss:$16 sps:$4 sm:$0xff]   ;;  %v2727_v45 = vld [vmem:[%s2911_s22 + $0xc] ss:$16 sps:$4 sm:$0xff]   ;;  %s3208_s6 = scalar_lea.vmem %s3281_s5, %s2023_s25 }
  0x12   : > { %1137 = vmatprep.mubr.bf16.mxu1 %v2696_v11  ;;  %v2701_v20 = vld [vmem:[%s2911_s22 + $0x1a4] ss:$16 sps:$4 sm:$0xff]   ;;  %v2703_v23 = vld [vmem:[%s2911_s22 + $0x1a0] ss:$16 sps:$4 sm:$0xff]   ;;  %v2721_v47 = vld [vmem:[%s3277_s1 + $0xb8] sm:$0xff]  }
  0x13   : > { %v2722_v26 = vld [vmem:[%s2911_s22] ss:$16 sps:$4 sm:$0xff]   ;;  %v2724_v27 = vld [vmem:[%s2911_s22 + $0x4] ss:$16 sps:$4 sm:$0xff]   ;;  %v2725_v48 = vld [vmem:[%s2911_s22 + $0x8] ss:$16 sps:$4 sm:$0xff]  }
  0x14   : > { %2649 = vmatpush3.bf16.msra.mxu1 %v2685_v7  ;;  %2293 = vmatpush3.bf16.msra.mxu0 %v2685_v7  ;;  %v2708_v29 = vld [vmem:[%s2911_s22 + $0x1c4] ss:$16 sps:$4 sm:$0xff]   ;;  %v2710_v32 = vld [vmem:[%s2911_s22 + $0x1c0] ss:$16 sps:$4 sm:$0xff]   ;;  %v2730_v51 = vld [vmem:[%s2911_s22 + $0x2c] ss:$16 sps:$4 sm:$0xff]  }
  0x15   : > { %2642 = vmatprep.subr.bf16.mxu1 %v2686_v8  ;;  %2294 = vmatprep.subr.bf16.mxu0 %v2686_v8  ;;  %v2728_v30 = vld [vmem:[%s2911_s22 + $0x24] ss:$16 sps:$4 sm:$0xff]   ;;  %v2732_v34 = vld [vmem:[%s2911_s22 + $0x20] ss:$16 sps:$4 sm:$0xff]   ;;  %v2733_v53 = vld [vmem:[%s2911_s22 + $0x28] ss:$16 sps:$4 sm:$0xff]  }
  0x16   : > { %1041 = vmatprep.mubr.bf16.mxu0 %v2724_v27  ;;  %v2734_v35 = vld [vmem:[%s2911_s22 + $0x44] ss:$16 sps:$4 sm:$0xff]   ;;  %v2717_v40 = vld [vmem:[%s2911_s22 + $0x1e0] ss:$16 sps:$4 sm:$0xff]   ;;  %v2736_v55 = vld [vmem:[%s2911_s22 + $0x4c] ss:$16 sps:$4 sm:$0xff]  }
  0x17   : > { %v2715_v37 = vld [vmem:[%s2911_s22 + $0x1e4] ss:$16 sps:$4 sm:$0xff]   ;;  %v2738_v42 = vld [vmem:[%s2911_s22 + $0x40] ss:$16 sps:$4 sm:$0xff]   ;;  %v2739_v57 = vld [vmem:[%s2911_s22 + $0x48] ss:$16 sps:$4 sm:$0xff]  }
  0x18   : > { %2650 = vmatpush3.bf16.msra.mxu1 %v2687_v9  ;;  %2295 = vmatpush3.bf16.msra.mxu0 %v2687_v9  ;;  %v2740_v43 = vld [vmem:[%s2911_s22 + $0x64] ss:$16 sps:$4 sm:$0xff]   ;;  %v2744_v49 = vld [vmem:[%s2911_s22 + $0x60] ss:$16 sps:$4 sm:$0xff]   ;;  %v2742_v59 = vld [vmem:[%s2911_s22 + $0x6c] ss:$16 sps:$4 sm:$0xff]  }
  0x19   : > { %2643 = vmatprep.subr.bf16.mxu1 %v2688_v10  ;;  %2296 = vmatprep.subr.bf16.mxu0 %v2688_v10  ;;  %v2746_v50 = vld [vmem:[%s2911_s22 + $0x84] ss:$16 sps:$4 sm:$0xff]   ;;  %v2750_v52 = vld [vmem:[%s2911_s22 + $0x80] ss:$16 sps:$4 sm:$0xff]   ;;  %v2745_v61 = vld [vmem:[%s2911_s22 + $0x68] ss:$16 sps:$4 sm:$0xff]  }
  0x1a   : > { %v2752_v54 = vld [vmem:[%s2911_s22 + $0xa4] ss:$16 sps:$4 sm:$0xff]   ;;  %v2756_v56 = vld [vmem:[%s2911_s22 + $0xa0] ss:$16 sps:$4 sm:$0xff]   ;;  %v2748_v63 = vld [vmem:[%s2911_s22 + $0x8c] ss:$16 sps:$4 sm:$0xff]  }
  0x1b   : > { %v2758_v58 = vld [vmem:[%s2911_s22 + $0xc4] ss:$16 sps:$4 sm:$0xff]   ;;  %v2762_v60 = vld [vmem:[%s2911_s22 + $0xc0] ss:$16 sps:$4 sm:$0xff]   ;;  %v2751_v1 = vld [vmem:[%s2911_s22 + $0x88] ss:$16 sps:$4 sm:$0xff]  }
  0x1c   : > { %2651 = vmatpush3.bf16.msra.mxu1 %v2689_v12  ;;  %2297 = vmatpush3.bf16.msra.mxu0 %v2689_v12  ;;  %v2764_v62 = vld [vmem:[%s2911_s22 + $0xe4] ss:$16 sps:$4 sm:$0xff]   ;;  %v2768_v0 = vld [vmem:[%s2911_s22 + $0xe0] ss:$16 sps:$4 sm:$0xff]   ;;  %v2754_v3 = vld [vmem:[%s2911_s22 + $0xac] ss:$16 sps:$4 sm:$0xff]  }
  0x1d   : > { %2644 = vmatprep.subr.bf16.mxu1 %v2690_v13  ;;  %2298 = vmatprep.subr.bf16.mxu0 %v2690_v13  ;;  %v2770_v2 = vld [vmem:[%s2911_s22 + $0x104] ss:$16 sps:$4 sm:$0xff]   ;;  %v2774_v4 = vld [vmem:[%s2911_s22 + $0x100] ss:$16 sps:$4 sm:$0xff]   ;;  %v2757_v5 = vld [vmem:[%s2911_s22 + $0xa8] ss:$16 sps:$4 sm:$0xff]  }
  0x1e   : > { %v2776_v6 = vld [vmem:[%s2911_s22 + $0x124] ss:$16 sps:$4 sm:$0xff]   ;;  %v2760_v7 = vld [vmem:[%s2911_s22 + $0xcc] ss:$16 sps:$4 sm:$0xff]   ;;  %v2780_v8 = vld [vmem:[%s2911_s22 + $0x120] ss:$16 sps:$4 sm:$0xff]  }
  0x1f   : > { %v2763_v9 = vld [vmem:[%s2911_s22 + $0xc8] ss:$16 sps:$4 sm:$0xff]   ;;  %v2782_v10 = vld [vmem:[%s2911_s22 + $0x144] ss:$16 sps:$4 sm:$0xff]   ;;  %v2766_v11 = vld [vmem:[%s2911_s22 + $0xec] ss:$16 sps:$4 sm:$0xff]  }
  0x20   : > { %2652 = vmatpush3.bf16.msra.mxu1 %v2691_v14  ;;  %2299 = vmatpush3.bf16.msra.mxu0 %v2691_v14  ;;  %v2786_v12 = vld [vmem:[%s2911_s22 + $0x140] ss:$16 sps:$4 sm:$0xff]   ;;  %v2769_v13 = vld [vmem:[%s2911_s22 + $0xe8] ss:$16 sps:$4 sm:$0xff]   ;;  %v2788_v14 = vld [vmem:[%s2911_s22 + $0x164] ss:$16 sps:$4 sm:$0xff]  }
  0x21   : > { %2645 = vmatprep.subr.bf16.mxu1 %v2692_v15  ;;  %2300 = vmatprep.subr.bf16.mxu0 %v2692_v15  ;;  %v2772_v15 = vld [vmem:[%s2911_s22 + $0x10c] ss:$16 sps:$4 sm:$0xff]   ;;  %v1626_v27 = vld [vmem:[%s3278_s2 + $0x20] sm:$0xff] }
  0x24   : > { %2653 = vmatpush3.bf16.msra.mxu1 %v2693_v16  ;;  %2301 = vmatpush3.bf16.msra.mxu0 %v2693_v16  ;;  %v2792_v16 = vld [vmem:[%s2911_s22 + $0x160] ss:$16 sps:$4 sm:$0xff]  }
  0x25   : > { %2398 = vmatprep.subr.bf16.mxu1 %v2697_v17  ;;  %v2775_v17 = vld [vmem:[%s2911_s22 + $0x108] ss:$16 sps:$4 sm:$0xff]  }
  0x27   : > { %1138 = vmatmul.mubr.bf16.vlgmr.msra.gmra.mrb[0].mxu1 %v2694_v18  ;;  %1042 = vmatmul.mubr.bf16.vlgmr.msra.gmra.mrb[0].mxu0 %v2722_v26  ;;  %v2778_v18 = vld [vmem:[%s2911_s22 + $0x12c] ss:$16 sps:$4 sm:$0xff]  }
  0x28   : > { %2399 = vmatpush3.bf16.msra.mxu1 %v2698_v19  ;;  %1145 = vmatprep.mubr.bf16.mxu1 %v2701_v20  ;;  %v1622_v19 = vld [vmem:[%s3278_s2] sm:$0xff]  ;;  %v1623_v20 = vld [vmem:[%s3278_s2 + $0x8] sm:$0xff] }
  0x29   : > { %2400 = vmatprep.subr.bf16.mxu1 %v2699_v21  ;;  %1049 = vmatprep.mubr.bf16.mxu0 %v2728_v30  ;;  %v2606_v21 = vpack.c.bf16 %v1623_v20, %v1622_v19  ;;  %v2787_v30 = vld [vmem:[%s2911_s22 + $0x148] ss:$16 sps:$4 sm:$0xff]  }
  0x2b   : > { %2607 = vmatprep.subr.bf16.mxu0 %v2606_v21 }
  0x2c   : > { %2401 = vmatpush3.bf16.msra.mxu1 %v2700_v22  ;;  %2609 = vmatpush3.bf16.msra.mxu0 %v2606_v21  ;;  %v2781_v22 = vld [vmem:[%s2911_s22 + $0x128] ss:$16 sps:$4 sm:$0xff]  }
  0x2d   : > { %2402 = vmatprep.subr.bf16.mxu1 %v2704_v24  ;;  %v1624_v24 = vld [vmem:[%s3278_s2 + $0x10] sm:$0xff] }
  0x2f   : > { %1146 = vmatmul.mubr.bf16.gmra.mrb[4].mxu1 %v2703_v23  ;;  %1050 = vmatmul.mubr.bf16.gmra.mrb[4].mxu0 %v2732_v34  ;;  %v2784_v23 = vld [vmem:[%s2911_s22 + $0x14c] ss:$16 sps:$4 sm:$0xff]  }
  0x30   : > { %2403 = vmatpush3.bf16.msra.mxu1 %v2705_v25  ;;  %1153 = vmatprep.mubr.bf16.mxu1 %v2708_v29  ;;  %v1625_v25 = vld [vmem:[%s3278_s2 + $0x18] sm:$0xff] }
  0x31   : > { %2404 = vmatprep.subr.bf16.mxu1 %v2706_v28  ;;  %1057 = vmatprep.mubr.bf16.mxu0 %v2734_v35  ;;  %v2610_v26 = vpack.c.bf16 %v1625_v25, %v1624_v24  ;;  %v1627_v28 = vld [vmem:[%s3278_s2 + $0x28] sm:$0xff]  ;;  %v1630_v35 = vld [vmem:[%s3278_s2 + $0x40] sm:$0xff] }
  0x32   : > { %v2614_v29 = vpack.c.bf16 %v1627_v28, %v1626_v27 }
  0x33   : > { %2611 = vmatprep.subr.bf16.mxu0 %v2610_v26 }
  0x34   : > { %2405 = vmatpush3.bf16.msra.mxu1 %v2707_v31  ;;  %2613 = vmatpush3.bf16.msra.mxu0 %v2610_v26  ;;  %v2790_v31 = vld [vmem:[%s2911_s22 + $0x16c] ss:$16 sps:$4 sm:$0xff]  }
  0x35   : > { %2406 = vmatprep.subr.bf16.mxu1 %v2711_v33  ;;  %2615 = vmatprep.subr.bf16.mxu0 %v2614_v29  ;;  %v1629_v33 = vld [vmem:[%s3278_s2 + $0x38] sm:$0xff] }
  0x37   : > { %1154 = vmatmul.mubr.bf16.gmra.mrb[8].mxu1 %v2710_v32  ;;  %1058 = vmatmul.mubr.bf16.gmra.mrb[8].mxu0 %v2738_v42  ;;  %v1628_v32 = vld [vmem:[%s3278_s2 + $0x30] sm:$0xff] }
  0x38   : > { %2407 = vmatpush3.bf16.msra.mxu1 %v2712_v36  ;;  %1161 = vmatprep.mubr.bf16.mxu1 %v2715_v37  ;;  %v2618_v34 = vpack.c.bf16 %v1629_v33, %v1628_v32  ;;  %v1631_v36 = vld [vmem:[%s3278_s2 + $0x48] sm:$0xff] }
  0x39   : > { %2408 = vmatprep.subr.bf16.mxu1 %v2713_v38  ;;  %1065 = vmatprep.mubr.bf16.mxu0 %v2740_v43  ;;  %v2622_v37 = vpack.c.bf16 %v1631_v36, %v1630_v35  ;;  %v2793_v38 = vld [vmem:[%s2911_s22 + $0x168] ss:$16 sps:$4 sm:$0xff]   ;;  %v1634_v43 = vld [vmem:[%s3278_s2 + $0x60] sm:$0xff] }
  0x3a   : > { %2617 = vmatpush3.bf16.msra.mxu0 %v2614_v29 }
  0x3b   : > { %2619 = vmatprep.subr.bf16.mxu0 %v2618_v34 }
  0x3c   : > { %2409 = vmatpush3.bf16.msra.mxu1 %v2714_v39  ;;  %v2794_v39 = vld [vmem:[%s2911_s22 + $0x18c] ss:$16 sps:$4 sm:$0xff]  }
  0x3d   : > { %2410 = vmatprep.subr.bf16.mxu1 %v2718_v41  ;;  %v1633_v41 = vld [vmem:[%s3278_s2 + $0x58] sm:$0xff] }
  0x3e   : > { %2621 = vmatpush3.bf16.msra.mxu0 %v2618_v34 }
  0x3f   : > { %1162 = vmatmul.mubr.bf16.gmra.mrb[12].mxu1 %v2717_v40  ;;  %1066 = vmatmul.mubr.bf16.gmra.mrb[12].mxu0 %v2744_v49  ;;  %v1632_v40 = vld [vmem:[%s3278_s2 + $0x50] sm:$0xff]  ;;  %v1637_v49 = vld [vmem:[%s3278_s2 + $0x78] sm:$0xff] }
  0x40   : > { %2411 = vmatpush3.bf16.msra.mxu1 %v2719_v44  ;;  %1202 = vmatprep.mubr.bf16.mxu1 %v2727_v45  ;;  %v2626_v42 = vpack.c.bf16 %v1633_v41, %v1632_v40  ;;  %v1635_v44 = vld [vmem:[%s3278_s2 + $0x68] sm:$0xff] }
  0x41   : > { %2412 = vmatprep.subr.bf16.mxu1 %v2720_v46  ;;  %1073 = vmatprep.mubr.bf16.mxu0 %v2746_v50  ;;  %v2630_v45 = vpack.c.bf16 %v1635_v44, %v1634_v43  ;;  %v2796_v46 = vld [vmem:[%s2911_s22 + $0x188] ss:$16 sps:$4 sm:$0xff]  }
  0x42   : > { %2623 = vmatprep.subr.bf16.mxu0 %v2622_v37 }
  0x43   : > { %2625 = vmatpush3.bf16.msra.mxu0 %v2622_v37 }
  0x44   : > { %2413 = vmatpush3.bf16.msra.mxu1 %v2721_v47  ;;  %2627 = vmatprep.subr.bf16.mxu0 %v2626_v42  ;;  %v2797_v47 = vld [vmem:[%s2911_s22 + $0x1ac] ss:$16 sps:$4 sm:$0xff]  }
  0x47   : > { %1203 = vmatmul.mubr.bf16.vlgmr.msra.gmra.mrb[16].mxu1 %v2725_v48  ;;  %1074 = vmatmul.mubr.bf16.gmra.mrb[16].mxu0 %v2750_v52  ;;  %v1636_v48 = vld [vmem:[%s3278_s2 + $0x70] sm:$0xff]  ;;  %v2800_v52 = vld [vmem:[%s2911_s22 + $0x1cc] ss:$16 sps:$4 sm:$0xff]  }
  0x48   : > { %1210 = vmatprep.mubr.bf16.mxu1 %v2730_v51  ;;  %1081 = vmatprep.mubr.bf16.mxu0 %v2752_v54  ;;  %v2634_v50 = vpack.c.bf16 %v1637_v49, %v1636_v48  ;;  %v2799_v51 = vld [vmem:[%s2911_s22 + $0x1a8] ss:$16 sps:$4 sm:$0xff]   ;;  %v2803_v54 = vld [vmem:[%s2911_s22 + $0x1ec] ss:$16 sps:$4 sm:$0xff]  }
  0x49   : > { %2629 = vmatpush3.bf16.msra.mxu0 %v2626_v42 }
  0x4a   : > { %2631 = vmatprep.subr.bf16.mxu0 %v2630_v45 }
  0x4d   : > { %2633 = vmatpush3.bf16.msra.mxu0 %v2630_v45 }
  0x4e   : > { %2635 = vmatprep.subr.bf16.mxu0 %v2634_v50 }
  0x4f   : > { %1211 = vmatmul.mubr.bf16.gmra.mrb[20].mxu1 %v2733_v53  ;;  %1082 = vmatmul.mubr.bf16.gmra.mrb[20].mxu0 %v2756_v56  ;;  %v2802_v53 = vld [vmem:[%s2911_s22 + $0x1c8] ss:$16 sps:$4 sm:$0xff]  }
  0x50   : > { %1218 = vmatprep.mubr.bf16.mxu1 %v2736_v55  ;;  %1089 = vmatprep.mubr.bf16.mxu0 %v2758_v58  ;;  %v2805_v55 = vld [vmem:[%s2911_s22 + $0x1e8] ss:$16 sps:$4 sm:$0xff]   ;;  %s2025_s22 = sshll.u32 %s3287_s24, 2 }
  0x51   : > { %2637 = vmatpush3.bf16.msra.mxu0 %v2634_v50  ;;  %s3114_s23 = scalar_lea.vmem %s3280_s4, %s2025_s22 }
  0x57   : > { %1219 = vmatmul.mubr.bf16.gmra.mrb[24].mxu1 %v2739_v57  ;;  %1090 = vmatmul.mubr.bf16.gmra.mrb[24].mxu0 %v2762_v60 }
  0x58   : > { %1226 = vmatprep.mubr.bf16.mxu1 %v2742_v59  ;;  %1097 = vmatprep.mubr.bf16.mxu0 %v2764_v62 }
  0x5f   : > { %1227 = vmatmul.mubr.bf16.gmra.mrb[28].mxu1 %v2745_v61  ;;  %1098 = vmatmul.mubr.bf16.gmra.mrb[28].mxu0 %v2768_v0 }
  0x60   : > { %1234 = vmatprep.mubr.bf16.mxu1 %v2748_v63  ;;  %1105 = vmatprep.mubr.bf16.mxu0 %v2770_v2 }
  0x67   : > { %1235 = vmatmul.mubr.bf16.gmra.mrb[32].mxu1 %v2751_v1  ;;  %1106 = vmatmul.mubr.bf16.gmra.mrb[32].mxu0 %v2774_v4 }
  0x68   : > { %1242 = vmatprep.mubr.bf16.mxu1 %v2754_v3  ;;  %1113 = vmatprep.mubr.bf16.mxu0 %v2776_v6 }
  0x6f   : > { %1243 = vmatmul.mubr.bf16.gmra.mrb[36].mxu1 %v2757_v5  ;;  %1114 = vmatmul.mubr.bf16.gmra.mrb[36].mxu0 %v2780_v8 }
  0x70   : > { %1250 = vmatprep.mubr.bf16.mxu1 %v2760_v7  ;;  %1121 = vmatprep.mubr.bf16.mxu0 %v2782_v10 }
  0x77   : > { %1251 = vmatmul.mubr.bf16.gmra.mrb[40].mxu1 %v2763_v9  ;;  %1122 = vmatmul.mubr.bf16.gmra.mrb[40].mxu0 %v2786_v12 }
  0x78   : > { %1258 = vmatprep.mubr.bf16.mxu1 %v2766_v11  ;;  %1129 = vmatprep.mubr.bf16.mxu0 %v2788_v14 }
  0x7f   : > { %1259 = vmatmul.mubr.bf16.gmra.mrb[44].mxu1 %v2769_v13  ;;  %1130 = vmatmul.mubr.bf16.gmra.mrb[44].mxu0 %v2792_v16 }
  0x80   : > { %1266 = vmatprep.mubr.bf16.mxu1 %v2772_v15 }
  0x87   : > { %1267 = vmatmul.mubr.bf16.gmra.mrb[48].mxu1 %v2775_v17 }
  0x88   : > { %1274 = vmatprep.mubr.bf16.mxu1 %v2778_v18 }
  0x8f   : > { %1275 = vmatmul.mubr.bf16.gmra.mrb[52].mxu1 %v2781_v22 }
  0x90   : > { %1282 = vmatprep.mubr.bf16.mxu1 %v2784_v23 }
  0x97   : > { %1283 = vmatmul.mubr.bf16.gmra.mrb[56].mxu1 %v2787_v30 }
  0x98   : > { %1290 = vmatprep.mubr.bf16.mxu1 %v2790_v31 }
  0x9f   : > { %1291 = vmatmul.mubr.bf16.gmra.mrb[60].mxu1 %v2793_v38 }
  0xa0   : > { %1298 = vmatprep.mubr.bf16.mxu1 %v2794_v39 }
  0xa7   : > { %1299 = vmatmul.mubr.bf16.gmra.mrb[64].mxu1 %v2796_v46 }
  0xa8   : > { %1306 = vmatprep.mubr.bf16.mxu1 %v2797_v47 }
  0xaf   : > { %1307 = vmatmul.mubr.bf16.gmra.mrb[68].mxu1 %v2799_v51 }
  0xb0   : > { %1314 = vmatprep.mubr.bf16.mxu1 %v2800_v52 }
  0xb7   : > { %1315 = vmatmul.mubr.bf16.gmra.mrb[72].mxu1 %v2802_v53 }
  0xb8   : > { %1322 = vmatprep.mubr.bf16.mxu1 %v2803_v54 }
  0xbf   : > { %1323 = vmatmul.mubr.bf16.gmra.mrb[76].mxu1 %v2805_v55 }
  0xfa   : > { %v2374_v56 = vpop.f32.mrb[0].mxu1  ;;  %v2302_v62 = vpop.f32.mrb[0].mxu0 }
  0xfb   : > { %v2375_v57 = vpop.f32.mrb[1].mxu1  ;;  %v2303_v0 = vpop.f32.mrb[1].mxu0 }
  0xfc   : > { %v3094_v58 = vadd.f32 %v2375_v57, %v2374_v56  ;;  %v2377_v59 = vpop.f32.mrb[2].mxu1  ;;  %v2304_v2 = vadd.f32 %v2303_v0, %v2302_v62  ;;  %v2305_v3 = vpop.f32.mrb[2].mxu0 }
  0xfd   : > { %v2378_v60 = vpop.f32.mrb[3].mxu1  ;;  %v2306_v6 = vpop.f32.mrb[3].mxu0 }
  0xfe   : > { %v3096_v61 = vadd.f32 %v2378_v60, %v2377_v59  ;;  %v2307_v8 = vadd.f32 %v2306_v6, %v2305_v3 }
 0x102   : > { %v2380_v63 = vpop.f32.mrb[4].mxu1  ;;  %v2308_v10 = vpop.f32.mrb[4].mxu0 }
 0x103   : > { %v2381_v1 = vpop.f32.mrb[5].mxu1  ;;  %v2309_v12 = vpop.f32.mrb[5].mxu0 }
 0x104   : > { %v3098_v4 = vadd.f32 %v2381_v1, %v2380_v63  ;;  %v2383_v5 = vpop.f32.mrb[6].mxu1  ;;  %v2310_v14 = vadd.f32 %v2309_v12, %v2308_v10  ;;  %v2311_v15 = vpop.f32.mrb[6].mxu0 }
 0x105   : > { %v2384_v7 = vpop.f32.mrb[7].mxu1  ;;  %v2312_v18 = vpop.f32.mrb[7].mxu0 }
 0x106   : > { %v3100_v9 = vadd.f32 %v2384_v7, %v2383_v5  ;;  %v2313_v20 = vadd.f32 %v2312_v18, %v2311_v15 }
 0x10a   : > { %v2386_v11 = vpop.f32.mrb[8].mxu1  ;;  %v2314_v22 = vpop.f32.mrb[8].mxu0 }
 0x10b   : > { %v2387_v13 = vpop.f32.mrb[9].mxu1  ;;  %v2315_v24 = vpop.f32.mrb[9].mxu0 }
 0x10c   : > { %v3102_v16 = vadd.f32 %v2387_v13, %v2386_v11  ;;  %v2389_v17 = vpop.f32.mrb[10].mxu1  ;;  %v2316_v26 = vadd.f32 %v2315_v24, %v2314_v22  ;;  %v2317_v27 = vpop.f32.mrb[10].mxu0 }
 0x10d   : > { %v2390_v19 = vpop.f32.mrb[11].mxu1  ;;  %v2318_v30 = vpop.f32.mrb[11].mxu0 }
 0x10e   : > { %v3104_v21 = vadd.f32 %v2390_v19, %v2389_v17  ;;  %v2319_v32 = vadd.f32 %v2318_v30, %v2317_v27 }
 0x112   : > { %v2392_v23 = vpop.f32.mrb[12].mxu1  ;;  %v2320_v34 = vpop.f32.mrb[12].mxu0 }
 0x113   : > { %v2393_v25 = vpop.f32.mrb[13].mxu1  ;;  %v2321_v36 = vpop.f32.mrb[13].mxu0 }
 0x114   : > { %v3106_v28 = vadd.f32 %v2393_v25, %v2392_v23  ;;  %v2395_v29 = vpop.f32.mrb[14].mxu1  ;;  %v2322_v38 = vadd.f32 %v2321_v36, %v2320_v34  ;;  %v2323_v39 = vpop.f32.mrb[14].mxu0 }
 0x115   : > { %v2396_v31 = vpop.f32.mrb[15].mxu1  ;;  %v2324_v42 = vpop.f32.mrb[15].mxu0 }
 0x116   : > { %v3108_v33 = vadd.f32 %v2396_v31, %v2395_v29  ;;  %v2325_v44 = vadd.f32 %v2324_v42, %v2323_v39 }
 0x11a   : > { %v2414_v35 = vpop.f32.mrb[16].mxu1  ;;  %v2326_v48 = vpop.f32.mrb[16].mxu0 }
 0x11b   : > { %v2415_v37 = vpop.f32.mrb[17].mxu1  ;;  %v2327_v51 = vpop.f32.mrb[17].mxu0 }
 0x11c   : > { %v2416_v40 = vadd.f32 %v2415_v37, %v2414_v35  ;;  %v2417_v41 = vpop.f32.mrb[18].mxu1  ;;  %v2328_v53 = vadd.f32 %v2327_v51, %v2326_v48  ;;  %v2329_v54 = vpop.f32.mrb[18].mxu0 }
 0x11d   : > { %v2418_v43 = vpop.f32.mrb[19].mxu1  ;;  %v2330_v57 = vpop.f32.mrb[19].mxu0 }
 0x11e   : > { %v1205_v45 = vadd.f32 %v2416_v40, %v2304_v2  ;;  %v2419_v46 = vadd.f32 %v2418_v43, %v2417_v41  ;;  %v2331_v60 = vadd.f32 %v2330_v57, %v2329_v54 }
 0x120   : > { %v1208_v47 = vadd.f32 %v2419_v46, %v2307_v8 }
 0x122   : > { %v2420_v49 = vpop.f32.mrb[20].mxu1  ;;  %v1430_v50 = vpack.c.bf16 %v1208_v47, %v1205_v45  ;;  %v2332_v1 = vpop.f32.mrb[20].mxu0 }
 0x123   : > { %v2421_v52 = vpop.f32.mrb[21].mxu1  ;;  %v2333_v5 = vpop.f32.mrb[21].mxu0 }
 0x124   : > { %v2422_v55 = vadd.f32 %v2421_v52, %v2420_v49  ;;  %v2423_v56 = vpop.f32.mrb[22].mxu1  ;;  %2195 = vst [vmem:[%s3114_s23] sm:$0xff] %v1430_v50   ;;  %2574 = vmatprep.mubr.bf16.mxu0 %v1430_v50  ;;  %v2334_v7 = vadd.f32 %v2333_v5, %v2332_v1  ;;  %v2335_v8 = vpop.f32.mrb[22].mxu0 }
 0x125   : > { %v2424_v59 = vpop.f32.mrb[23].mxu1  ;;  %v2336_v12 = vpop.f32.mrb[23].mxu0 }
 0x126   : > { %v1213_v62 = vadd.f32 %v2422_v55, %v2310_v14  ;;  %v2425_v63 = vadd.f32 %v2424_v59, %v2423_v56  ;;  %v2337_v15 = vadd.f32 %v2336_v12, %v2335_v8 }
 0x128   : > { %v1216_v0 = vadd.f32 %v2425_v63, %v2313_v20 }
 0x12a   : > { %v1431_v2 = vpack.c.bf16 %v1216_v0, %v1213_v62  ;;  %v2426_v3 = vpop.f32.mrb[24].mxu1  ;;  %v2338_v19 = vpop.f32.mrb[24].mxu0 }
 0x12b   : > { %v2427_v6 = vpop.f32.mrb[25].mxu1  ;;  %v2339_v23 = vpop.f32.mrb[25].mxu0 }
 0x12c   : > { %2271 = vst [vmem:[%s3114_s23 + $0x8] sm:$0xff] %v1431_v2   ;;  %v2428_v10 = vadd.f32 %v2427_v6, %v2426_v3  ;;  %v2429_v11 = vpop.f32.mrb[26].mxu1  ;;  %2575 = vmatmul.mubr.bf16.vlgmr.msra.gmra.mrb[48].mxu0 %v1431_v2  ;;  %v2340_v25 = vadd.f32 %v2339_v23, %v2338_v19  ;;  %v2341_v27 = vpop.f32.mrb[26].mxu0 }
 0x12d   : > { %v2430_v13 = vpop.f32.mrb[27].mxu1  ;;  %v2342_v31 = vpop.f32.mrb[27].mxu0 }
 0x12e   : > { %v1221_v17 = vadd.f32 %v2428_v10, %v2316_v26  ;;  %v2431_v18 = vadd.f32 %v2430_v13, %v2429_v11  ;;  %v2343_v35 = vadd.f32 %v2342_v31, %v2341_v27 }
 0x130   : > { %v1224_v14 = vadd.f32 %v2431_v18, %v2319_v32 }
 0x132   : > { %v2432_v20 = vpop.f32.mrb[28].mxu1  ;;  %v1432_v22 = vpack.c.bf16 %v1224_v14, %v1221_v17  ;;  %v2344_v39 = vpop.f32.mrb[28].mxu0 }
 0x133   : > { %v2433_v24 = vpop.f32.mrb[29].mxu1  ;;  %v2345_v41 = vpop.f32.mrb[29].mxu0 }
 0x134   : > { %v2434_v29 = vadd.f32 %v2433_v24, %v2432_v20  ;;  %v2435_v30 = vpop.f32.mrb[30].mxu1  ;;  %2272 = vst [vmem:[%s3114_s23 + $0x10] sm:$0xff] %v1432_v22   ;;  %2578 = vmatprep.mubr.bf16.mxu0 %v1432_v22  ;;  %v2346_v43 = vadd.f32 %v2345_v41, %v2344_v39  ;;  %v2347_v45 = vpop.f32.mrb[30].mxu0 }
 0x135   : > { %v2436_v34 = vpop.f32.mrb[31].mxu1  ;;  %v2348_v48 = vpop.f32.mrb[31].mxu0 }
 0x136   : > { %v1229_v36 = vadd.f32 %v2434_v29, %v2322_v38  ;;  %v2437_v37 = vadd.f32 %v2436_v34, %v2435_v30  ;;  %v2349_v50 = vadd.f32 %v2348_v48, %v2347_v45 }
 0x138   : > { %v1232_v26 = vadd.f32 %v2437_v37, %v2325_v44 }
 0x13a   : > { %v2438_v32 = vpop.f32.mrb[32].mxu1  ;;  %v1433_v40 = vpack.c.bf16 %v1232_v26, %v1229_v36  ;;  %v2350_v54 = vpop.f32.mrb[32].mxu0 }
 0x13b   : > { %v2439_v42 = vpop.f32.mrb[33].mxu1  ;;  %v2351_v56 = vpop.f32.mrb[33].mxu0 }
 0x13c   : > { %v2440_v46 = vadd.f32 %v2439_v42, %v2438_v32  ;;  %v2441_v47 = vpop.f32.mrb[34].mxu1  ;;  %2273 = vst [vmem:[%s3114_s23 + $0x18] sm:$0xff] %v1433_v40   ;;  %2579 = vmatmul.mubr.bf16.gmra.mrb[52].mxu0 %v1433_v40  ;;  %v2352_v59 = vadd.f32 %v2351_v56, %v2350_v54  ;;  %v2353_v62 = vpop.f32.mrb[34].mxu0 }
 0x13d   : > { %v2442_v49 = vpop.f32.mrb[35].mxu1  ;;  %v2354_v1 = vpop.f32.mrb[35].mxu0 }
 0x13e   : > { %v1237_v51 = vadd.f32 %v2440_v46, %v2328_v53  ;;  %v2443_v52 = vadd.f32 %v2442_v49, %v2441_v47  ;;  %v2355_v3 = vadd.f32 %v2354_v1, %v2353_v62 }
 0x140   : > { %v1240_v38 = vadd.f32 %v2443_v52, %v2331_v60 }
 0x142   : > { %v2444_v44 = vpop.f32.mrb[36].mxu1  ;;  %v1434_v55 = vpack.c.bf16 %v1240_v38, %v1237_v51  ;;  %v2356_v8 = vpop.f32.mrb[36].mxu0 }
 0x143   : > { %v2445_v57 = vpop.f32.mrb[37].mxu1  ;;  %v2357_v11 = vpop.f32.mrb[37].mxu0 }
 0x144   : > { %v2446_v63 = vadd.f32 %v2445_v57, %v2444_v44  ;;  %v2447_v0 = vpop.f32.mrb[38].mxu1  ;;  %2274 = vst [vmem:[%s3114_s23 + $0x20] sm:$0xff] %v1434_v55   ;;  %2582 = vmatprep.mubr.bf16.mxu0 %v1434_v55  ;;  %v2358_v13 = vadd.f32 %v2357_v11, %v2356_v8  ;;  %v2359_v17 = vpop.f32.mrb[38].mxu0 }
 0x145   : > { %v2448_v2 = vpop.f32.mrb[39].mxu1  ;;  %v2360_v19 = vpop.f32.mrb[39].mxu0 }
 0x146   : > { %v1245_v5 = vadd.f32 %v2446_v63, %v2334_v7  ;;  %v2449_v6 = vadd.f32 %v2448_v2, %v2447_v0  ;;  %v2361_v22 = vadd.f32 %v2360_v19, %v2359_v17 }
 0x148   : > { %v1248_v53 = vadd.f32 %v2449_v6, %v2337_v15 }
 0x14a   : > { %v2450_v60 = vpop.f32.mrb[40].mxu1  ;;  %v1435_v10 = vpack.c.bf16 %v1248_v53, %v1245_v5  ;;  %v2362_v27 = vpop.f32.mrb[40].mxu0 }
 0x14b   : > { %v2451_v12 = vpop.f32.mrb[41].mxu1  ;;  %v2363_v30 = vpop.f32.mrb[41].mxu0 }
 0x14c   : > { %v2452_v18 = vadd.f32 %v2451_v12, %v2450_v60  ;;  %v2453_v14 = vpop.f32.mrb[42].mxu1  ;;  %2275 = vst [vmem:[%s3114_s23 + $0x28] sm:$0xff] %v1435_v10   ;;  %2583 = vmatmul.mubr.bf16.gmra.mrb[56].mxu0 %v1435_v10  ;;  %v2364_v34 = vadd.f32 %v2363_v30, %v2362_v27  ;;  %v2365_v36 = vpop.f32.mrb[42].mxu0 }
 0x14d   : > { %v2454_v20 = vpop.f32.mrb[43].mxu1  ;;  %v2366_v39 = vpop.f32.mrb[43].mxu0 }
 0x14e   : > { %v1253_v23 = vadd.f32 %v2452_v18, %v2340_v25  ;;  %v2455_v24 = vadd.f32 %v2454_v20, %v2453_v14  ;;  %v2367_v40 = vadd.f32 %v2366_v39, %v2365_v36 }
 0x150   : > { %v1256_v7 = vadd.f32 %v2455_v24, %v2343_v35 }
 0x152   : > { %v2456_v15 = vpop.f32.mrb[44].mxu1  ;;  %v1436_v29 = vpack.c.bf16 %v1256_v7, %v1253_v23  ;;  %v2368_v45 = vpop.f32.mrb[44].mxu0 }
 0x153   : > { %v2457_v31 = vpop.f32.mrb[45].mxu1  ;;  %v2369_v47 = vpop.f32.mrb[45].mxu0 }
 0x154   : > { %v2458_v37 = vadd.f32 %v2457_v31, %v2456_v15  ;;  %v2459_v26 = vpop.f32.mrb[46].mxu1  ;;  %2276 = vst [vmem:[%s3114_s23 + $0x30] sm:$0xff] %v1436_v29   ;;  %2586 = vmatprep.mubr.bf16.mxu0 %v1436_v29  ;;  %v2370_v49 = vadd.f32 %v2369_v47, %v2368_v45  ;;  %v2371_v51 = vpop.f32.mrb[46].mxu0 }
 0x155   : > { %v2460_v32 = vpop.f32.mrb[47].mxu1  ;;  %v2372_v54 = vpop.f32.mrb[47].mxu0 }
 0x156   : > { %v1261_v41 = vadd.f32 %v2458_v37, %v2346_v43  ;;  %v2461_v42 = vadd.f32 %v2460_v32, %v2459_v26  ;;  %v2373_v55 = vadd.f32 %v2372_v54, %v2371_v51 }
 0x158   : > { %v1264_v25 = vadd.f32 %v2461_v42, %v2349_v50 }
 0x15a   : > { %v2462_v35 = vpop.f32.mrb[48].mxu1  ;;  %v1437_v46 = vpack.c.bf16 %v1264_v25, %v1261_v41 }
 0x15b   : > { %v2463_v48 = vpop.f32.mrb[49].mxu1 }
 0x15c   : > { %v2464_v52 = vadd.f32 %v2463_v48, %v2462_v35  ;;  %v2465_v38 = vpop.f32.mrb[50].mxu1  ;;  %2277 = vst [vmem:[%s3114_s23 + $0x38] sm:$0xff] %v1437_v46   ;;  %2587 = vmatmul.mubr.bf16.gmra.mrb[60].mxu0 %v1437_v46 }
 0x15d   : > { %v2466_v44 = vpop.f32.mrb[51].mxu1 }
 0x15e   : > { %v1269_v56 = vadd.f32 %v2464_v52, %v2352_v59  ;;  %v2467_v57 = vadd.f32 %v2466_v44, %v2465_v38 }
 0x160   : > { %v1272_v43 = vadd.f32 %v2467_v57, %v2355_v3 }
 0x162   : > { %v2468_v62 = vpop.f32.mrb[52].mxu1  ;;  %v1438_v50 = vpack.c.bf16 %v1272_v43, %v1269_v56 }
 0x163   : > { %v2469_v63 = vpop.f32.mrb[53].mxu1 }
 0x164   : > { %v2470_v0 = vadd.f32 %v2469_v63, %v2468_v62  ;;  %v2471_v1 = vpop.f32.mrb[54].mxu1  ;;  %2278 = vst [vmem:[%s3114_s23 + $0x40] sm:$0xff] %v1438_v50   ;;  %2590 = vmatprep.mubr.bf16.mxu0 %v1438_v50 }
 0x165   : > { %v2472_v2 = vpop.f32.mrb[55].mxu1 }
 0x166   : > { %v1277_v5 = vadd.f32 %v2470_v0, %v2358_v13  ;;  %v2473_v6 = vadd.f32 %v2472_v2, %v2471_v1  ;;  %v1596_v1 = vld [vmem:[%s3146_s28 + $0x30] sm:$0xff]  ;;  %v1594_v2 = vld [vmem:[%s3146_s28 + $0x20] sm:$0xff] }
 0x168   : > { %v1280_v53 = vadd.f32 %v2473_v6, %v2361_v22  ;;  %v1595_v6 = vld [vmem:[%s3146_s28 + $0x28] sm:$0xff] }
 0x16a   : > { %v2474_v8 = vpop.f32.mrb[56].mxu1  ;;  %v1439_v60 = vpack.c.bf16 %v1280_v53, %v1277_v5  ;;  %v1597_v5 = vld [vmem:[%s3146_s28 + $0x38] sm:$0xff]  ;;  %v1600_v53 = vld [vmem:[%s3146_s28 + $0x50] sm:$0xff] }
 0x16b   : > { %v2475_v10 = vpop.f32.mrb[57].mxu1 }
 0x16c   : > { %v2476_v11 = vadd.f32 %v2475_v10, %v2474_v8  ;;  %v2477_v59 = vpop.f32.mrb[58].mxu1  ;;  %2279 = vst [vmem:[%s3114_s23 + $0x48] sm:$0xff] %v1439_v60   ;;  %2591 = vmatmul.mubr.bf16.gmra.mrb[64].mxu0 %v1439_v60  ;;  %v1598_v8 = vld [vmem:[%s3146_s28 + $0x40] sm:$0xff]  ;;  %v1601_v60 = vld [vmem:[%s3146_s28 + $0x58] sm:$0xff]  ;;  %v1599_v10 = vld [vmem:[%s3146_s28 + $0x48] sm:$0xff] }
 0x16d   : > { %v2478_v3 = vpop.f32.mrb[59].mxu1 }
 0x16e   : > { %v1285_v12 = vadd.f32 %v2476_v11, %v2364_v34  ;;  %v2479_v17 = vadd.f32 %v2478_v3, %v2477_v59  ;;  %v1604_v11 = vld [vmem:[%s3146_s28 + $0x70] sm:$0xff]  ;;  %v1602_v59 = vld [vmem:[%s3146_s28 + $0x60] sm:$0xff]  ;;  %v1605_v3 = vld [vmem:[%s3146_s28 + $0x78] sm:$0xff] }
 0x170   : > { %v1288_v18 = vadd.f32 %v2479_v17, %v2367_v40  ;;  %v3165_v17 = vld [vmem:[%s3146_s28 + $0x90] sm:$0xff] }
 0x172   : > { %v2480_v14 = vpop.f32.mrb[60].mxu1  ;;  %v1440_v19 = vpack.c.bf16 %v1288_v18, %v1285_v12  ;;  %v1603_v12 = vld [vmem:[%s3146_s28 + $0x68] sm:$0xff]  ;;  %v3168_v18 = vld [vmem:[%s3146_s28 + $0x80] sm:$0xff] }
 0x173   : > { %v2481_v20 = vpop.f32.mrb[61].mxu1 }
 0x174   : > { %v2482_v23 = vadd.f32 %v2481_v20, %v2480_v14  ;;  %v2483_v13 = vpop.f32.mrb[62].mxu1  ;;  %2280 = vst [vmem:[%s3114_s23 + $0x50] sm:$0xff] %v1440_v19   ;;  %2594 = vmatprep.mubr.bf16.mxu0 %v1440_v19  ;;  %v3171_v14 = vld [vmem:[%s3146_s28 + $0x98] sm:$0xff]  ;;  %v3174_v19 = vld [vmem:[%s3146_s28 + $0x88] sm:$0xff]  ;;  %v3177_v20 = vld [vmem:[%s3146_s28 + $0xb0] sm:$0xff] }
 0x175   : > { %v2484_v22 = vpop.f32.mrb[63].mxu1 }
 0x176   : > { %v1293_v24 = vadd.f32 %v2482_v23, %v2370_v49  ;;  %v2485_v7 = vadd.f32 %v2484_v22, %v2483_v13  ;;  %v3180_v23 = vld [vmem:[%s3146_s28 + $0xa0] sm:$0xff]  ;;  %v3183_v13 = vld [vmem:[%s3146_s28 + $0xb8] sm:$0xff]  ;;  %v3186_v22 = vld [vmem:[%s3146_s28 + $0xa8] sm:$0xff] }
 0x178   : > { %v1296_v27 = vadd.f32 %v2485_v7, %v2373_v55  ;;  %v3192_v7 = vld [vmem:[%s3146_s28 + $0xc0] sm:$0xff] }
 0x17a   : > { %v2486_v15 = vpop.f32.mrb[64].mxu1  ;;  %v1441_v29 = vpack.c.bf16 %v1296_v27, %v1293_v24  ;;  %v3189_v24 = vld [vmem:[%s3146_s28 + $0xd0] sm:$0xff]  ;;  %v3195_v27 = vld [vmem:[%s3146_s28 + $0xd8] sm:$0xff] }
 0x17b   : > { %v2487_v30 = vpop.f32.mrb[65].mxu1 }
 0x17c   : > { %v2488_v31 = vadd.f32 %v2487_v30, %v2486_v15  ;;  %v2489_v34 = vpop.f32.mrb[66].mxu1  ;;  %2281 = vst [vmem:[%s3114_s23 + $0x58] sm:$0xff] %v1441_v29   ;;  %2595 = vmatmul.mubr.bf16.gmra.mrb[68].mxu0 %v1441_v29  ;;  %v3198_v15 = vld [vmem:[%s3146_s28 + $0xc8] sm:$0xff]  ;;  %v3201_v29 = vld [vmem:[%s3146_s28 + $0xf0] sm:$0xff] }
 0x17d   : > { %v2490_v36 = vpop.f32.mrb[67].mxu1 }
 0x17e   : > { %v1301_v37 = vadd.f32 %v2488_v31, %v3094_v58  ;;  %v2491_v26 = vadd.f32 %v2490_v36, %v2489_v34  ;;  %v3211_v31 = vld [vmem:[%s3146_s28 + $0xe0] sm:$0xff]  ;;  %v3214_v34 = vld [vmem:[%s3146_s28 + $0xf8] sm:$0xff]  ;;  %v3217_v36 = vld [vmem:[%s3146_s28 + $0xe8] sm:$0xff] }
 0x180   : > { %v1304_v39 = vadd.f32 %v2491_v26, %v3096_v61 }
 0x182   : > { %v2492_v32 = vpop.f32.mrb[68].mxu1  ;;  %v1442_v40 = vpack.c.bf16 %v1304_v39, %v1301_v37 }
 0x183   : > { %v2493_v41 = vpop.f32.mrb[69].mxu1 }
 0x184   : > { %v2494_v42 = vadd.f32 %v2493_v41, %v2492_v32  ;;  %v2495_v25 = vpop.f32.mrb[70].mxu1  ;;  %2282 = vst [vmem:[%s3114_s23 + $0x60] sm:$0xff] %v1442_v40   ;;  %2598 = vmatprep.mubr.bf16.mxu0 %v1442_v40 }
 0x185   : > { %v2496_v45 = vpop.f32.mrb[71].mxu1 }
 0x186   : > { %v1309_v35 = vadd.f32 %v2494_v42, %v3098_v4  ;;  %v2497_v46 = vadd.f32 %v2496_v45, %v2495_v25 }
 0x188   : > { %v1312_v47 = vadd.f32 %v2497_v46, %v3100_v9 }
 0x18a   : > { %v2498_v48 = vpop.f32.mrb[72].mxu1  ;;  %v1443_v58 = vpack.c.bf16 %v1312_v47, %v1309_v35 }
 0x18b   : > { %v2499_v49 = vpop.f32.mrb[73].mxu1 }
 0x18c   : > { %v2500_v51 = vadd.f32 %v2499_v49, %v2498_v48  ;;  %v2501_v61 = vpop.f32.mrb[74].mxu1  ;;  %2283 = vst [vmem:[%s3114_s23 + $0x68] sm:$0xff] %v1443_v58   ;;  %2599 = vmatmul.mubr.bf16.gmra.mrb[72].mxu0 %v1443_v58 }
 0x18d   : > { %v2502_v52 = vpop.f32.mrb[75].mxu1 }
 0x18e   : > { %v1317_v38 = vadd.f32 %v2500_v51, %v3102_v16  ;;  %v2503_v54 = vadd.f32 %v2502_v52, %v2501_v61  ;;  %v1592_v16 = vld [vmem:[%s3146_s28 + $0x10] sm:$0xff] }
 0x190   : > { %v1320_v44 = vadd.f32 %v2503_v54, %v3104_v21  ;;  %v1590_v21 = vld [vmem:[%s3146_s28] sm:$0xff] }
 0x192   : > { %v2504_v4 = vpop.f32.mrb[76].mxu1  ;;  %v1444_v55 = vpack.c.bf16 %v1320_v44, %v1317_v38 }
 0x193   : > { %v2505_v9 = vpop.f32.mrb[77].mxu1 }
 0x194   : > { %v2506_v56 = vadd.f32 %v2505_v9, %v2504_v4  ;;  %v2507_v57 = vpop.f32.mrb[78].mxu1  ;;  %2284 = vst [vmem:[%s3114_s23 + $0x70] sm:$0xff] %v1444_v55   ;;  %2602 = vmatprep.mubr.bf16.mxu0 %v1444_v55 }
 0x195   : > { %v2508_v43 = vpop.f32.mrb[79].mxu1 }
 0x196   : > { %v1325_v62 = vadd.f32 %v2506_v56, %v3106_v28  ;;  %v2509_v50 = vadd.f32 %v2508_v43, %v2507_v57  ;;  %v1593_v28 = vld [vmem:[%s3146_s28 + $0x18] sm:$0xff] }
 0x198   : > { %v1328_v63 = vadd.f32 %v2509_v50, %v3108_v33  ;;  %v1591_v33 = vld [vmem:[%s3146_s28 + $0x8] sm:$0xff] }
 0x19a   : > { %v1445_v0 = vpack.c.bf16 %v1328_v63, %v1325_v62 }
 0x19c   : > { %2285 = vst [vmem:[%s3114_s23 + $0x78] sm:$0xff] %v1445_v0   ;;  %2603 = vmatmul.mubr.bf16.gmra.mrb[76].mxu0 %v1445_v0 }
 0x1ff   : > { %v2576_v30 = vpop.f32.mrb[48].mxu0 }
 0x200   : > { %v1833_v37 = vadd.f32 %v2576_v30, %v1592_v16  ;;  %v1704_v26 = vpop.f32.mrb[49].mxu0 }
 0x201   : > { %v1831_v39 = vadd.f32 %v1704_v26, %v1590_v21  ;;  %v2577_v32 = vpop.f32.mrb[50].mxu0 }
 0x202   : > { %v1834_v40 = vadd.f32 %v2577_v32, %v1593_v28  ;;  %v1707_v41 = vpop.f32.mrb[51].mxu0  ;;  %1865 = vst [vmem:[%s3208_s6 + $0x10] sm:$0xff] %v1833_v37 }
 0x203   : > { %v1832_v42 = vadd.f32 %v1707_v41, %v1591_v33  ;;  %1863 = vst [vmem:[%s3208_s6] sm:$0xff] %v1831_v39 }
 0x204   : > { %1866 = vst [vmem:[%s3208_s6 + $0x18] sm:$0xff] %v1834_v40 }
 0x205   : > { %1864 = vst [vmem:[%s3208_s6 + $0x8] sm:$0xff] %v1832_v42 }
 0x20f   : > { %v2580_v25 = vpop.f32.mrb[52].mxu0 }
 0x210   : > { %v1837_v45 = vadd.f32 %v2580_v25, %v1596_v1  ;;  %v1720_v35 = vpop.f32.mrb[53].mxu0 }
 0x211   : > { %v1835_v46 = vadd.f32 %v1720_v35, %v1594_v2  ;;  %v2581_v47 = vpop.f32.mrb[54].mxu0 }
 0x212   : > { %v1838_v48 = vadd.f32 %v2581_v47, %v1597_v5  ;;  %v1723_v58 = vpop.f32.mrb[55].mxu0  ;;  %1869 = vst [vmem:[%s3208_s6 + $0x30] sm:$0xff] %v1837_v45 }
 0x213   : > { %v1836_v49 = vadd.f32 %v1723_v58, %v1595_v6  ;;  %1867 = vst [vmem:[%s3208_s6 + $0x20] sm:$0xff] %v1835_v46 }
 0x214   : > { %1870 = vst [vmem:[%s3208_s6 + $0x38] sm:$0xff] %v1838_v48 }
 0x215   : > { %1868 = vst [vmem:[%s3208_s6 + $0x28] sm:$0xff] %v1836_v49 }
 0x21f   : > { %v2584_v51 = vpop.f32.mrb[56].mxu0 }
 0x220   : > { %v1841_v61 = vadd.f32 %v2584_v51, %v1600_v53  ;;  %v1736_v52 = vpop.f32.mrb[57].mxu0 }
 0x221   : > { %v1839_v38 = vadd.f32 %v1736_v52, %v1598_v8  ;;  %v2585_v54 = vpop.f32.mrb[58].mxu0 }
 0x222   : > { %v1842_v44 = vadd.f32 %v2585_v54, %v1601_v60  ;;  %v1739_v4 = vpop.f32.mrb[59].mxu0  ;;  %1873 = vst [vmem:[%s3208_s6 + $0x50] sm:$0xff] %v1841_v61 }
 0x223   : > { %v1840_v55 = vadd.f32 %v1739_v4, %v1599_v10  ;;  %1871 = vst [vmem:[%s3208_s6 + $0x40] sm:$0xff] %v1839_v38 }
 0x224   : > { %1874 = vst [vmem:[%s3208_s6 + $0x58] sm:$0xff] %v1842_v44 }
 0x225   : > { %1872 = vst [vmem:[%s3208_s6 + $0x48] sm:$0xff] %v1840_v55 }
 0x22f   : > { %v2588_v9 = vpop.f32.mrb[60].mxu0 }
 0x230   : > { %v1845_v56 = vadd.f32 %v2588_v9, %v1604_v11  ;;  %v1752_v57 = vpop.f32.mrb[61].mxu0 }
 0x231   : > { %v1843_v43 = vadd.f32 %v1752_v57, %v1602_v59  ;;  %v2589_v62 = vpop.f32.mrb[62].mxu0 }
 0x232   : > { %v1846_v50 = vadd.f32 %v2589_v62, %v1605_v3  ;;  %v1755_v63 = vpop.f32.mrb[63].mxu0  ;;  %1877 = vst [vmem:[%s3208_s6 + $0x70] sm:$0xff] %v1845_v56 }
 0x233   : > { %v1844_v0 = vadd.f32 %v1755_v63, %v1603_v12  ;;  %1875 = vst [vmem:[%s3208_s6 + $0x60] sm:$0xff] %v1843_v43 }
 0x234   : > { %1878 = vst [vmem:[%s3208_s6 + $0x78] sm:$0xff] %v1846_v50 }
 0x235   : > { %1876 = vst [vmem:[%s3208_s6 + $0x68] sm:$0xff] %v1844_v0 }
 0x23f   : > { %v2592_v16 = vpop.f32.mrb[64].mxu0 }
 0x240   : > { %v1849_v21 = vadd.f32 %v2592_v16, %v3165_v17  ;;  %v1768_v28 = vpop.f32.mrb[65].mxu0 }
 0x241   : > { %v1847_v33 = vadd.f32 %v1768_v28, %v3168_v18  ;;  %v2593_v1 = vpop.f32.mrb[66].mxu0 }
 0x242   : > { %v1850_v2 = vadd.f32 %v2593_v1, %v3171_v14  ;;  %v1771_v5 = vpop.f32.mrb[67].mxu0  ;;  %1881 = vst [vmem:[%s3208_s6 + $0x90] sm:$0xff] %v1849_v21 }
 0x243   : > { %v1848_v6 = vadd.f32 %v1771_v5, %v3174_v19  ;;  %1879 = vst [vmem:[%s3208_s6 + $0x80] sm:$0xff] %v1847_v33 }
 0x244   : > { %1882 = vst [vmem:[%s3208_s6 + $0x98] sm:$0xff] %v1850_v2 }
 0x245   : > { %1880 = vst [vmem:[%s3208_s6 + $0x88] sm:$0xff] %v1848_v6 }
 0x24f   : > { %v2596_v53 = vpop.f32.mrb[68].mxu0 }
 0x250   : > { %v1853_v8 = vadd.f32 %v2596_v53, %v3177_v20  ;;  %v1784_v60 = vpop.f32.mrb[69].mxu0 }
 0x251   : > { %v1851_v10 = vadd.f32 %v1784_v60, %v3180_v23  ;;  %v2597_v11 = vpop.f32.mrb[70].mxu0 }
 0x252   : > { %v1854_v59 = vadd.f32 %v2597_v11, %v3183_v13  ;;  %v1787_v3 = vpop.f32.mrb[71].mxu0  ;;  %1885 = vst [vmem:[%s3208_s6 + $0xb0] sm:$0xff] %v1853_v8 }
 0x253   : > { %v1852_v12 = vadd.f32 %v1787_v3, %v3186_v22  ;;  %1883 = vst [vmem:[%s3208_s6 + $0xa0] sm:$0xff] %v1851_v10 }
 0x254   : > { %1886 = vst [vmem:[%s3208_s6 + $0xb8] sm:$0xff] %v1854_v59 }
 0x255   : > { %1884 = vst [vmem:[%s3208_s6 + $0xa8] sm:$0xff] %v1852_v12 }
 0x25f   : > { %v2600_v17 = vpop.f32.mrb[72].mxu0 }
 0x260   : > { %v1857_v18 = vadd.f32 %v2600_v17, %v3189_v24  ;;  %v1800_v14 = vpop.f32.mrb[73].mxu0 }
 0x261   : > { %v1855_v19 = vadd.f32 %v1800_v14, %v3192_v7  ;;  %v2601_v20 = vpop.f32.mrb[74].mxu0 }
 0x262   : > { %v1858_v23 = vadd.f32 %v2601_v20, %v3195_v27  ;;  %v1803_v13 = vpop.f32.mrb[75].mxu0  ;;  %1889 = vst [vmem:[%s3208_s6 + $0xd0] sm:$0xff] %v1857_v18 }
 0x263   : > { %v1856_v22 = vadd.f32 %v1803_v13, %v3198_v15  ;;  %1887 = vst [vmem:[%s3208_s6 + $0xc0] sm:$0xff] %v1855_v19 }
 0x264   : > { %1890 = vst [vmem:[%s3208_s6 + $0xd8] sm:$0xff] %v1858_v23 }
 0x265   : > { %1888 = vst [vmem:[%s3208_s6 + $0xc8] sm:$0xff] %v1856_v22 }
 0x26f   : > { %v2604_v30 = vpop.f32.mrb[76].mxu0 }
 0x270   : > { %v1861_v24 = vadd.f32 %v2604_v30, %v3201_v29  ;;  %v1816_v37 = vpop.f32.mrb[77].mxu0 }
 0x271   : > { %v1859_v7 = vadd.f32 %v1816_v37, %v3211_v31  ;;  %v2605_v26 = vpop.f32.mrb[78].mxu0 }
 0x272   : > { %v1862_v39 = vadd.f32 %v2605_v26, %v3214_v34  ;;  %v1819_v27 = vpop.f32.mrb[79].mxu0  ;;  %1893 = vst [vmem:[%s3208_s6 + $0xf0] sm:$0xff] %v1861_v24 }
 0x273   : > { %v1860_v32 = vadd.f32 %v1819_v27, %v3217_v36  ;;  %1891 = vst [vmem:[%s3208_s6 + $0xe0] sm:$0xff] %v1859_v7 }
 0x274   : > { %1894 = vst [vmem:[%s3208_s6 + $0xf8] sm:$0xff] %v1862_v39 }
 0x275   : > { %1892 = vst [vmem:[%s3208_s6 + $0xe8] sm:$0xff] %v1860_v32 }
 0x276 PF: > { %s16_s20 = sadd.s32 1, %s2828_s20   ;;  %s3282_s18 = smov %s2824_s19 }
 0x277   : > { %p13_p5 = scmp.ge.s32.totalorder %s16_s20, 4   ;;  %s3283_s19 = smov %s3285_s21 }
 0x279   :  { %15 = sbr.rel (!%p13_p5) target bundleno = 2 (0x2), region = 90 }

// kernel: bwgnn_em_forward.6
= control target key start
LH: loop header
LB: loop body
LE: loop exit
PB: predicated region body
PF: predicated region fallthrough
CT: control target
= control target key end

     0   :  { %11 = vsyncpa [#allocation4], 0  ;;  %s3473_s0 = inlined_call_operand.vmem [shape: bf16[512,512], index: 0, kind: input, shape index: {}]   ;;  %s3474_s1 = inlined_call_operand.vmem [shape: bf16[512,128], index: 1, kind: input, shape index: {}]   ;;  %s3475_s2 = inlined_call_operand.vmem [shape: f32[128,128], index: 2, kind: input, shape index: {}]   ;;  %s3476_s3 = inlined_call_operand.vmem [shape: f32[512,128], index: 3, kind: input, shape index: {}, may-alias: {3,5}]   ;;  %s3477_s4 = inlined_call_operand.hbm [shape: bf16[512,128], index: 4, kind: output, shape index: {0}]   ;;  %s3478_s5 = inlined_call_operand.vmem [shape: f32[512,128], index: 5, kind: output, shape index: {1}, may-alias: {3,5}]  }
   0x1   :  { %13 = vsyncpa [#allocation4 + $0x1], 0  ;;  %s2972_s18 = smov 0   ;;  %s2974_s19 = smov 0  }
   0x2   :  { %s2976_s20 = smov 0   ;;  %s2978_s21 = smov 0  }
   0x3   :  { %s2980_s22 = smov 0   ;;  %s2982_s23 = smov 0  }
   0x4 LB: > { %s2031_s24 = sadd.s32 4294967295, %s2937_s23   ;;  %s2032_s25 = sadd.s32 4294967294, %s2937_s23   ;;  %s2937_s23 = sphi %s2982_s23, %s19_s23   ;;  %s2933_s22 = sphi %s2980_s22, %s3485_s22   ;;  %s2929_s21 = sphi %s2978_s21, %s3484_s21   ;;  %s2925_s20 = sphi %s2976_s20, %s3483_s20   ;;  %s2921_s19 = sphi %s2974_s19, %s3482_s19   ;;  %s2917_s18 = sphi %s2972_s18, %s3481_s18  }
   0x5   : > { %s31_s26 = sadd.s32 1, %s2933_s22  ;;  %s134_s27 = sadd.s32 1, %s2925_s20 }
   0x6   : > { %p33_p0 = scmp.ge.s32.totalorder %s31_s26, 2  ;;  %p144_p1 = scmp.ne.s32.totalorder %s2925_s20, %s2921_s19 }
   0x7   : > { %p145_p2 = scmp.eq.s32.totalorder %s2031_s24, 1  ;;  %p150_p3 = scmp.ne.s32.totalorder %s2921_s19, %s2917_s18 }
   0x8   : > { %s3487_s26 = smov (%p33_p0, %s31_s26), 0  ;;  %p151_p5 = scmp.eq.s32.totalorder %s2032_s25, 1 }
   0x9   : > { %p3012_p4 = por %p145_p2, %p144_p1  ;;  %s131_s29 = ssub.s32 %s2933_s22, %s3487_s26 }
   0xa   : > { %p2035_p6 = scmp.ge.s32.totalorder %s2937_s23, 1  ;;  %p132_p7 = scmp.eq.s32.totalorder %s131_s29, 0 }
   0xb   : > { %p3019_p8 = por %p151_p5, %p150_p3  ;;  %p225_p9 = scmp.lt.s32.totalorder %s2937_s23, 3 }
   0xc   : > { %s3025_s6 = scalar_select %p132_p7, %s2925_s20, %s134_s27  }
   0xd   : > { %p226_p10 = pnand %p2035_p6, %p225_p9 }
   0xe   : > { %v2731_v0 = vld [vmem:[%s3474_s1 + $0x40] sm:$0xff] (!%p226_p10)   ;;  %s2037_s9 = sshll.u32 (!%p226_p10), %s2929_s21, 5  ;;  %v2733_v2 = vld [vmem:[%s3474_s1 + $0x48] sm:$0xff] (!%p226_p10)   ;;  %v2735_v4 = vld [vmem:[%s3474_s1 + $0x50] sm:$0xff] (!%p226_p10)   ;;  %s2210_s25 = sshll.u32 (!%p226_p10), %s2929_s21, 11 }
   0xf   : > { %229 = sbr.rel (%p226_p10) target bundleno = 638 (0x27e), region = 36  ;;  %v2732_v1 = vld [vmem:[%s3474_s1] sm:$0xff] (!%p226_p10)   ;;  %2658 = vmatprep.subr.bf16.mxu1 (!%p226_p10), %v2731_v0  ;;  %2306 = vmatprep.subr.bf16.mxu0 (!%p226_p10), %v2731_v0  ;;  %v2734_v3 = vld [vmem:[%s3474_s1 + $0x8] sm:$0xff] (!%p226_p10)   ;;  %p270_p11 = scmp.lt.s32.totalorder (!%p226_p10), %s2037_s9, 63  ;;  %v2736_v5 = vld [vmem:[%s3474_s1 + $0x10] sm:$0xff] (!%p226_p10)  }
  0x10   : > { %2666 = vmatpush3.bf16.msra.mxu1 (!%p226_p10), %v2732_v1  ;;  %2307 = vmatpush3.bf16.msra.mxu0 (!%p226_p10), %v2732_v1  ;;  %v2737_v6 = vld [vmem:[%s3474_s1 + $0x58] sm:$0xff] (!%p226_p10)   ;;  %v2739_v8 = vld [vmem:[%s3474_s1 + $0x60] sm:$0xff] (!%p226_p10)   ;;  %v2741_v10 = vld [vmem:[%s3474_s1 + $0x68] sm:$0xff] (!%p226_p10)   ;;  %s3295_s8 = scalar_lea.hbm (!%p226_p10), %s3477_s4, %s2210_s25  ;;  %s2939_s21 = smov (!%p226_p10), [#allocation3]  }
  0x11   : > { %2659 = vmatprep.subr.bf16.mxu1 (!%p226_p10), %v2733_v2  ;;  %2308 = vmatprep.subr.bf16.mxu0 (!%p226_p10), %v2733_v2  ;;  %v2738_v7 = vld [vmem:[%s3474_s1 + $0x18] sm:$0xff] (!%p226_p10)   ;;  %v2740_v9 = vld [vmem:[%s3474_s1 + $0x20] sm:$0xff] (!%p226_p10)   ;;  %v2742_v12 = vld [vmem:[%s3474_s1 + $0x28] sm:$0xff] (!%p226_p10)   ;;  %s2863_s12 = sshll.u32 (!%p226_p10), %s2939_s21, 4  ;;  %s2864_s12 = int_to_ptr.vmem [resolvable:$false] %s2863_s12 }
  0x12   : > { %v2743_v13 = vld [vmem:[%s3474_s1 + $0x70] sm:$0xff] (!%p226_p10)   ;;  %v2745_v15 = vld [vmem:[%s3474_s1 + $0x78] sm:$0xff] (!%p226_p10)   ;;  %v2750_v17 = vld [vmem:[%s3474_s1 + $0xc0] sm:$0xff] (!%p226_p10)   ;;  %s2865_s13 = scalar_lea.vmem (!%p226_p10), %s2864_s12, 4096 }
  0x13   : > { %v2744_v14 = vld [vmem:[%s3474_s1 + $0x30] sm:$0xff] (!%p226_p10)   ;;  %v2746_v16 = vld [vmem:[%s3474_s1 + $0x38] sm:$0xff] (!%p226_p10)   ;;  %v2751_v19 = vld [vmem:[%s3474_s1 + $0x80] sm:$0xff] (!%p226_p10)  }
  0x14   : > { %2667 = vmatpush3.bf16.msra.mxu1 (!%p226_p10), %v2734_v3  ;;  %2309 = vmatpush3.bf16.msra.mxu0 (!%p226_p10), %v2734_v3  ;;  %v2752_v21 = vld [vmem:[%s3474_s1 + $0xc8] sm:$0xff] (!%p226_p10)   ;;  %v2757_v24 = vld [vmem:[%s3474_s1 + $0xd0] sm:$0xff] (!%p226_p10)   ;;  %v2759_v28 = vld [vmem:[%s3474_s1 + $0xd8] sm:$0xff] (!%p226_p10)  }
  0x15   : > { %2660 = vmatprep.subr.bf16.mxu1 (!%p226_p10), %v2735_v4  ;;  %2310 = vmatprep.subr.bf16.mxu0 (!%p226_p10), %v2735_v4  ;;  %v2753_v22 = vld [vmem:[%s3474_s1 + $0x88] sm:$0xff] (!%p226_p10)   ;;  %v2758_v25 = vld [vmem:[%s3474_s1 + $0x90] sm:$0xff] (!%p226_p10)   ;;  %v2760_v31 = vld [vmem:[%s3474_s1 + $0x98] sm:$0xff] (!%p226_p10)  }
  0x16   : > { %s3489_s9 = smov (!%p270_p11, %s2037_s9), 63  ;;  %v2764_v33 = vld [vmem:[%s3474_s1 + $0xe0] sm:$0xff]   ;;  %v2766_v38 = vld [vmem:[%s3474_s1 + $0xe8] sm:$0xff]   ;;  %v2771_v41 = vld [vmem:[%s3474_s1 + $0xf0] sm:$0xff]  }
  0x17   : > { %s2177_s10 = sshll.u32 %s3489_s9, 4  ;;  %v2765_v36 = vld [vmem:[%s3474_s1 + $0xa0] sm:$0xff]   ;;  %v2767_v39 = vld [vmem:[%s3474_s1 + $0xa8] sm:$0xff]   ;;  %v2772_v44 = vld [vmem:[%s3474_s1 + $0xb0] sm:$0xff]   ;;  %s2041_s24 = sshll.u32 %s3489_s9, 3 }
  0x18   : > { %2668 = vmatpush3.bf16.msra.mxu1 %v2736_v5  ;;  %2311 = vmatpush3.bf16.msra.mxu0 %v2736_v5  ;;  %s3061_s15 = scalar_lea.vmem %s3473_s0, %s2177_s10  ;;  %v2773_v46 = vld [vmem:[%s3474_s1 + $0xf8] sm:$0xff]  }
  0x19   : > { %2661 = vmatprep.subr.bf16.mxu1 %v2737_v6  ;;  %2312 = vmatprep.subr.bf16.mxu0 %v2737_v6  ;;  %v2749_v11 = vld [vmem:[%s3061_s15 + $0x184] ss:$16 sps:$4 sm:$0xff]   ;;  %v2747_v18 = vld [vmem:[%s3061_s15 + $0x180] ss:$16 sps:$4 sm:$0xff]   ;;  %v2780_v45 = vld [vmem:[%s3061_s15 + $0xc] ss:$16 sps:$4 sm:$0xff]  }
  0x1a   : > { %1135 = vmatprep.mubr.bf16.mxu1 %v2749_v11  ;;  %v2754_v20 = vld [vmem:[%s3061_s15 + $0x1a4] ss:$16 sps:$4 sm:$0xff]   ;;  %v2756_v23 = vld [vmem:[%s3061_s15 + $0x1a0] ss:$16 sps:$4 sm:$0xff]   ;;  %v2774_v47 = vld [vmem:[%s3474_s1 + $0xb8] sm:$0xff]  }
  0x1b   : > { %v2775_v26 = vld [vmem:[%s3061_s15] ss:$16 sps:$4 sm:$0xff]   ;;  %v2777_v27 = vld [vmem:[%s3061_s15 + $0x4] ss:$16 sps:$4 sm:$0xff]   ;;  %v2778_v48 = vld [vmem:[%s3061_s15 + $0x8] ss:$16 sps:$4 sm:$0xff]  }
  0x1c   : > { %2669 = vmatpush3.bf16.msra.mxu1 %v2738_v7  ;;  %2313 = vmatpush3.bf16.msra.mxu0 %v2738_v7  ;;  %v2761_v29 = vld [vmem:[%s3061_s15 + $0x1c4] ss:$16 sps:$4 sm:$0xff]   ;;  %v2763_v32 = vld [vmem:[%s3061_s15 + $0x1c0] ss:$16 sps:$4 sm:$0xff]   ;;  %v2783_v51 = vld [vmem:[%s3061_s15 + $0x2c] ss:$16 sps:$4 sm:$0xff]  }
  0x1d   : > { %2662 = vmatprep.subr.bf16.mxu1 %v2739_v8  ;;  %2314 = vmatprep.subr.bf16.mxu0 %v2739_v8  ;;  %v2781_v30 = vld [vmem:[%s3061_s15 + $0x24] ss:$16 sps:$4 sm:$0xff]   ;;  %v2785_v34 = vld [vmem:[%s3061_s15 + $0x20] ss:$16 sps:$4 sm:$0xff]   ;;  %v2786_v53 = vld [vmem:[%s3061_s15 + $0x28] ss:$16 sps:$4 sm:$0xff]  }
  0x1e   : > { %1039 = vmatprep.mubr.bf16.mxu0 %v2777_v27  ;;  %v2787_v35 = vld [vmem:[%s3061_s15 + $0x44] ss:$16 sps:$4 sm:$0xff]   ;;  %v2770_v40 = vld [vmem:[%s3061_s15 + $0x1e0] ss:$16 sps:$4 sm:$0xff]   ;;  %v2789_v55 = vld [vmem:[%s3061_s15 + $0x4c] ss:$16 sps:$4 sm:$0xff]  }
  0x1f   : > { %v2768_v37 = vld [vmem:[%s3061_s15 + $0x1e4] ss:$16 sps:$4 sm:$0xff]   ;;  %v2791_v42 = vld [vmem:[%s3061_s15 + $0x40] ss:$16 sps:$4 sm:$0xff]   ;;  %v2792_v57 = vld [vmem:[%s3061_s15 + $0x48] ss:$16 sps:$4 sm:$0xff]  }
  0x20   : > { %2670 = vmatpush3.bf16.msra.mxu1 %v2740_v9  ;;  %2315 = vmatpush3.bf16.msra.mxu0 %v2740_v9  ;;  %v2793_v43 = vld [vmem:[%s3061_s15 + $0x64] ss:$16 sps:$4 sm:$0xff]   ;;  %v2797_v49 = vld [vmem:[%s3061_s15 + $0x60] ss:$16 sps:$4 sm:$0xff]   ;;  %v2795_v59 = vld [vmem:[%s3061_s15 + $0x6c] ss:$16 sps:$4 sm:$0xff]  }
  0x21   : > { %2663 = vmatprep.subr.bf16.mxu1 %v2741_v10  ;;  %2316 = vmatprep.subr.bf16.mxu0 %v2741_v10  ;;  %v2799_v50 = vld [vmem:[%s3061_s15 + $0x84] ss:$16 sps:$4 sm:$0xff]   ;;  %v2803_v52 = vld [vmem:[%s3061_s15 + $0x80] ss:$16 sps:$4 sm:$0xff]   ;;  %v2798_v61 = vld [vmem:[%s3061_s15 + $0x68] ss:$16 sps:$4 sm:$0xff]  }
  0x22   : > { %v2805_v54 = vld [vmem:[%s3061_s15 + $0xa4] ss:$16 sps:$4 sm:$0xff]   ;;  %v2809_v56 = vld [vmem:[%s3061_s15 + $0xa0] ss:$16 sps:$4 sm:$0xff]   ;;  %v2801_v63 = vld [vmem:[%s3061_s15 + $0x8c] ss:$16 sps:$4 sm:$0xff]  }
  0x23   : > { %v2811_v58 = vld [vmem:[%s3061_s15 + $0xc4] ss:$16 sps:$4 sm:$0xff]   ;;  %v2815_v60 = vld [vmem:[%s3061_s15 + $0xc0] ss:$16 sps:$4 sm:$0xff]   ;;  %v2804_v1 = vld [vmem:[%s3061_s15 + $0x88] ss:$16 sps:$4 sm:$0xff]  }
  0x24   : > { %2671 = vmatpush3.bf16.msra.mxu1 %v2742_v12  ;;  %2317 = vmatpush3.bf16.msra.mxu0 %v2742_v12  ;;  %v2817_v62 = vld [vmem:[%s3061_s15 + $0xe4] ss:$16 sps:$4 sm:$0xff]   ;;  %v2821_v0 = vld [vmem:[%s3061_s15 + $0xe0] ss:$16 sps:$4 sm:$0xff]   ;;  %v2807_v3 = vld [vmem:[%s3061_s15 + $0xac] ss:$16 sps:$4 sm:$0xff]  }
  0x25   : > { %2664 = vmatprep.subr.bf16.mxu1 %v2743_v13  ;;  %2318 = vmatprep.subr.bf16.mxu0 %v2743_v13  ;;  %v2823_v2 = vld [vmem:[%s3061_s15 + $0x104] ss:$16 sps:$4 sm:$0xff]   ;;  %v2827_v4 = vld [vmem:[%s3061_s15 + $0x100] ss:$16 sps:$4 sm:$0xff]   ;;  %v2810_v5 = vld [vmem:[%s3061_s15 + $0xa8] ss:$16 sps:$4 sm:$0xff]  }
  0x26   : > { %v2829_v6 = vld [vmem:[%s3061_s15 + $0x124] ss:$16 sps:$4 sm:$0xff]   ;;  %v2813_v7 = vld [vmem:[%s3061_s15 + $0xcc] ss:$16 sps:$4 sm:$0xff]   ;;  %v2833_v8 = vld [vmem:[%s3061_s15 + $0x120] ss:$16 sps:$4 sm:$0xff]  }
  0x27   : > { %v2816_v9 = vld [vmem:[%s3061_s15 + $0xc8] ss:$16 sps:$4 sm:$0xff]   ;;  %v2835_v10 = vld [vmem:[%s3061_s15 + $0x144] ss:$16 sps:$4 sm:$0xff]   ;;  %v2819_v11 = vld [vmem:[%s3061_s15 + $0xec] ss:$16 sps:$4 sm:$0xff]  }
  0x28   : > { %2672 = vmatpush3.bf16.msra.mxu1 %v2744_v14  ;;  %2319 = vmatpush3.bf16.msra.mxu0 %v2744_v14  ;;  %v2839_v12 = vld [vmem:[%s3061_s15 + $0x140] ss:$16 sps:$4 sm:$0xff]   ;;  %v2822_v13 = vld [vmem:[%s3061_s15 + $0xe8] ss:$16 sps:$4 sm:$0xff]   ;;  %v2841_v14 = vld [vmem:[%s3061_s15 + $0x164] ss:$16 sps:$4 sm:$0xff]  }
  0x29   : > { %2665 = vmatprep.subr.bf16.mxu1 %v2745_v15  ;;  %2320 = vmatprep.subr.bf16.mxu0 %v2745_v15  ;;  %v2825_v15 = vld [vmem:[%s3061_s15 + $0x10c] ss:$16 sps:$4 sm:$0xff]   ;;  %v1624_v27 = vld [vmem:[%s3475_s2 + $0x20] sm:$0xff] }
  0x2c   : > { %2673 = vmatpush3.bf16.msra.mxu1 %v2746_v16  ;;  %2321 = vmatpush3.bf16.msra.mxu0 %v2746_v16  ;;  %v2845_v16 = vld [vmem:[%s3061_s15 + $0x160] ss:$16 sps:$4 sm:$0xff]  }
  0x2d   : > { %2418 = vmatprep.subr.bf16.mxu1 %v2750_v17  ;;  %v2828_v17 = vld [vmem:[%s3061_s15 + $0x108] ss:$16 sps:$4 sm:$0xff]  }
  0x2f   : > { %1136 = vmatmul.mubr.bf16.vlgmr.msra.gmra.mrb[0].mxu1 %v2747_v18  ;;  %1040 = vmatmul.mubr.bf16.vlgmr.msra.gmra.mrb[0].mxu0 %v2775_v26  ;;  %v2831_v18 = vld [vmem:[%s3061_s15 + $0x12c] ss:$16 sps:$4 sm:$0xff]  }
  0x30   : > { %2419 = vmatpush3.bf16.msra.mxu1 %v2751_v19  ;;  %1143 = vmatprep.mubr.bf16.mxu1 %v2754_v20  ;;  %v1620_v19 = vld [vmem:[%s3475_s2] sm:$0xff]  ;;  %v1621_v20 = vld [vmem:[%s3475_s2 + $0x8] sm:$0xff] }
  0x31   : > { %2420 = vmatprep.subr.bf16.mxu1 %v2752_v21  ;;  %1047 = vmatprep.mubr.bf16.mxu0 %v2781_v30  ;;  %v2626_v21 = vpack.c.bf16 %v1621_v20, %v1620_v19  ;;  %v2840_v30 = vld [vmem:[%s3061_s15 + $0x148] ss:$16 sps:$4 sm:$0xff]  }
  0x33   : > { %2627 = vmatprep.subr.bf16.mxu0 %v2626_v21 }
  0x34   : > { %2421 = vmatpush3.bf16.msra.mxu1 %v2753_v22  ;;  %2629 = vmatpush3.bf16.msra.mxu0 %v2626_v21  ;;  %v2834_v22 = vld [vmem:[%s3061_s15 + $0x128] ss:$16 sps:$4 sm:$0xff]  }
  0x35   : > { %2422 = vmatprep.subr.bf16.mxu1 %v2757_v24  ;;  %v1622_v24 = vld [vmem:[%s3475_s2 + $0x10] sm:$0xff] }
  0x37   : > { %1144 = vmatmul.mubr.bf16.gmra.mrb[4].mxu1 %v2756_v23  ;;  %1048 = vmatmul.mubr.bf16.gmra.mrb[4].mxu0 %v2785_v34  ;;  %v2837_v23 = vld [vmem:[%s3061_s15 + $0x14c] ss:$16 sps:$4 sm:$0xff]  }
  0x38   : > { %2423 = vmatpush3.bf16.msra.mxu1 %v2758_v25  ;;  %1151 = vmatprep.mubr.bf16.mxu1 %v2761_v29  ;;  %v1623_v25 = vld [vmem:[%s3475_s2 + $0x18] sm:$0xff] }
  0x39   : > { %2424 = vmatprep.subr.bf16.mxu1 %v2759_v28  ;;  %1055 = vmatprep.mubr.bf16.mxu0 %v2787_v35  ;;  %v2630_v26 = vpack.c.bf16 %v1623_v25, %v1622_v24  ;;  %v1625_v28 = vld [vmem:[%s3475_s2 + $0x28] sm:$0xff]  ;;  %v1628_v35 = vld [vmem:[%s3475_s2 + $0x40] sm:$0xff] }
  0x3a   : > { %v2634_v29 = vpack.c.bf16 %v1625_v28, %v1624_v27 }
  0x3b   : > { %2631 = vmatprep.subr.bf16.mxu0 %v2630_v26 }
  0x3c   : > { %2425 = vmatpush3.bf16.msra.mxu1 %v2760_v31  ;;  %2633 = vmatpush3.bf16.msra.mxu0 %v2630_v26  ;;  %v2843_v31 = vld [vmem:[%s3061_s15 + $0x16c] ss:$16 sps:$4 sm:$0xff]  }
  0x3d   : > { %2426 = vmatprep.subr.bf16.mxu1 %v2764_v33  ;;  %2635 = vmatprep.subr.bf16.mxu0 %v2634_v29  ;;  %v1627_v33 = vld [vmem:[%s3475_s2 + $0x38] sm:$0xff] }
  0x3f   : > { %1152 = vmatmul.mubr.bf16.gmra.mrb[8].mxu1 %v2763_v32  ;;  %1056 = vmatmul.mubr.bf16.gmra.mrb[8].mxu0 %v2791_v42  ;;  %v1626_v32 = vld [vmem:[%s3475_s2 + $0x30] sm:$0xff] }
  0x40   : > { %2427 = vmatpush3.bf16.msra.mxu1 %v2765_v36  ;;  %1159 = vmatprep.mubr.bf16.mxu1 %v2768_v37  ;;  %v2638_v34 = vpack.c.bf16 %v1627_v33, %v1626_v32  ;;  %v1629_v36 = vld [vmem:[%s3475_s2 + $0x48] sm:$0xff] }
  0x41   : > { %2428 = vmatprep.subr.bf16.mxu1 %v2766_v38  ;;  %1063 = vmatprep.mubr.bf16.mxu0 %v2793_v43  ;;  %v2642_v37 = vpack.c.bf16 %v1629_v36, %v1628_v35  ;;  %v2846_v38 = vld [vmem:[%s3061_s15 + $0x168] ss:$16 sps:$4 sm:$0xff]   ;;  %v1632_v43 = vld [vmem:[%s3475_s2 + $0x60] sm:$0xff] }
  0x42   : > { %2637 = vmatpush3.bf16.msra.mxu0 %v2634_v29 }
  0x43   : > { %2639 = vmatprep.subr.bf16.mxu0 %v2638_v34 }
  0x44   : > { %2429 = vmatpush3.bf16.msra.mxu1 %v2767_v39  ;;  %v2847_v39 = vld [vmem:[%s3061_s15 + $0x18c] ss:$16 sps:$4 sm:$0xff]  }
  0x45   : > { %2430 = vmatprep.subr.bf16.mxu1 %v2771_v41  ;;  %v1631_v41 = vld [vmem:[%s3475_s2 + $0x58] sm:$0xff] }
  0x46   : > { %2641 = vmatpush3.bf16.msra.mxu0 %v2638_v34 }
  0x47   : > { %1160 = vmatmul.mubr.bf16.gmra.mrb[12].mxu1 %v2770_v40  ;;  %1064 = vmatmul.mubr.bf16.gmra.mrb[12].mxu0 %v2797_v49  ;;  %v1630_v40 = vld [vmem:[%s3475_s2 + $0x50] sm:$0xff]  ;;  %v1635_v49 = vld [vmem:[%s3475_s2 + $0x78] sm:$0xff] }
  0x48   : > { %2431 = vmatpush3.bf16.msra.mxu1 %v2772_v44  ;;  %1200 = vmatprep.mubr.bf16.mxu1 %v2780_v45  ;;  %v2646_v42 = vpack.c.bf16 %v1631_v41, %v1630_v40  ;;  %v1633_v44 = vld [vmem:[%s3475_s2 + $0x68] sm:$0xff] }
  0x49   : > { %2432 = vmatprep.subr.bf16.mxu1 %v2773_v46  ;;  %1071 = vmatprep.mubr.bf16.mxu0 %v2799_v50  ;;  %v2650_v45 = vpack.c.bf16 %v1633_v44, %v1632_v43  ;;  %v2849_v46 = vld [vmem:[%s3061_s15 + $0x188] ss:$16 sps:$4 sm:$0xff]  }
  0x4a   : > { %2643 = vmatprep.subr.bf16.mxu0 %v2642_v37 }
  0x4b   : > { %2645 = vmatpush3.bf16.msra.mxu0 %v2642_v37 }
  0x4c   : > { %2433 = vmatpush3.bf16.msra.mxu1 %v2774_v47  ;;  %2647 = vmatprep.subr.bf16.mxu0 %v2646_v42  ;;  %v2850_v47 = vld [vmem:[%s3061_s15 + $0x1ac] ss:$16 sps:$4 sm:$0xff]  }
  0x4f   : > { %1201 = vmatmul.mubr.bf16.vlgmr.msra.gmra.mrb[16].mxu1 %v2778_v48  ;;  %1072 = vmatmul.mubr.bf16.gmra.mrb[16].mxu0 %v2803_v52  ;;  %v1634_v48 = vld [vmem:[%s3475_s2 + $0x70] sm:$0xff]  ;;  %v2853_v52 = vld [vmem:[%s3061_s15 + $0x1cc] ss:$16 sps:$4 sm:$0xff]  }
  0x50   : > { %1208 = vmatprep.mubr.bf16.mxu1 %v2783_v51  ;;  %1079 = vmatprep.mubr.bf16.mxu0 %v2805_v54  ;;  %v2654_v50 = vpack.c.bf16 %v1635_v49, %v1634_v48  ;;  %v2852_v51 = vld [vmem:[%s3061_s15 + $0x1a8] ss:$16 sps:$4 sm:$0xff]   ;;  %v2856_v54 = vld [vmem:[%s3061_s15 + $0x1ec] ss:$16 sps:$4 sm:$0xff]  }
  0x51   : > { %2649 = vmatpush3.bf16.msra.mxu0 %v2646_v42 }
  0x52   : > { %2651 = vmatprep.subr.bf16.mxu0 %v2650_v45 }
  0x55   : > { %2653 = vmatpush3.bf16.msra.mxu0 %v2650_v45 }
  0x56   : > { %2655 = vmatprep.subr.bf16.mxu0 %v2654_v50 }
  0x57   : > { %1209 = vmatmul.mubr.bf16.gmra.mrb[20].mxu1 %v2786_v53  ;;  %1080 = vmatmul.mubr.bf16.gmra.mrb[20].mxu0 %v2809_v56  ;;  %v2855_v53 = vld [vmem:[%s3061_s15 + $0x1c8] ss:$16 sps:$4 sm:$0xff]  }
  0x58   : > { %1216 = vmatprep.mubr.bf16.mxu1 %v2789_v55  ;;  %1087 = vmatprep.mubr.bf16.mxu0 %v2811_v58  ;;  %v2858_v55 = vld [vmem:[%s3061_s15 + $0x1e8] ss:$16 sps:$4 sm:$0xff]   ;;  %s258_s15 = sand.u32 1, %s2921_s19  }
  0x59   : > { %2657 = vmatpush3.bf16.msra.mxu0 %v2654_v50  ;;  %s2036_s16 = sshll.u32 %s258_s15, 7  ;;  %s3301_s10 = scalar_lea.sflag [#allocation4], %s258_s15 }
  0x5a   : > { %s3263_s17 = scalar_lea.vmem [#allocation3], %s2036_s16 }
  0x5b   : > { %s1912_s27 = sshll.u32 %s3263_s17, 4  ;;  %s3297_s27 = int_to_ptr.vmem [resolvable:$true] %s1912_s27 }
  0x5c   : > { %s2859_s11 = scalar_lea.vmem %s3297_s27, 2048  ;;  %p2866_p1 = scmp.lt.s32.totalorder %s3297_s27, %s2864_s12 }
  0x5d   : > { %p2860_p12 = scmp.ne.s32.totalorder %s3297_s27, %s2859_s11  ;;  %p2867_p2 = scmp.lt.s32.totalorder %s2865_s13, %s2859_s11 }
  0x5f   : > { %1217 = vmatmul.mubr.bf16.gmra.mrb[24].mxu1 %v2792_v57  ;;  %1088 = vmatmul.mubr.bf16.gmra.mrb[24].mxu0 %v2815_v60  ;;  %p2861_p13 = pnand %p2860_p12, %p3012_p4  ;;  %p2868_p3 = por %p2867_p2, %p2866_p1 }
  0x60   : > { %1224 = vmatprep.mubr.bf16.mxu1 %v2795_v59  ;;  %1095 = vmatprep.mubr.bf16.mxu0 %v2817_v62 }
  0x61   : > { %p2862_p0 = pneg %p2861_p13 }
  0x63   : > { %p2869_p5 = pnand %p2868_p3, %p2862_p0 }
  0x67   : > { %1225 = vmatmul.mubr.bf16.gmra.mrb[28].mxu1 %v2798_v61  ;;  %1096 = vmatmul.mubr.bf16.gmra.mrb[28].mxu0 %v2821_v0 }
  0x68   : > { %1232 = vmatprep.mubr.bf16.mxu1 %v2801_v63  ;;  %1103 = vmatprep.mubr.bf16.mxu0 %v2823_v2 }
  0x6f   : > { %1233 = vmatmul.mubr.bf16.gmra.mrb[32].mxu1 %v2804_v1  ;;  %1104 = vmatmul.mubr.bf16.gmra.mrb[32].mxu0 %v2827_v4 }
  0x70   : > { %1240 = vmatprep.mubr.bf16.mxu1 %v2807_v3  ;;  %1111 = vmatprep.mubr.bf16.mxu0 %v2829_v6 }
  0x77   : > { %1241 = vmatmul.mubr.bf16.gmra.mrb[36].mxu1 %v2810_v5  ;;  %1112 = vmatmul.mubr.bf16.gmra.mrb[36].mxu0 %v2833_v8 }
  0x78   : > { %1248 = vmatprep.mubr.bf16.mxu1 %v2813_v7  ;;  %1119 = vmatprep.mubr.bf16.mxu0 %v2835_v10 }
  0x7f   : > { %1249 = vmatmul.mubr.bf16.gmra.mrb[40].mxu1 %v2816_v9  ;;  %1120 = vmatmul.mubr.bf16.gmra.mrb[40].mxu0 %v2839_v12 }
  0x80   : > { %1256 = vmatprep.mubr.bf16.mxu1 %v2819_v11  ;;  %1127 = vmatprep.mubr.bf16.mxu0 %v2841_v14 }
  0x87   : > { %1257 = vmatmul.mubr.bf16.gmra.mrb[44].mxu1 %v2822_v13  ;;  %1128 = vmatmul.mubr.bf16.gmra.mrb[44].mxu0 %v2845_v16 }
  0x88   : > { %1264 = vmatprep.mubr.bf16.mxu1 %v2825_v15 }
  0x8f   : > { %1265 = vmatmul.mubr.bf16.gmra.mrb[48].mxu1 %v2828_v17 }
  0x90   : > { %1272 = vmatprep.mubr.bf16.mxu1 %v2831_v18 }
  0x97   : > { %1273 = vmatmul.mubr.bf16.gmra.mrb[52].mxu1 %v2834_v22 }
  0x98   : > { %1280 = vmatprep.mubr.bf16.mxu1 %v2837_v23 }
  0x9f   : > { %1281 = vmatmul.mubr.bf16.gmra.mrb[56].mxu1 %v2840_v30 }
  0xa0   : > { %1288 = vmatprep.mubr.bf16.mxu1 %v2843_v31 }
  0xa7   : > { %1289 = vmatmul.mubr.bf16.gmra.mrb[60].mxu1 %v2846_v38 }
  0xa8   : > { %1296 = vmatprep.mubr.bf16.mxu1 %v2847_v39 }
  0xaf   : > { %1297 = vmatmul.mubr.bf16.gmra.mrb[64].mxu1 %v2849_v46 }
  0xb0   : > { %1304 = vmatprep.mubr.bf16.mxu1 %v2850_v47 }
  0xb7   : > { %1305 = vmatmul.mubr.bf16.gmra.mrb[68].mxu1 %v2852_v51 }
  0xb8   : > { %1312 = vmatprep.mubr.bf16.mxu1 %v2853_v52 }
  0xbf   : > { %1313 = vmatmul.mubr.bf16.gmra.mrb[72].mxu1 %v2855_v53 }
  0xc0   : > { %1320 = vmatprep.mubr.bf16.mxu1 %v2856_v54 }
  0xc7   : > { %1321 = vmatmul.mubr.bf16.gmra.mrb[76].mxu1 %v2858_v55 }
 0x102   : > { %v2394_v56 = vpop.f32.mrb[0].mxu1  ;;  %v2322_v62 = vpop.f32.mrb[0].mxu0 }
 0x103   : > { %v2395_v57 = vpop.f32.mrb[1].mxu1  ;;  %v2323_v0 = vpop.f32.mrb[1].mxu0 }
 0x104   : > { %v3244_v58 = vadd.f32 %v2395_v57, %v2394_v56  ;;  %v2397_v59 = vpop.f32.mrb[2].mxu1  ;;  %v2324_v2 = vadd.f32 %v2323_v0, %v2322_v62  ;;  %v2325_v3 = vpop.f32.mrb[2].mxu0 }
 0x105   : > { %v2398_v60 = vpop.f32.mrb[3].mxu1  ;;  %v2326_v6 = vpop.f32.mrb[3].mxu0 }
 0x106   : > { %v3246_v61 = vadd.f32 %v2398_v60, %v2397_v59  ;;  %v2327_v8 = vadd.f32 %v2326_v6, %v2325_v3 }
 0x10a   : > { %v2400_v63 = vpop.f32.mrb[4].mxu1  ;;  %v2328_v10 = vpop.f32.mrb[4].mxu0 }
 0x10b   : > { %v2401_v1 = vpop.f32.mrb[5].mxu1  ;;  %v2329_v12 = vpop.f32.mrb[5].mxu0 }
 0x10c   : > { %v3248_v4 = vadd.f32 %v2401_v1, %v2400_v63  ;;  %v2403_v5 = vpop.f32.mrb[6].mxu1  ;;  %v2330_v14 = vadd.f32 %v2329_v12, %v2328_v10  ;;  %v2331_v15 = vpop.f32.mrb[6].mxu0 }
 0x10d   : > { %v2404_v7 = vpop.f32.mrb[7].mxu1  ;;  %v2332_v18 = vpop.f32.mrb[7].mxu0 }
 0x10e   : > { %v3250_v9 = vadd.f32 %v2404_v7, %v2403_v5  ;;  %v2333_v20 = vadd.f32 %v2332_v18, %v2331_v15 }
 0x112   : > { %v2406_v11 = vpop.f32.mrb[8].mxu1  ;;  %v2334_v22 = vpop.f32.mrb[8].mxu0 }
 0x113   : > { %v2407_v13 = vpop.f32.mrb[9].mxu1  ;;  %v2335_v24 = vpop.f32.mrb[9].mxu0 }
 0x114   : > { %v3252_v16 = vadd.f32 %v2407_v13, %v2406_v11  ;;  %v2409_v17 = vpop.f32.mrb[10].mxu1  ;;  %v2336_v26 = vadd.f32 %v2335_v24, %v2334_v22  ;;  %v2337_v27 = vpop.f32.mrb[10].mxu0 }
 0x115   : > { %v2410_v19 = vpop.f32.mrb[11].mxu1  ;;  %v2338_v30 = vpop.f32.mrb[11].mxu0 }
 0x116   : > { %v3254_v21 = vadd.f32 %v2410_v19, %v2409_v17  ;;  %v2339_v32 = vadd.f32 %v2338_v30, %v2337_v27 }
 0x11a   : > { %v2412_v23 = vpop.f32.mrb[12].mxu1  ;;  %v2340_v34 = vpop.f32.mrb[12].mxu0 }
 0x11b   : > { %v2413_v25 = vpop.f32.mrb[13].mxu1  ;;  %v2341_v36 = vpop.f32.mrb[13].mxu0 }
 0x11c   : > { %v3256_v28 = vadd.f32 %v2413_v25, %v2412_v23  ;;  %v2415_v29 = vpop.f32.mrb[14].mxu1  ;;  %v2342_v38 = vadd.f32 %v2341_v36, %v2340_v34  ;;  %v2343_v39 = vpop.f32.mrb[14].mxu0 }
 0x11d   : > { %v2416_v31 = vpop.f32.mrb[15].mxu1  ;;  %v2344_v42 = vpop.f32.mrb[15].mxu0 }
 0x11e   : > { %v3258_v33 = vadd.f32 %v2416_v31, %v2415_v29  ;;  %v2345_v44 = vadd.f32 %v2344_v42, %v2343_v39 }
 0x122   : > { %v2434_v35 = vpop.f32.mrb[16].mxu1  ;;  %v2346_v48 = vpop.f32.mrb[16].mxu0 }
 0x123   : > { %v2435_v37 = vpop.f32.mrb[17].mxu1  ;;  %v2347_v51 = vpop.f32.mrb[17].mxu0 }
 0x124   : > { %v2436_v40 = vadd.f32 %v2435_v37, %v2434_v35  ;;  %v2437_v41 = vpop.f32.mrb[18].mxu1  ;;  %v2348_v53 = vadd.f32 %v2347_v51, %v2346_v48  ;;  %v2349_v54 = vpop.f32.mrb[18].mxu0 }
 0x125   : > { %v2438_v43 = vpop.f32.mrb[19].mxu1  ;;  %v2350_v57 = vpop.f32.mrb[19].mxu0 }
 0x126   : > { %v1203_v45 = vadd.f32 %v2436_v40, %v2324_v2  ;;  %v2439_v46 = vadd.f32 %v2438_v43, %v2437_v41  ;;  %v2351_v60 = vadd.f32 %v2350_v57, %v2349_v54 }
 0x128   : > { %v1206_v47 = vadd.f32 %v2439_v46, %v2327_v8 }
 0x12a   : > { %v2440_v49 = vpop.f32.mrb[20].mxu1  ;;  %v1428_v50 = vpack.c.bf16 %v1206_v47, %v1203_v45  ;;  %v2352_v1 = vpop.f32.mrb[20].mxu0 }
 0x12b   : > { %v2441_v52 = vpop.f32.mrb[21].mxu1  ;;  %v2353_v5 = vpop.f32.mrb[21].mxu0 }
 0x12c   : > { %v2442_v55 = vadd.f32 %v2441_v52, %v2440_v49  ;;  %v2443_v56 = vpop.f32.mrb[22].mxu1  ;;  %2215 = vst [vmem:[%s3263_s17] sm:$0xff] %v1428_v50   ;;  %2594 = vmatprep.mubr.bf16.mxu0 %v1428_v50  ;;  %v2354_v7 = vadd.f32 %v2353_v5, %v2352_v1  ;;  %v2355_v8 = vpop.f32.mrb[22].mxu0 }
 0x12d   : > { %v2444_v59 = vpop.f32.mrb[23].mxu1  ;;  %v2356_v12 = vpop.f32.mrb[23].mxu0 }
 0x12e   : > { %v1211_v62 = vadd.f32 %v2442_v55, %v2330_v14  ;;  %v2445_v63 = vadd.f32 %v2444_v59, %v2443_v56  ;;  %v2357_v15 = vadd.f32 %v2356_v12, %v2355_v8 }
 0x130   : > { %v1214_v0 = vadd.f32 %v2445_v63, %v2333_v20 }
 0x132   : > { %v1429_v2 = vpack.c.bf16 %v1214_v0, %v1211_v62  ;;  %v2446_v3 = vpop.f32.mrb[24].mxu1  ;;  %v2358_v19 = vpop.f32.mrb[24].mxu0 }
 0x133   : > { %v2447_v6 = vpop.f32.mrb[25].mxu1  ;;  %v2359_v23 = vpop.f32.mrb[25].mxu0 }
 0x134   : > { %2291 = vst [vmem:[%s3263_s17 + $0x8] sm:$0xff] %v1429_v2   ;;  %v2448_v10 = vadd.f32 %v2447_v6, %v2446_v3  ;;  %v2449_v11 = vpop.f32.mrb[26].mxu1  ;;  %2595 = vmatmul.mubr.bf16.vlgmr.msra.gmra.mrb[48].mxu0 %v1429_v2  ;;  %v2360_v25 = vadd.f32 %v2359_v23, %v2358_v19  ;;  %v2361_v27 = vpop.f32.mrb[26].mxu0 }
 0x135   : > { %v2450_v13 = vpop.f32.mrb[27].mxu1  ;;  %v2362_v31 = vpop.f32.mrb[27].mxu0 }
 0x136   : > { %v1219_v17 = vadd.f32 %v2448_v10, %v2336_v26  ;;  %v2451_v18 = vadd.f32 %v2450_v13, %v2449_v11  ;;  %v2363_v35 = vadd.f32 %v2362_v31, %v2361_v27 }
 0x138   : > { %v1222_v14 = vadd.f32 %v2451_v18, %v2339_v32 }
 0x13a   : > { %v2452_v20 = vpop.f32.mrb[28].mxu1  ;;  %v1430_v22 = vpack.c.bf16 %v1222_v14, %v1219_v17  ;;  %v2364_v39 = vpop.f32.mrb[28].mxu0 }
 0x13b   : > { %v2453_v24 = vpop.f32.mrb[29].mxu1  ;;  %v2365_v41 = vpop.f32.mrb[29].mxu0 }
 0x13c   : > { %v2454_v29 = vadd.f32 %v2453_v24, %v2452_v20  ;;  %v2455_v30 = vpop.f32.mrb[30].mxu1  ;;  %2292 = vst [vmem:[%s3263_s17 + $0x10] sm:$0xff] %v1430_v22   ;;  %2598 = vmatprep.mubr.bf16.mxu0 %v1430_v22  ;;  %v2366_v43 = vadd.f32 %v2365_v41, %v2364_v39  ;;  %v2367_v45 = vpop.f32.mrb[30].mxu0 }
 0x13d   : > { %v2456_v34 = vpop.f32.mrb[31].mxu1  ;;  %v2368_v48 = vpop.f32.mrb[31].mxu0 }
 0x13e   : > { %v1227_v36 = vadd.f32 %v2454_v29, %v2342_v38  ;;  %v2457_v37 = vadd.f32 %v2456_v34, %v2455_v30  ;;  %v2369_v50 = vadd.f32 %v2368_v48, %v2367_v45 }
 0x140   : > { %v1230_v26 = vadd.f32 %v2457_v37, %v2345_v44 }
 0x142   : > { %v2458_v32 = vpop.f32.mrb[32].mxu1  ;;  %v1431_v40 = vpack.c.bf16 %v1230_v26, %v1227_v36  ;;  %v2370_v54 = vpop.f32.mrb[32].mxu0 }
 0x143   : > { %v2459_v42 = vpop.f32.mrb[33].mxu1  ;;  %v2371_v56 = vpop.f32.mrb[33].mxu0 }
 0x144   : > { %v2460_v46 = vadd.f32 %v2459_v42, %v2458_v32  ;;  %v2461_v47 = vpop.f32.mrb[34].mxu1  ;;  %2293 = vst [vmem:[%s3263_s17 + $0x18] sm:$0xff] %v1431_v40   ;;  %2599 = vmatmul.mubr.bf16.gmra.mrb[52].mxu0 %v1431_v40  ;;  %v2372_v59 = vadd.f32 %v2371_v56, %v2370_v54  ;;  %v2373_v62 = vpop.f32.mrb[34].mxu0 }
 0x145   : > { %v2462_v49 = vpop.f32.mrb[35].mxu1  ;;  %v2374_v1 = vpop.f32.mrb[35].mxu0 }
 0x146   : > { %v1235_v51 = vadd.f32 %v2460_v46, %v2348_v53  ;;  %v2463_v52 = vadd.f32 %v2462_v49, %v2461_v47  ;;  %v2375_v3 = vadd.f32 %v2374_v1, %v2373_v62 }
 0x148   : > { %v1238_v38 = vadd.f32 %v2463_v52, %v2351_v60 }
 0x14a   : > { %v2464_v44 = vpop.f32.mrb[36].mxu1  ;;  %v1432_v55 = vpack.c.bf16 %v1238_v38, %v1235_v51  ;;  %v2376_v8 = vpop.f32.mrb[36].mxu0 }
 0x14b   : > { %v2465_v57 = vpop.f32.mrb[37].mxu1  ;;  %v2377_v11 = vpop.f32.mrb[37].mxu0 }
 0x14c   : > { %v2466_v63 = vadd.f32 %v2465_v57, %v2464_v44  ;;  %v2467_v0 = vpop.f32.mrb[38].mxu1  ;;  %2294 = vst [vmem:[%s3263_s17 + $0x20] sm:$0xff] %v1432_v55   ;;  %2602 = vmatprep.mubr.bf16.mxu0 %v1432_v55  ;;  %v2378_v13 = vadd.f32 %v2377_v11, %v2376_v8  ;;  %v2379_v17 = vpop.f32.mrb[38].mxu0 }
 0x14d   : > { %v2468_v2 = vpop.f32.mrb[39].mxu1  ;;  %v2380_v19 = vpop.f32.mrb[39].mxu0 }
 0x14e   : > { %v1243_v5 = vadd.f32 %v2466_v63, %v2354_v7  ;;  %v2469_v6 = vadd.f32 %v2468_v2, %v2467_v0  ;;  %v2381_v22 = vadd.f32 %v2380_v19, %v2379_v17 }
 0x150   : > { %v1246_v53 = vadd.f32 %v2469_v6, %v2357_v15 }
 0x152   : > { %v2470_v60 = vpop.f32.mrb[40].mxu1  ;;  %v1433_v10 = vpack.c.bf16 %v1246_v53, %v1243_v5  ;;  %v2382_v27 = vpop.f32.mrb[40].mxu0 }
 0x153   : > { %v2471_v12 = vpop.f32.mrb[41].mxu1  ;;  %v2383_v30 = vpop.f32.mrb[41].mxu0 }
 0x154   : > { %v2472_v18 = vadd.f32 %v2471_v12, %v2470_v60  ;;  %v2473_v14 = vpop.f32.mrb[42].mxu1  ;;  %2295 = vst [vmem:[%s3263_s17 + $0x28] sm:$0xff] %v1433_v10   ;;  %2603 = vmatmul.mubr.bf16.gmra.mrb[56].mxu0 %v1433_v10  ;;  %v2384_v34 = vadd.f32 %v2383_v30, %v2382_v27  ;;  %v2385_v36 = vpop.f32.mrb[42].mxu0 }
 0x155   : > { %v2474_v20 = vpop.f32.mrb[43].mxu1  ;;  %v2386_v39 = vpop.f32.mrb[43].mxu0 }
 0x156   : > { %v1251_v23 = vadd.f32 %v2472_v18, %v2360_v25  ;;  %v2475_v24 = vadd.f32 %v2474_v20, %v2473_v14  ;;  %v2387_v40 = vadd.f32 %v2386_v39, %v2385_v36 }
 0x158   : > { %v1254_v7 = vadd.f32 %v2475_v24, %v2363_v35 }
 0x15a   : > { %v2476_v15 = vpop.f32.mrb[44].mxu1  ;;  %v1434_v29 = vpack.c.bf16 %v1254_v7, %v1251_v23  ;;  %v2388_v45 = vpop.f32.mrb[44].mxu0 }
 0x15b   : > { %v2477_v31 = vpop.f32.mrb[45].mxu1  ;;  %v2389_v47 = vpop.f32.mrb[45].mxu0 }
 0x15c   : > { %v2478_v37 = vadd.f32 %v2477_v31, %v2476_v15  ;;  %v2479_v26 = vpop.f32.mrb[46].mxu1  ;;  %2296 = vst [vmem:[%s3263_s17 + $0x30] sm:$0xff] %v1434_v29   ;;  %2606 = vmatprep.mubr.bf16.mxu0 %v1434_v29  ;;  %v2390_v49 = vadd.f32 %v2389_v47, %v2388_v45  ;;  %v2391_v51 = vpop.f32.mrb[46].mxu0 }
 0x15d   : > { %v2480_v32 = vpop.f32.mrb[47].mxu1  ;;  %v2392_v54 = vpop.f32.mrb[47].mxu0 }
 0x15e   : > { %v1259_v41 = vadd.f32 %v2478_v37, %v2366_v43  ;;  %v2481_v42 = vadd.f32 %v2480_v32, %v2479_v26  ;;  %v2393_v55 = vadd.f32 %v2392_v54, %v2391_v51 }
 0x160   : > { %v1262_v25 = vadd.f32 %v2481_v42, %v2369_v50 }
 0x162   : > { %v2482_v35 = vpop.f32.mrb[48].mxu1  ;;  %v1435_v46 = vpack.c.bf16 %v1262_v25, %v1259_v41 }
 0x163   : > { %v2483_v48 = vpop.f32.mrb[49].mxu1 }
 0x164   : > { %v2484_v52 = vadd.f32 %v2483_v48, %v2482_v35  ;;  %v2485_v38 = vpop.f32.mrb[50].mxu1  ;;  %2297 = vst [vmem:[%s3263_s17 + $0x38] sm:$0xff] %v1435_v46   ;;  %2607 = vmatmul.mubr.bf16.gmra.mrb[60].mxu0 %v1435_v46 }
 0x165   : > { %v2486_v44 = vpop.f32.mrb[51].mxu1 }
 0x166   : > { %v1267_v56 = vadd.f32 %v2484_v52, %v2372_v59  ;;  %v2487_v57 = vadd.f32 %v2486_v44, %v2485_v38 }
 0x168   : > { %v1270_v43 = vadd.f32 %v2487_v57, %v2375_v3 }
 0x16a   : > { %v2488_v62 = vpop.f32.mrb[52].mxu1  ;;  %v1436_v50 = vpack.c.bf16 %v1270_v43, %v1267_v56 }
 0x16b   : > { %v2489_v63 = vpop.f32.mrb[53].mxu1 }
 0x16c   : > { %v2490_v0 = vadd.f32 %v2489_v63, %v2488_v62  ;;  %v2491_v1 = vpop.f32.mrb[54].mxu1  ;;  %2298 = vst [vmem:[%s3263_s17 + $0x40] sm:$0xff] %v1436_v50   ;;  %2610 = vmatprep.mubr.bf16.mxu0 %v1436_v50 }
 0x16d   : > { %v2492_v2 = vpop.f32.mrb[55].mxu1 }
 0x16e   : > { %v1275_v5 = vadd.f32 %v2490_v0, %v2378_v13  ;;  %v2493_v6 = vadd.f32 %v2492_v2, %v2491_v1 }
 0x170   : > { %v1278_v53 = vadd.f32 %v2493_v6, %v2381_v22 }
 0x172   : > { %v2494_v8 = vpop.f32.mrb[56].mxu1  ;;  %v1437_v60 = vpack.c.bf16 %v1278_v53, %v1275_v5 }
 0x173   : > { %v2495_v10 = vpop.f32.mrb[57].mxu1 }
 0x174   : > { %v2496_v11 = vadd.f32 %v2495_v10, %v2494_v8  ;;  %v2497_v59 = vpop.f32.mrb[58].mxu1  ;;  %2299 = vst [vmem:[%s3263_s17 + $0x48] sm:$0xff] %v1437_v60   ;;  %2611 = vmatmul.mubr.bf16.gmra.mrb[64].mxu0 %v1437_v60 }
 0x175   : > { %v2498_v3 = vpop.f32.mrb[59].mxu1 }
 0x176   : > { %v1283_v12 = vadd.f32 %v2496_v11, %v2384_v34  ;;  %v2499_v17 = vadd.f32 %v2498_v3, %v2497_v59 }
 0x178   : > { %v1286_v18 = vadd.f32 %v2499_v17, %v2387_v40 }
 0x17a   : > { %v2500_v14 = vpop.f32.mrb[60].mxu1  ;;  %v1438_v19 = vpack.c.bf16 %v1286_v18, %v1283_v12 }
 0x17b   : > { %v2501_v20 = vpop.f32.mrb[61].mxu1 }
 0x17c   : > { %v2502_v23 = vadd.f32 %v2501_v20, %v2500_v14  ;;  %v2503_v13 = vpop.f32.mrb[62].mxu1  ;;  %2300 = vst [vmem:[%s3263_s17 + $0x50] sm:$0xff] %v1438_v19   ;;  %2614 = vmatprep.mubr.bf16.mxu0 %v1438_v19 }
 0x17d   : > { %v2504_v22 = vpop.f32.mrb[63].mxu1 }
 0x17e   : > { %v1291_v24 = vadd.f32 %v2502_v23, %v2390_v49  ;;  %v2505_v7 = vadd.f32 %v2504_v22, %v2503_v13 }
 0x180   : > { %v1294_v27 = vadd.f32 %v2505_v7, %v2393_v55 }
 0x182   : > { %v2506_v15 = vpop.f32.mrb[64].mxu1  ;;  %v1439_v29 = vpack.c.bf16 %v1294_v27, %v1291_v24 }
 0x183   : > { %v2507_v30 = vpop.f32.mrb[65].mxu1 }
 0x184   : > { %v2508_v31 = vadd.f32 %v2507_v30, %v2506_v15  ;;  %v2509_v34 = vpop.f32.mrb[66].mxu1  ;;  %2301 = vst [vmem:[%s3263_s17 + $0x58] sm:$0xff] %v1439_v29   ;;  %2615 = vmatmul.mubr.bf16.gmra.mrb[68].mxu0 %v1439_v29 }
 0x185   : > { %v2510_v36 = vpop.f32.mrb[67].mxu1 }
 0x186   : > { %v1299_v37 = vadd.f32 %v2508_v31, %v3244_v58  ;;  %v2511_v26 = vadd.f32 %v2510_v36, %v2509_v34 }
 0x188   : > { %v1302_v39 = vadd.f32 %v2511_v26, %v3246_v61 }
 0x18a   : > { %v2512_v32 = vpop.f32.mrb[68].mxu1  ;;  %v1440_v40 = vpack.c.bf16 %v1302_v39, %v1299_v37 }
 0x18b   : > { %v2513_v41 = vpop.f32.mrb[69].mxu1 }
 0x18c   : > { %v2514_v42 = vadd.f32 %v2513_v41, %v2512_v32  ;;  %v2515_v25 = vpop.f32.mrb[70].mxu1  ;;  %2302 = vst [vmem:[%s3263_s17 + $0x60] sm:$0xff] %v1440_v40   ;;  %2618 = vmatprep.mubr.bf16.mxu0 %v1440_v40 }
 0x18d   : > { %v2516_v45 = vpop.f32.mrb[71].mxu1 }
 0x18e   : > { %v1307_v35 = vadd.f32 %v2514_v42, %v3248_v4  ;;  %v2517_v46 = vadd.f32 %v2516_v45, %v2515_v25 }
 0x190   : > { %v1310_v47 = vadd.f32 %v2517_v46, %v3250_v9 }
 0x192   : > { %v2518_v48 = vpop.f32.mrb[72].mxu1  ;;  %v1441_v58 = vpack.c.bf16 %v1310_v47, %v1307_v35 }
 0x193   : > { %v2519_v49 = vpop.f32.mrb[73].mxu1 }
 0x194   : > { %v2520_v51 = vadd.f32 %v2519_v49, %v2518_v48  ;;  %v2521_v61 = vpop.f32.mrb[74].mxu1  ;;  %2303 = vst [vmem:[%s3263_s17 + $0x68] sm:$0xff] %v1441_v58   ;;  %2619 = vmatmul.mubr.bf16.gmra.mrb[72].mxu0 %v1441_v58 }
 0x195   : > { %v2522_v52 = vpop.f32.mrb[75].mxu1 }
 0x196   : > { %v1315_v38 = vadd.f32 %v2520_v51, %v3252_v16  ;;  %v2523_v54 = vadd.f32 %v2522_v52, %v2521_v61 }
 0x198   : > { %v1318_v44 = vadd.f32 %v2523_v54, %v3254_v21 }
 0x19a   : > { %v2524_v4 = vpop.f32.mrb[76].mxu1  ;;  %v1442_v9 = vpack.c.bf16 %v1318_v44, %v1315_v38 }
 0x19b   : > { %v2525_v55 = vpop.f32.mrb[77].mxu1 }
 0x19c   : > { %v2526_v56 = vadd.f32 %v2525_v55, %v2524_v4  ;;  %v2527_v57 = vpop.f32.mrb[78].mxu1  ;;  %2304 = vst [vmem:[%s3263_s17 + $0x70] sm:$0xff] %v1442_v9   ;;  %2622 = vmatprep.mubr.bf16.mxu0 %v1442_v9 }
 0x19d   : > { %v2528_v43 = vpop.f32.mrb[79].mxu1 }
 0x19e   : > { %v1323_v62 = vadd.f32 %v2526_v56, %v3256_v28  ;;  %v2529_v50 = vadd.f32 %v2528_v43, %v2527_v57 }
 0x1a0   : > { %v1326_v16 = vadd.f32 %v2529_v50, %v3258_v33 }
 0x1a2   : > { %v1443_v63 = vpack.c.bf16 %v1326_v16, %v1323_v62 }
 0x1a4   : > { %2305 = vst [vmem:[%s3263_s17 + $0x78] sm:$0xff] %v1443_v63   ;;  %2623 = vmatmul.mubr.bf16.gmra.mrb[76].mxu0 %v1443_v63 }
 0x1a5   : > { %2872 = shalt.err (!%p2869_p5)
}
 0x1a6   : > { %s2873_s14 = scalar_lea.hbm %s3295_s8, 2048  ;;  %s2877_s17 = scalar_lea.hbm %s3477_s4, 4096 }
 0x1a7   : > { %p2874_p6 = scmp.ne.s32.totalorder %s3295_s8, %s2873_s14  ;;  %p2878_p10 = scmp.lt.u32.totalorder %s3295_s8, %s3477_s4 }
 0x1a8   : > { %p2879_p11 = scmp.lt.u32.totalorder %s2877_s17, %s2873_s14  ;;  %p2881_p13 = scmp.lt.u32.totalorder %s2873_s14, %s3295_s8 }
 0x1a9   : > { %p2875_p7 = pnand %p2874_p6, %p3012_p4 }
 0x1aa   : > { %p2880_p12 = por %p2879_p11, %p2878_p10 }
 0x1ab   : > { %p2876_p9 = pneg %p2875_p7 }
 0x1ac   : > { %p2882_p0 = por %p2881_p13, %p2880_p12 }
 0x1ae   : > { %p2883_p1 = pnand %p2882_p0, %p2876_p9 }
 0x1b0   : > { %2886 = shalt.err (!%p2883_p1)
}
 0x1b1   : > { %s2940_s7 = smov 64   ;;  %s2941_s11 = smov 4  }
 0x1b2   : > { %2674 = dma.vmem_to_hbm [thread:$0]  (%p3012_p4), %s3297_s27, 2048, %s3295_s8, %s3301_s10, %s2940_s7, %s2940_s7, %s2941_s11  }
 0x1b3   : > { %s3330_s13 = scalar_lea.vmem %s3476_s3, %s2041_s24  ;;  %s3392_s8 = scalar_lea.vmem %s3478_s5, %s2041_s24 }
 0x1b4   : > { %v1590_v21 = vld [vmem:[%s3330_s13 + $0x10] sm:$0xff]  ;;  %v1588_v28 = vld [vmem:[%s3330_s13] sm:$0xff]  ;;  %v1591_v33 = vld [vmem:[%s3330_s13 + $0x18] sm:$0xff] }
 0x1b5   : > { %v1589_v0 = vld [vmem:[%s3330_s13 + $0x8] sm:$0xff]  ;;  %v1594_v1 = vld [vmem:[%s3330_s13 + $0x30] sm:$0xff]  ;;  %v1592_v2 = vld [vmem:[%s3330_s13 + $0x20] sm:$0xff] }
 0x1b6   : > { %v1595_v5 = vld [vmem:[%s3330_s13 + $0x38] sm:$0xff]  ;;  %v1593_v6 = vld [vmem:[%s3330_s13 + $0x28] sm:$0xff]  ;;  %v1598_v53 = vld [vmem:[%s3330_s13 + $0x50] sm:$0xff] }
 0x1b7   : > { %v1596_v8 = vld [vmem:[%s3330_s13 + $0x40] sm:$0xff]  ;;  %v1599_v60 = vld [vmem:[%s3330_s13 + $0x58] sm:$0xff]  ;;  %v1597_v10 = vld [vmem:[%s3330_s13 + $0x48] sm:$0xff] }
 0x1b8   : > { %v1602_v11 = vld [vmem:[%s3330_s13 + $0x70] sm:$0xff]  ;;  %v1600_v59 = vld [vmem:[%s3330_s13 + $0x60] sm:$0xff]  ;;  %v1603_v3 = vld [vmem:[%s3330_s13 + $0x78] sm:$0xff] }
 0x1b9   : > { %v1601_v12 = vld [vmem:[%s3330_s13 + $0x68] sm:$0xff]  ;;  %v3349_v17 = vld [vmem:[%s3330_s13 + $0x90] sm:$0xff]  ;;  %v3352_v18 = vld [vmem:[%s3330_s13 + $0x80] sm:$0xff] }
 0x1ba   : > { %v3355_v14 = vld [vmem:[%s3330_s13 + $0x98] sm:$0xff]  ;;  %v3358_v19 = vld [vmem:[%s3330_s13 + $0x88] sm:$0xff]  ;;  %v3361_v20 = vld [vmem:[%s3330_s13 + $0xb0] sm:$0xff] }
 0x1bb   : > { %v3364_v23 = vld [vmem:[%s3330_s13 + $0xa0] sm:$0xff]  ;;  %v3367_v13 = vld [vmem:[%s3330_s13 + $0xb8] sm:$0xff]  ;;  %v3370_v22 = vld [vmem:[%s3330_s13 + $0xa8] sm:$0xff] }
 0x1bc   : > { %v3373_v24 = vld [vmem:[%s3330_s13 + $0xd0] sm:$0xff]  ;;  %v3376_v7 = vld [vmem:[%s3330_s13 + $0xc0] sm:$0xff]  ;;  %v3379_v27 = vld [vmem:[%s3330_s13 + $0xd8] sm:$0xff] }
 0x1bd   : > { %v3382_v15 = vld [vmem:[%s3330_s13 + $0xc8] sm:$0xff]  ;;  %v3385_v29 = vld [vmem:[%s3330_s13 + $0xf0] sm:$0xff]  ;;  %v3395_v31 = vld [vmem:[%s3330_s13 + $0xe0] sm:$0xff] }
 0x1be   : > { %v3398_v34 = vld [vmem:[%s3330_s13 + $0xf8] sm:$0xff]  ;;  %v3401_v36 = vld [vmem:[%s3330_s13 + $0xe8] sm:$0xff] }
 0x207   : > { %v2596_v30 = vpop.f32.mrb[48].mxu0 }
 0x208   : > { %v1831_v37 = vadd.f32 %v2596_v30, %v1590_v21  ;;  %v1702_v26 = vpop.f32.mrb[49].mxu0 }
 0x209   : > { %v1829_v39 = vadd.f32 %v1702_v26, %v1588_v28  ;;  %v2597_v32 = vpop.f32.mrb[50].mxu0 }
 0x20a   : > { %v1832_v40 = vadd.f32 %v2597_v32, %v1591_v33  ;;  %v1705_v41 = vpop.f32.mrb[51].mxu0  ;;  %1863 = vst [vmem:[%s3392_s8 + $0x10] sm:$0xff] %v1831_v37 }
 0x20b   : > { %v1830_v42 = vadd.f32 %v1705_v41, %v1589_v0  ;;  %1861 = vst [vmem:[%s3392_s8] sm:$0xff] %v1829_v39 }
 0x20c   : > { %1864 = vst [vmem:[%s3392_s8 + $0x18] sm:$0xff] %v1832_v40 }
 0x20d   : > { %1862 = vst [vmem:[%s3392_s8 + $0x8] sm:$0xff] %v1830_v42 }
 0x217   : > { %v2600_v25 = vpop.f32.mrb[52].mxu0 }
 0x218   : > { %v1835_v45 = vadd.f32 %v2600_v25, %v1594_v1  ;;  %v1718_v35 = vpop.f32.mrb[53].mxu0 }
 0x219   : > { %v1833_v46 = vadd.f32 %v1718_v35, %v1592_v2  ;;  %v2601_v47 = vpop.f32.mrb[54].mxu0 }
 0x21a   : > { %v1836_v48 = vadd.f32 %v2601_v47, %v1595_v5  ;;  %v1721_v58 = vpop.f32.mrb[55].mxu0  ;;  %1867 = vst [vmem:[%s3392_s8 + $0x30] sm:$0xff] %v1835_v45 }
 0x21b   : > { %v1834_v49 = vadd.f32 %v1721_v58, %v1593_v6  ;;  %1865 = vst [vmem:[%s3392_s8 + $0x20] sm:$0xff] %v1833_v46 }
 0x21c   : > { %1868 = vst [vmem:[%s3392_s8 + $0x38] sm:$0xff] %v1836_v48 }
 0x21d   : > { %1866 = vst [vmem:[%s3392_s8 + $0x28] sm:$0xff] %v1834_v49 }
 0x227   : > { %v2604_v51 = vpop.f32.mrb[56].mxu0 }
 0x228   : > { %v1839_v61 = vadd.f32 %v2604_v51, %v1598_v53  ;;  %v1734_v52 = vpop.f32.mrb[57].mxu0 }
 0x229   : > { %v1837_v38 = vadd.f32 %v1734_v52, %v1596_v8  ;;  %v2605_v54 = vpop.f32.mrb[58].mxu0 }
 0x22a   : > { %v1840_v44 = vadd.f32 %v2605_v54, %v1599_v60  ;;  %v1737_v4 = vpop.f32.mrb[59].mxu0  ;;  %1871 = vst [vmem:[%s3392_s8 + $0x50] sm:$0xff] %v1839_v61 }
 0x22b   : > { %v1838_v9 = vadd.f32 %v1737_v4, %v1597_v10  ;;  %1869 = vst [vmem:[%s3392_s8 + $0x40] sm:$0xff] %v1837_v38 }
 0x22c   : > { %1872 = vst [vmem:[%s3392_s8 + $0x58] sm:$0xff] %v1840_v44 }
 0x22d   : > { %1870 = vst [vmem:[%s3392_s8 + $0x48] sm:$0xff] %v1838_v9 }
 0x237   : > { %v2608_v55 = vpop.f32.mrb[60].mxu0 }
 0x238   : > { %v1843_v56 = vadd.f32 %v2608_v55, %v1602_v11  ;;  %v1750_v57 = vpop.f32.mrb[61].mxu0 }
 0x239   : > { %v1841_v43 = vadd.f32 %v1750_v57, %v1600_v59  ;;  %v2609_v62 = vpop.f32.mrb[62].mxu0 }
 0x23a   : > { %v1844_v50 = vadd.f32 %v2609_v62, %v1603_v3  ;;  %v1753_v16 = vpop.f32.mrb[63].mxu0  ;;  %1875 = vst [vmem:[%s3392_s8 + $0x70] sm:$0xff] %v1843_v56 }
 0x23b   : > { %v1842_v63 = vadd.f32 %v1753_v16, %v1601_v12  ;;  %1873 = vst [vmem:[%s3392_s8 + $0x60] sm:$0xff] %v1841_v43 }
 0x23c   : > { %1876 = vst [vmem:[%s3392_s8 + $0x78] sm:$0xff] %v1844_v50 }
 0x23d   : > { %1874 = vst [vmem:[%s3392_s8 + $0x68] sm:$0xff] %v1842_v63 }
 0x247   : > { %v2612_v21 = vpop.f32.mrb[64].mxu0 }
 0x248   : > { %v1847_v28 = vadd.f32 %v2612_v21, %v3349_v17  ;;  %v1766_v33 = vpop.f32.mrb[65].mxu0 }
 0x249   : > { %v1845_v0 = vadd.f32 %v1766_v33, %v3352_v18  ;;  %v2613_v1 = vpop.f32.mrb[66].mxu0 }
 0x24a   : > { %v1848_v2 = vadd.f32 %v2613_v1, %v3355_v14  ;;  %v1769_v5 = vpop.f32.mrb[67].mxu0  ;;  %1879 = vst [vmem:[%s3392_s8 + $0x90] sm:$0xff] %v1847_v28 }
 0x24b   : > { %v1846_v6 = vadd.f32 %v1769_v5, %v3358_v19  ;;  %1877 = vst [vmem:[%s3392_s8 + $0x80] sm:$0xff] %v1845_v0 }
 0x24c   : > { %1880 = vst [vmem:[%s3392_s8 + $0x98] sm:$0xff] %v1848_v2 }
 0x24d   : > { %1878 = vst [vmem:[%s3392_s8 + $0x88] sm:$0xff] %v1846_v6 }
 0x257   : > { %v2616_v53 = vpop.f32.mrb[68].mxu0 }
 0x258   : > { %v1851_v8 = vadd.f32 %v2616_v53, %v3361_v20  ;;  %v1782_v60 = vpop.f32.mrb[69].mxu0 }
 0x259   : > { %v1849_v10 = vadd.f32 %v1782_v60, %v3364_v23  ;;  %v2617_v11 = vpop.f32.mrb[70].mxu0 }
 0x25a   : > { %v1852_v59 = vadd.f32 %v2617_v11, %v3367_v13  ;;  %v1785_v3 = vpop.f32.mrb[71].mxu0  ;;  %1883 = vst [vmem:[%s3392_s8 + $0xb0] sm:$0xff] %v1851_v8 }
 0x25b   : > { %v1850_v12 = vadd.f32 %v1785_v3, %v3370_v22  ;;  %1881 = vst [vmem:[%s3392_s8 + $0xa0] sm:$0xff] %v1849_v10 }
 0x25c   : > { %1884 = vst [vmem:[%s3392_s8 + $0xb8] sm:$0xff] %v1852_v59 }
 0x25d   : > { %1882 = vst [vmem:[%s3392_s8 + $0xa8] sm:$0xff] %v1850_v12 }
 0x267   : > { %v2620_v17 = vpop.f32.mrb[72].mxu0 }
 0x268   : > { %v1855_v18 = vadd.f32 %v2620_v17, %v3373_v24  ;;  %v1798_v14 = vpop.f32.mrb[73].mxu0 }
 0x269   : > { %v1853_v19 = vadd.f32 %v1798_v14, %v3376_v7  ;;  %v2621_v20 = vpop.f32.mrb[74].mxu0 }
 0x26a   : > { %v1856_v23 = vadd.f32 %v2621_v20, %v3379_v27  ;;  %v1801_v13 = vpop.f32.mrb[75].mxu0  ;;  %1887 = vst [vmem:[%s3392_s8 + $0xd0] sm:$0xff] %v1855_v18 }
 0x26b   : > { %v1854_v22 = vadd.f32 %v1801_v13, %v3382_v15  ;;  %1885 = vst [vmem:[%s3392_s8 + $0xc0] sm:$0xff] %v1853_v19 }
 0x26c   : > { %1888 = vst [vmem:[%s3392_s8 + $0xd8] sm:$0xff] %v1856_v23 }
 0x26d   : > { %1886 = vst [vmem:[%s3392_s8 + $0xc8] sm:$0xff] %v1854_v22 }
 0x277   : > { %v2624_v30 = vpop.f32.mrb[76].mxu0 }
 0x278   : > { %v1859_v24 = vadd.f32 %v2624_v30, %v3385_v29  ;;  %v1814_v37 = vpop.f32.mrb[77].mxu0 }
 0x279   : > { %v1857_v7 = vadd.f32 %v1814_v37, %v3395_v31  ;;  %v2625_v26 = vpop.f32.mrb[78].mxu0 }
 0x27a   : > { %v1860_v39 = vadd.f32 %v2625_v26, %v3398_v34  ;;  %v1817_v27 = vpop.f32.mrb[79].mxu0  ;;  %1891 = vst [vmem:[%s3392_s8 + $0xf0] sm:$0xff] %v1859_v24 }
 0x27b   : > { %v1858_v32 = vadd.f32 %v1817_v27, %v3401_v36  ;;  %1889 = vst [vmem:[%s3392_s8 + $0xe0] sm:$0xff] %v1857_v7 }
 0x27c   : > { %1892 = vst [vmem:[%s3392_s8 + $0xf8] sm:$0xff] %v1860_v39 }
 0x27d   : > { %1890 = vst [vmem:[%s3392_s8 + $0xe8] sm:$0xff] %v1858_v32 }
 0x27e PF: > { %p2680_p4 = scmp.ge.s32.totalorder %s2937_s23, 2  ;;  %s1931_s9 = sand.u32 1, %s2917_s18  }
 0x27f   : > { %s1932_s24 = scalar_lea.sflag [#allocation4], %s1931_s9 }
 0x280   : > { %p2677_p2 = pnand %p2680_p4, %p3019_p8 }
 0x282   : > { %2912 = dma.done.wait (!%p2677_p2), %s1932_s24, 2048  }
 0x283   : > { %2914 = vsyncadd (!%p2677_p2), %s1932_s24, 4294965248  ;;  %s19_s23 = sadd.s32 1, %s2937_s23   ;;  %s3481_s18 = smov %s2921_s19 }
 0x284   : > { %p16_p3 = scmp.ge.s32.totalorder %s19_s23, 4   ;;  %s3482_s19 = smov %s2925_s20 }
 0x285   : > { %s3483_s20 = smov %s3025_s6  ;;  %s3484_s21 = smov %s2933_s22 }
 0x286   : > { %s3485_s22 = smov %s3487_s26  ;;  %18 = sbr.rel (!%p16_p3) target bundleno = 4 (0x4), region = 95 }
 0x28d   :  { %1945 = vsyncpa [#allocation4], 1 }
 0x28e   :  { %1947 = vsyncpa [#allocation4 + $0x1], 1 }

</bundles_post_ra>
